<compile_context>
chip_gen: v5e
topology: v5e:2x2
jax: 0.10.0
libtpu: 0.0.40
codegen_flags: <defaults>
</compile_context>

<pallas_src>
import functools
import math

import jax
import jax.numpy as jnp
from jax.experimental import pallas as pl
from jax.experimental.pallas import tpu as pltpu

BN_EPS = 1e-5
DEFAULT_TM = 512   # rows per matmul tile (review: ~512-row tiles ~85% HBM roofline)


def _round_up(x, m):
    return ((x + m - 1) // m) * m


# ----------------------------- Pallas kernels -----------------------------

def _matmul_bias_kernel(a_ref, w_ref, b_ref, o_ref, *, relu):
    acc = jnp.dot(a_ref[...], w_ref[...], preferred_element_type=jnp.float32)
    out = acc + b_ref[...]
    if relu:
        out = jnp.maximum(out, 0.0)
    o_ref[...] = out.astype(o_ref.dtype)


def _matmul_bias_res_kernel(a_ref, w_ref, b_ref, r_ref, o_ref, *, relu):
    acc = jnp.dot(a_ref[...], w_ref[...], preferred_element_type=jnp.float32)
    out = acc + b_ref[...] + r_ref[...]
    if relu:
        out = jnp.maximum(out, 0.0)
    o_ref[...] = out.astype(o_ref.dtype)


def _attention_kernel(q_ref, k_ref, v_ref, x_ref, o_ref):
    # Whole-batch block: q/k/v are (N, HW, C) bf16, x/out are (N, HW, C) f32.
    q = q_ref[...]
    k = k_ref[...]
    # energy[b, i, j] = sum_c q[b, i, c] * k[b, j, c]  (== bmm(query, key) in ref)
    energy = jnp.einsum("bqc,bkc->bqk", q, k, preferred_element_type=jnp.float32)
    energy = energy - jnp.max(energy, axis=-1, keepdims=True)
    p = jnp.exp(energy)
    attn = p * pl.reciprocal(jnp.sum(p, axis=-1, keepdims=True), approx=True)
    out = jnp.einsum("bqk,bkc->bqc", attn.astype(jnp.bfloat16), v_ref[...],
                     preferred_element_type=jnp.float32)
    # gamma is folded into the value projection weights outside the kernel.
    o_ref[...] = out + x_ref[...]


def _avgpool_fc_kernel(x_ref, w_ref, b_ref, o_ref):
    # x_ref: (N, HW, C); adaptive avg-pool to (1,1) == mean over HW, then FC.
    pooled = jnp.mean(x_ref[...], axis=1)                              # (N, C) f32
    o_ref[...] = (jnp.dot(pooled.astype(jnp.bfloat16), w_ref[...],
                          preferred_element_type=jnp.float32) + b_ref[...])


# ----------------------------- Pallas wrappers -----------------------------

def _full_spec(shape):
    nd = len(shape)
    return pl.BlockSpec(shape, lambda *args, _nd=nd: (0,) * _nd)


def matmul_bias(a, w, b, *, relu=False, residual=None, out_dtype=jnp.float32,
                tm=DEFAULT_TM):
    """(M,K)@(K,N) + bias (+residual) (+relu); M tiled, bf16 inputs, f32 acc."""
    M, K = a.shape
    N = w.shape[1]
    a = a.astype(jnp.bfloat16)
    w = w.astype(jnp.bfloat16)
    b = b.astype(jnp.float32).reshape(1, N)

    TM = min(tm, _round_up(M, 8))
    grid_m = pl.cdiv(M, TM)
    Mp = grid_m * TM
    if Mp != M:
        a = jnp.pad(a, ((0, Mp - M), (0, 0)))

    inputs = [a, w, b]
    in_specs = [
        pl.BlockSpec((TM, K), lambda i: (i, 0)),
        pl.BlockSpec((K, N), lambda i: (0, 0)),
        pl.BlockSpec((1, N), lambda i: (0, 0)),
    ]
    if residual is None:
        kernel = functools.partial(_matmul_bias_kernel, relu=relu)
        res_bytes = 0
    else:
        r = residual.astype(jnp.float32)
        if Mp != M:
            r = jnp.pad(r, ((0, Mp - M), (0, 0)))
        inputs.append(r)
        in_specs.append(pl.BlockSpec((TM, N), lambda i: (i, 0)))
        kernel = functools.partial(_matmul_bias_res_kernel, relu=relu)
        res_bytes = Mp * N * 4

    out_bytes = Mp * N * jnp.dtype(out_dtype).itemsize
    cost = pl.CostEstimate(
        flops=2 * Mp * K * N, transcendentals=0,
        bytes_accessed=Mp * K * 2 + K * N * 2 + N * 4 + res_bytes + out_bytes)

    out = pl.pallas_call(
        kernel,
        grid=(grid_m,),
        in_specs=in_specs,
        out_specs=pl.BlockSpec((TM, N), lambda i: (i, 0)),
        out_shape=jax.ShapeDtypeStruct((Mp, N), out_dtype),
        compiler_params=pltpu.CompilerParams(dimension_semantics=("parallel",)),
        cost_estimate=cost,
    )(*inputs)
    return out if Mp == M else out[:M]


# ----------------------------- conv / bn glue -----------------------------

def im2col(x, ksize, stride, pad):
    # x: (N, H, W, C); returns (N*Ho*Wo, ksize*ksize*C) in (ky, kx, cin) order.
    N, H, W, C = x.shape
    if pad > 0:
        x = jnp.pad(x, ((0, 0), (pad, pad), (pad, pad), (0, 0)))
    Hp, Wp = H + 2 * pad, W + 2 * pad
    Ho = (Hp - ksize) // stride + 1
    Wo = (Wp - ksize) // stride + 1
    cols = []
    for ky in range(ksize):
        for kx in range(ksize):
            cols.append(x[:, ky:ky + stride * (Ho - 1) + 1:stride,
                          kx:kx + stride * (Wo - 1) + 1:stride, :])
    patches = jnp.concatenate(cols, axis=-1)
    return patches.reshape(N * Ho * Wo, ksize * ksize * C), (N, Ho, Wo)


def fold_bn(w, bn):
    # Fold BN (running stats, inference) into the conv weight / bias.
    scale = bn["gamma"] * jax.lax.rsqrt(bn["var"] + BN_EPS)      # (Cout,)
    shift = bn["beta"] - bn["mean"] * scale                       # (Cout,)
    Cout, Cin, KH, KW = w.shape
    wmat = jnp.transpose(w, (2, 3, 1, 0)).reshape(KH * KW * Cin, Cout)
    return wmat * scale[None, :], shift.reshape(1, Cout)


def conv_bn(x, w, bn, *, stride, pad, relu, residual=None):
    # w in PyTorch layout (Cout, Cin, KH, KW); x NHWC f32.
    Cout, Cin, KH, KW = w.shape
    # TODO(synk): im2col still materializes 3x3 patches (9x, now bf16) in HBM; a
    # halo-tile / in-kernel tap-accumulation conv would remove this entirely.
    patches, (N, Ho, Wo) = im2col(x.astype(jnp.bfloat16), KH, stride, pad)
    wmat, bias = fold_bn(w, bn)
    res = None if residual is None else residual.reshape(N * Ho * Wo, Cout)
    y = matmul_bias(patches, wmat, bias, relu=relu, residual=res)
    return y.reshape(N, Ho, Wo, Cout)


def maxpool3x3_s2_p1(x):
    # Per perf review: plain XLA maximum tree; Pallas reserved for matmuls.
    N, H, W, C = x.shape
    xp = jnp.pad(x, ((0, 0), (1, 1), (1, 1), (0, 0)), constant_values=-jnp.inf)
    Ho = (H + 2 - 3) // 2 + 1
    Wo = (W + 2 - 3) // 2 + 1
    out = None
    for ky in range(3):
        for kx in range(3):
            tap = xp[:, ky:ky + 2 * (Ho - 1) + 1:2, kx:kx + 2 * (Wo - 1) + 1:2, :]
            out = tap if out is None else jnp.maximum(out, tap)
    return out


# ----------------------------- attention / head -----------------------------

def self_attention(ap, x, conv_weights):
    # x, conv_weights: (N, H, W, C) NHWC. Returns (N, HW, C) f32.
    N, H, W, C = x.shape
    HW = H * W
    cw = conv_weights
    if cw.shape[0] != N:
        cw = cw[:N]

    gamma = ap["gamma"].reshape(())                       # scalar, torch.zeros(1)
    wq = jnp.transpose(ap["wq"][:, :, 0, 0])              # (C, C)
    wk = jnp.transpose(ap["wk"][:, :, 0, 0])
    wv = jnp.transpose(ap["wv"][:, :, 0, 0]) * gamma      # gamma*(A@v) == A@(gamma*v)
    wkv = jnp.concatenate([wk, wv], axis=1)               # fused key/value (C, 2C)
    bkv = jnp.concatenate([ap["bk"], ap["bv"] * gamma]).reshape(1, 2 * C)

    q = matmul_bias(cw.reshape(N * HW, C), wq, ap["bq"].reshape(1, C),
                    out_dtype=jnp.bfloat16).reshape(N, HW, C)
    kv = matmul_bias(x.reshape(N * HW, C), wkv, bkv,
                     out_dtype=jnp.bfloat16).reshape(N, HW, 2 * C)
    k = kv[:, :, :C]
    v = kv[:, :, C:]
    x3 = x.reshape(N, HW, C)

    cost = pl.CostEstimate(
        flops=4 * N * HW * HW * C,
        transcendentals=N * HW * HW,
        bytes_accessed=3 * N * HW * C * 2 + 2 * N * HW * C * 4)
    out = pl.pallas_call(
        _attention_kernel,
        grid=(1,),
        in_specs=[_full_spec((N, HW, C))] * 4,
        out_specs=_full_spec((N, HW, C)),
        out_shape=jax.ShapeDtypeStruct((N, HW, C), jnp.float32),
        compiler_params=pltpu.CompilerParams(dimension_semantics=("arbitrary",)),
        cost_estimate=cost,
    )(q, k, v, x3)
    return out


def avgpool_fc(x3, w, b):
    # x3: (N, HW, C) f32; w: (C, num_classes) bf16; b: (1, num_classes) f32.
    N, HW, C = x3.shape
    num_classes = w.shape[1]
    cost = pl.CostEstimate(
        flops=2 * N * C * num_classes, transcendentals=0,
        bytes_accessed=N * HW * C * 4 + C * num_classes * 2
                       + num_classes * 4 + N * num_classes * 4)
    return pl.pallas_call(
        _avgpool_fc_kernel,
        grid=(1,),
        in_specs=[_full_spec(x3.shape), _full_spec(w.shape), _full_spec(b.shape)],
        out_specs=_full_spec((N, num_classes)),
        out_shape=jax.ShapeDtypeStruct((N, num_classes), jnp.float32),
        compiler_params=pltpu.CompilerParams(dimension_semantics=("arbitrary",)),
        cost_estimate=cost,
    )(x3, w, b)


# ----------------------------- parameters -----------------------------

def init_params(key, layers=(1, 1, 1), num_classes=100):
    keys = iter(jax.random.split(key, 512))

    def conv_w(cout, cin, k):
        fan_in = cin * k * k
        return (jax.random.normal(next(keys), (cout, cin, k, k), jnp.float32)
                * (1.0 / math.sqrt(fan_in)))

    def bn(c):
        return dict(gamma=1.0 + 0.1 * jax.random.normal(next(keys), (c,), jnp.float32),
                    beta=0.1 * jax.random.normal(next(keys), (c,), jnp.float32),
                    mean=0.1 * jax.random.normal(next(keys), (c,), jnp.float32),
                    var=0.5 + jax.random.uniform(next(keys), (c,), jnp.float32))

    params = {"conv1": conv_w(16, 3, 3), "bn1": bn(16)}

    in_ch = 16
    plan = [("layer1", 16, layers[0], 1),
            ("layer2", 32, layers[1], 2),
            ("layer3", 64, layers[2], 2)]
    for name, out_ch, nblocks, first_stride in plan:
        blocks = []
        for bi in range(nblocks):
            stride = first_stride if bi == 0 else 1
            blk = dict(w1=conv_w(out_ch, in_ch, 3), bn1=bn(out_ch),
                       w2=conv_w(out_ch, out_ch, 3), bn2=bn(out_ch))
            if stride != 1 or in_ch != out_ch:
                blk["down_w"] = conv_w(out_ch, in_ch, 1)
                blk["down_bn"] = bn(out_ch)
            blocks.append(blk)
            in_ch = out_ch
        params[name] = blocks

    c = 64
    params["attn"] = dict(
        wq=conv_w(c, c, 1), bq=0.01 * jax.random.normal(next(keys), (c,), jnp.float32),
        wk=conv_w(c, c, 1), bk=0.01 * jax.random.normal(next(keys), (c,), jnp.float32),
        wv=conv_w(c, c, 1), bv=0.01 * jax.random.normal(next(keys), (c,), jnp.float32),
        gamma=jnp.zeros((1,), jnp.float32))          # torch.zeros(1)
    params["fc_w"] = (jax.random.normal(next(keys), (num_classes, c), jnp.float32)
                      * (1.0 / math.sqrt(c)))
    params["fc_b"] = 0.01 * jax.random.normal(next(keys), (num_classes,), jnp.float32)
    return params


# ----------------------------- forward -----------------------------

def resnet32_forward(params, x_nchw, conv_weights_nchw, *, layers_cfg):
    # layout: convert NCHW -> NHWC once at the boundary.
    x = jnp.transpose(x_nchw, (0, 2, 3, 1)).astype(jnp.float32)
    cw = jnp.transpose(conv_weights_nchw, (0, 2, 3, 1)).astype(jnp.float32)

    x = conv_bn(x, params["conv1"], params["bn1"], stride=1, pad=1, relu=True)
    x = maxpool3x3_s2_p1(x)

    # Static layer plan (strides are Python ints, NOT part of the params pytree).
    plan = [("layer1", layers_cfg[0], 1),
            ("layer2", layers_cfg[1], 2),
            ("layer3", layers_cfg[2], 2)]
    for name, nblocks, first_stride in plan:
        for bi in range(nblocks):
            blk = params[name][bi]
            stride = first_stride if bi == 0 else 1
            if "down_w" in blk:
                identity = conv_bn(x, blk["down_w"], blk["down_bn"],
                                   stride=stride, pad=0, relu=False)
            else:
                identity = x
            out = conv_bn(x, blk["w1"], blk["bn1"], stride=stride, pad=1, relu=True)
            x = conv_bn(out, blk["w2"], blk["bn2"], stride=1, pad=1, relu=True,
                        residual=identity)

    x3 = self_attention(params["attn"], x, cw)              # (N, HW, C)

    w = jnp.transpose(params["fc_w"]).astype(jnp.bfloat16)  # (C, num_classes)
    b = params["fc_b"].reshape(1, -1).astype(jnp.float32)
    logits = avgpool_fc(x3, w, b)
    return logits


# ----------------------------- main -----------------------------

if __name__ == "__main__":
    key = jax.random.PRNGKey(0)
    k_param, k_x, k_cw = jax.random.split(key, 3)

    layers_cfg = (1, 1, 1)  # TODO(synk): full ResNet32 uses layers=(5,5,5); kept small for a quick demo run.
    num_classes = 100
    params = init_params(k_param, layers=layers_cfg, num_classes=num_classes)

    # Input: batch=2, 3 channels, 16x16 spatial (NCHW, like the PyTorch module).
    x = jax.random.normal(k_x, (2, 3, 16, 16), jnp.float32)
    # conv_weights fed to SelfAttention must match the post-layer3 feature map:
    # (batch, 64, 2, 2) in NCHW for a 16x16 input.
    conv_weights = jax.random.normal(k_cw, (2, 64, 2, 2), jnp.float32)

    fwd = jax.jit(functools.partial(resnet32_forward, layers_cfg=layers_cfg))
    logits = fwd(params, x, conv_weights)
    jax.block_until_ready(logits)
    assert logits.shape == (2, num_classes)
    assert bool(jnp.all(jnp.isfinite(logits)))
    print("KERNEL_OK")
</pallas_src>

<mosaic_0001>
module attributes {stable_mosaic.version = 11 : i64} {
  func.func @_matmul_bias_kernel(%arg0: i32, %arg1: memref<512x27xbf16, #tpu.memory_space<vmem>>, %arg2: memref<27x16xbf16, #tpu.memory_space<vmem>>, %arg3: memref<1x16xf32, #tpu.memory_space<vmem>>, %arg4: memref<512x16xf32, #tpu.memory_space<vmem>>) attributes {dimension_semantics = [#tpu.dimension_semantics<parallel>], iteration_bounds = array<i64: 1>, scalar_prefetch = 0 : i64, scratch_operands = 0 : i64, tpu.core_type = #tpu.core_type<tc>, window_params = [{transform_indices = @transform_0, window_bounds = array<i64: 512, 27>}, {pipeline_mode = #tpu.pipeline_mode<synchronous>, transform_indices = @transform_1, window_bounds = array<i64: 27, 16>}, {pipeline_mode = #tpu.pipeline_mode<synchronous>, transform_indices = @transform_2, window_bounds = array<i64: 1, 16>}, {transform_indices = @transform_3, window_bounds = array<i64: 512, 16>}]} {
    %c0 = arith.constant 0 : index
    %c0_0 = arith.constant 0 : index
    %0 = vector.load %arg1[%c0, %c0_0] : memref<512x27xbf16, #tpu.memory_space<vmem>>, vector<512x27xbf16>
    %c0_1 = arith.constant 0 : index
    %c0_2 = arith.constant 0 : index
    %1 = vector.load %arg2[%c0_1, %c0_2] : memref<27x16xbf16, #tpu.memory_space<vmem>>, vector<27x16xbf16>
    %cst = arith.constant dense<0.000000e+00> : vector<512x16xf32>
    %2 = tpu.matmul %0, %1, %cst {dimension_numbers = #tpu.dot_dimension_numbers<[1], [0], [0], [1], [0, 0, 1, 1], [], []>} : vector<512x27xbf16>, vector<27x16xbf16>, vector<512x16xf32> -> vector<512x16xf32>
    %c0_3 = arith.constant 0 : index
    %c0_4 = arith.constant 0 : index
    %3 = vector.load %arg3[%c0_3, %c0_4] : memref<1x16xf32, #tpu.memory_space<vmem>>, vector<1x16xf32>
    %4 = vector.broadcast %3 : vector<1x16xf32> to vector<512x16xf32>
    %5 = arith.addf %2, %4 : vector<512x16xf32>
    %cst_5 = arith.constant 0.000000e+00 : f32
    %6 = vector.broadcast %cst_5 : f32 to vector<512x16xf32>
    %7 = arith.maximumf %5, %6 : vector<512x16xf32>
    %c0_6 = arith.constant 0 : index
    %c0_7 = arith.constant 0 : index
    %8 = vector.load %arg4[%c0_6, %c0_7] : memref<512x16xf32, #tpu.memory_space<vmem>>, vector<512x16xf32>
    tpu.vector_store %arg4[%c0_6, %c0_7], %7 {strides = array<i32>} : memref<512x16xf32, #tpu.memory_space<vmem>>, vector<512x16xf32>,
    return
  }
  func.func @transform_0(%arg0: i32) -> (i32, i32) {
    %c0_i32 = arith.constant 0 : i32
    %c0_i32_0 = arith.constant 0 : i32
    return %arg0, %c0_i32 : i32, i32
  }
  func.func @transform_1(%arg0: i32) -> (i32, i32) {
    %c0_i32 = arith.constant 0 : i32
    %c0_i32_0 = arith.constant 0 : i32
    %c0_i32_1 = arith.constant 0 : i32
    return %c0_i32, %c0_i32_0 : i32, i32
  }
  func.func @transform_2(%arg0: i32) -> (i32, i32) {
    %c0_i32 = arith.constant 0 : i32
    %c0_i32_0 = arith.constant 0 : i32
    %c0_i32_1 = arith.constant 0 : i32
    return %c0_i32, %c0_i32_0 : i32, i32
  }
  func.func @transform_3(%arg0: i32) -> (i32, i32) {
    %c0_i32 = arith.constant 0 : i32
    %c0_i32_0 = arith.constant 0 : i32
    return %arg0, %c0_i32 : i32, i32
  }
}

module attributes {stable_mosaic.version = 11 : i64} {
  func.func @_matmul_bias_kernel(%arg0: i32, %arg1: memref<128x144xbf16, #tpu.memory_space<vmem>>, %arg2: memref<144x16xbf16, #tpu.memory_space<vmem>>, %arg3: memref<1x16xf32, #tpu.memory_space<vmem>>, %arg4: memref<128x16xf32, #tpu.memory_space<vmem>>) attributes {dimension_semantics = [#tpu.dimension_semantics<parallel>], iteration_bounds = array<i64: 1>, scalar_prefetch = 0 : i64, scratch_operands = 0 : i64, tpu.core_type = #tpu.core_type<tc>, window_params = [{transform_indices = @transform_0, window_bounds = array<i64: 128, 144>}, {pipeline_mode = #tpu.pipeline_mode<synchronous>, transform_indices = @transform_1, window_bounds = array<i64: 144, 16>}, {pipeline_mode = #tpu.pipeline_mode<synchronous>, transform_indices = @transform_2, window_bounds = array<i64: 1, 16>}, {transform_indices = @transform_3, window_bounds = array<i64: 128, 16>}]} {
    %c0 = arith.constant 0 : index
    %c0_0 = arith.constant 0 : index
    %0 = vector.load %arg1[%c0, %c0_0] : memref<128x144xbf16, #tpu.memory_space<vmem>>, vector<128x144xbf16>
    %c0_1 = arith.constant 0 : index
    %c0_2 = arith.constant 0 : index
    %1 = vector.load %arg2[%c0_1, %c0_2] : memref<144x16xbf16, #tpu.memory_space<vmem>>, vector<144x16xbf16>
    %cst = arith.constant dense<0.000000e+00> : vector<128x16xf32>
    %2 = tpu.matmul %0, %1, %cst {dimension_numbers = #tpu.dot_dimension_numbers<[1], [0], [0], [1], [0, 0, 1, 1], [], []>} : vector<128x144xbf16>, vector<144x16xbf16>, vector<128x16xf32> -> vector<128x16xf32>
    %c0_3 = arith.constant 0 : index
    %c0_4 = arith.constant 0 : index
    %3 = vector.load %arg3[%c0_3, %c0_4] : memref<1x16xf32, #tpu.memory_space<vmem>>, vector<1x16xf32>
    %4 = vector.broadcast %3 : vector<1x16xf32> to vector<128x16xf32>
    %5 = arith.addf %2, %4 : vector<128x16xf32>
    %cst_5 = arith.constant 0.000000e+00 : f32
    %6 = vector.broadcast %cst_5 : f32 to vector<128x16xf32>
    %7 = arith.maximumf %5, %6 : vector<128x16xf32>
    %c0_6 = arith.constant 0 : index
    %c0_7 = arith.constant 0 : index
    %8 = vector.load %arg4[%c0_6, %c0_7] : memref<128x16xf32, #tpu.memory_space<vmem>>, vector<128x16xf32>
    tpu.vector_store %arg4[%c0_6, %c0_7], %7 {strides = array<i32>} : memref<128x16xf32, #tpu.memory_space<vmem>>, vector<128x16xf32>,
    return
  }
  func.func @transform_0(%arg0: i32) -> (i32, i32) {
    %c0_i32 = arith.constant 0 : i32
    %c0_i32_0 = arith.constant 0 : i32
    return %arg0, %c0_i32 : i32, i32
  }
  func.func @transform_1(%arg0: i32) -> (i32, i32) {
    %c0_i32 = arith.constant 0 : i32
    %c0_i32_0 = arith.constant 0 : i32
    %c0_i32_1 = arith.constant 0 : i32
    return %c0_i32, %c0_i32_0 : i32, i32
  }
  func.func @transform_2(%arg0: i32) -> (i32, i32) {
    %c0_i32 = arith.constant 0 : i32
    %c0_i32_0 = arith.constant 0 : i32
    %c0_i32_1 = arith.constant 0 : i32
    return %c0_i32, %c0_i32_0 : i32, i32
  }
  func.func @transform_3(%arg0: i32) -> (i32, i32) {
    %c0_i32 = arith.constant 0 : i32
    %c0_i32_0 = arith.constant 0 : i32
    return %arg0, %c0_i32 : i32, i32
  }
}

module attributes {stable_mosaic.version = 11 : i64} {
  func.func @_matmul_bias_res_kernel(%arg0: i32, %arg1: memref<128x144xbf16, #tpu.memory_space<vmem>>, %arg2: memref<144x16xbf16, #tpu.memory_space<vmem>>, %arg3: memref<1x16xf32, #tpu.memory_space<vmem>>, %arg4: memref<128x16xf32, #tpu.memory_space<vmem>>, %arg5: memref<128x16xf32, #tpu.memory_space<vmem>>) attributes {dimension_semantics = [#tpu.dimension_semantics<parallel>], iteration_bounds = array<i64: 1>, scalar_prefetch = 0 : i64, scratch_operands = 0 : i64, tpu.core_type = #tpu.core_type<tc>, window_params = [{transform_indices = @transform_0, window_bounds = array<i64: 128, 144>}, {pipeline_mode = #tpu.pipeline_mode<synchronous>, transform_indices = @transform_1, window_bounds = array<i64: 144, 16>}, {pipeline_mode = #tpu.pipeline_mode<synchronous>, transform_indices = @transform_2, window_bounds = array<i64: 1, 16>}, {transform_indices = @transform_3, window_bounds = array<i64: 128, 16>}, {transform_indices = @transform_4, window_bounds = array<i64: 128, 16>}]} {
    %c0 = arith.constant 0 : index
    %c0_0 = arith.constant 0 : index
    %0 = vector.load %arg1[%c0, %c0_0] : memref<128x144xbf16, #tpu.memory_space<vmem>>, vector<128x144xbf16>
    %c0_1 = arith.constant 0 : index
    %c0_2 = arith.constant 0 : index
    %1 = vector.load %arg2[%c0_1, %c0_2] : memref<144x16xbf16, #tpu.memory_space<vmem>>, vector<144x16xbf16>
    %cst = arith.constant dense<0.000000e+00> : vector<128x16xf32>
    %2 = tpu.matmul %0, %1, %cst {dimension_numbers = #tpu.dot_dimension_numbers<[1], [0], [0], [1], [0, 0, 1, 1], [], []>} : vector<128x144xbf16>, vector<144x16xbf16>, vector<128x16xf32> -> vector<128x16xf32>
    %c0_3 = arith.constant 0 : index
    %c0_4 = arith.constant 0 : index
    %3 = vector.load %arg3[%c0_3, %c0_4] : memref<1x16xf32, #tpu.memory_space<vmem>>, vector<1x16xf32>
    %4 = vector.broadcast %3 : vector<1x16xf32> to vector<128x16xf32>
    %5 = arith.addf %2, %4 : vector<128x16xf32>
    %c0_5 = arith.constant 0 : index
    %c0_6 = arith.constant 0 : index
    %6 = vector.load %arg4[%c0_5, %c0_6] : memref<128x16xf32, #tpu.memory_space<vmem>>, vector<128x16xf32>
    %7 = arith.addf %5, %6 : vector<128x16xf32>
    %cst_7 = arith.constant 0.000000e+00 : f32
    %8 = vector.broadcast %cst_7 : f32 to vector<128x16xf32>
    %9 = arith.maximumf %7, %8 : vector<128x16xf32>
    %c0_8 = arith.constant 0 : index
    %c0_9 = arith.constant 0 : index
    %10 = vector.load %arg5[%c0_8, %c0_9] : memref<128x16xf32, #tpu.memory_space<vmem>>, vector<128x16xf32>
    tpu.vector_store %arg5[%c0_8, %c0_9], %9 {strides = array<i32>} : memref<128x16xf32, #tpu.memory_space<vmem>>, vector<128x16xf32>,
    return
  }
  func.func @transform_0(%arg0: i32) -> (i32, i32) {
    %c0_i32 = arith.constant 0 : i32
    %c0_i32_0 = arith.constant 0 : i32
    return %arg0, %c0_i32 : i32, i32
  }
  func.func @transform_1(%arg0: i32) -> (i32, i32) {
    %c0_i32 = arith.constant 0 : i32
    %c0_i32_0 = arith.constant 0 : i32
    %c0_i32_1 = arith.constant 0 : i32
    return %c0_i32, %c0_i32_0 : i32, i32
  }
  func.func @transform_2(%arg0: i32) -> (i32, i32) {
    %c0_i32 = arith.constant 0 : i32
    %c0_i32_0 = arith.constant 0 : i32
    %c0_i32_1 = arith.constant 0 : i32
    return %c0_i32, %c0_i32_0 : i32, i32
  }
  func.func @transform_3(%arg0: i32) -> (i32, i32) {
    %c0_i32 = arith.constant 0 : i32
    %c0_i32_0 = arith.constant 0 : i32
    return %arg0, %c0_i32 : i32, i32
  }
  func.func @transform_4(%arg0: i32) -> (i32, i32) {
    %c0_i32 = arith.constant 0 : i32
    %c0_i32_0 = arith.constant 0 : i32
    return %arg0, %c0_i32 : i32, i32
  }
}

module attributes {stable_mosaic.version = 11 : i64} {
  func.func @_matmul_bias_kernel(%arg0: i32, %arg1: memref<32x144xbf16, #tpu.memory_space<vmem>>, %arg2: memref<144x32xbf16, #tpu.memory_space<vmem>>, %arg3: memref<1x32xf32, #tpu.memory_space<vmem>>, %arg4: memref<32x32xf32, #tpu.memory_space<vmem>>) attributes {dimension_semantics = [#tpu.dimension_semantics<parallel>], iteration_bounds = array<i64: 1>, scalar_prefetch = 0 : i64, scratch_operands = 0 : i64, tpu.core_type = #tpu.core_type<tc>, window_params = [{transform_indices = @transform_0, window_bounds = array<i64: 32, 144>}, {pipeline_mode = #tpu.pipeline_mode<synchronous>, transform_indices = @transform_1, window_bounds = array<i64: 144, 32>}, {pipeline_mode = #tpu.pipeline_mode<synchronous>, transform_indices = @transform_2, window_bounds = array<i64: 1, 32>}, {transform_indices = @transform_3, window_bounds = array<i64: 32, 32>}]} {
    %c0 = arith.constant 0 : index
    %c0_0 = arith.constant 0 : index
    %0 = vector.load %arg1[%c0, %c0_0] : memref<32x144xbf16, #tpu.memory_space<vmem>>, vector<32x144xbf16>
    %c0_1 = arith.constant 0 : index
    %c0_2 = arith.constant 0 : index
    %1 = vector.load %arg2[%c0_1, %c0_2] : memref<144x32xbf16, #tpu.memory_space<vmem>>, vector<144x32xbf16>
    %cst = arith.constant dense<0.000000e+00> : vector<32x32xf32>
    %2 = tpu.matmul %0, %1, %cst {dimension_numbers = #tpu.dot_dimension_numbers<[1], [0], [0], [1], [0, 0, 1, 1], [], []>} : vector<32x144xbf16>, vector<144x32xbf16>, vector<32x32xf32> -> vector<32x32xf32>
    %c0_3 = arith.constant 0 : index
    %c0_4 = arith.constant 0 : index
    %3 = vector.load %arg3[%c0_3, %c0_4] : memref<1x32xf32, #tpu.memory_space<vmem>>, vector<1x32xf32>
    %4 = vector.broadcast %3 : vector<1x32xf32> to vector<32x32xf32>
    %5 = arith.addf %2, %4 : vector<32x32xf32>
    %cst_5 = arith.constant 0.000000e+00 : f32
    %6 = vector.broadcast %cst_5 : f32 to vector<32x32xf32>
    %7 = arith.maximumf %5, %6 : vector<32x32xf32>
    %c0_6 = arith.constant 0 : index
    %c0_7 = arith.constant 0 : index
    %8 = vector.load %arg4[%c0_6, %c0_7] : memref<32x32xf32, #tpu.memory_space<vmem>>, vector<32x32xf32>
    tpu.vector_store %arg4[%c0_6, %c0_7], %7 {strides = array<i32>} : memref<32x32xf32, #tpu.memory_space<vmem>>, vector<32x32xf32>,
    return
  }
  func.func @transform_0(%arg0: i32) -> (i32, i32) {
    %c0_i32 = arith.constant 0 : i32
    %c0_i32_0 = arith.constant 0 : i32
    return %arg0, %c0_i32 : i32, i32
  }
  func.func @transform_1(%arg0: i32) -> (i32, i32) {
    %c0_i32 = arith.constant 0 : i32
    %c0_i32_0 = arith.constant 0 : i32
    %c0_i32_1 = arith.constant 0 : i32
    return %c0_i32, %c0_i32_0 : i32, i32
  }
  func.func @transform_2(%arg0: i32) -> (i32, i32) {
    %c0_i32 = arith.constant 0 : i32
    %c0_i32_0 = arith.constant 0 : i32
    %c0_i32_1 = arith.constant 0 : i32
    return %c0_i32, %c0_i32_0 : i32, i32
  }
  func.func @transform_3(%arg0: i32) -> (i32, i32) {
    %c0_i32 = arith.constant 0 : i32
    %c0_i32_0 = arith.constant 0 : i32
    return %arg0, %c0_i32 : i32, i32
  }
}

module attributes {stable_mosaic.version = 11 : i64} {
  func.func @_matmul_bias_kernel(%arg0: i32, %arg1: memref<32x16xbf16, #tpu.memory_space<vmem>>, %arg2: memref<16x32xbf16, #tpu.memory_space<vmem>>, %arg3: memref<1x32xf32, #tpu.memory_space<vmem>>, %arg4: memref<32x32xf32, #tpu.memory_space<vmem>>) attributes {dimension_semantics = [#tpu.dimension_semantics<parallel>], iteration_bounds = array<i64: 1>, scalar_prefetch = 0 : i64, scratch_operands = 0 : i64, tpu.core_type = #tpu.core_type<tc>, window_params = [{transform_indices = @transform_0, window_bounds = array<i64: 32, 16>}, {pipeline_mode = #tpu.pipeline_mode<synchronous>, transform_indices = @transform_1, window_bounds = array<i64: 16, 32>}, {pipeline_mode = #tpu.pipeline_mode<synchronous>, transform_indices = @transform_2, window_bounds = array<i64: 1, 32>}, {transform_indices = @transform_3, window_bounds = array<i64: 32, 32>}]} {
    %c0 = arith.constant 0 : index
    %c0_0 = arith.constant 0 : index
    %0 = vector.load %arg1[%c0, %c0_0] : memref<32x16xbf16, #tpu.memory_space<vmem>>, vector<32x16xbf16>
    %c0_1 = arith.constant 0 : index
    %c0_2 = arith.constant 0 : index
    %1 = vector.load %arg2[%c0_1, %c0_2] : memref<16x32xbf16, #tpu.memory_space<vmem>>, vector<16x32xbf16>
    %cst = arith.constant dense<0.000000e+00> : vector<32x32xf32>
    %2 = tpu.matmul %0, %1, %cst {dimension_numbers = #tpu.dot_dimension_numbers<[1], [0], [0], [1], [0, 0, 1, 1], [], []>} : vector<32x16xbf16>, vector<16x32xbf16>, vector<32x32xf32> -> vector<32x32xf32>
    %c0_3 = arith.constant 0 : index
    %c0_4 = arith.constant 0 : index
    %3 = vector.load %arg3[%c0_3, %c0_4] : memref<1x32xf32, #tpu.memory_space<vmem>>, vector<1x32xf32>
    %4 = vector.broadcast %3 : vector<1x32xf32> to vector<32x32xf32>
    %5 = arith.addf %2, %4 : vector<32x32xf32>
    %c0_5 = arith.constant 0 : index
    %c0_6 = arith.constant 0 : index
    %6 = vector.load %arg4[%c0_5, %c0_6] : memref<32x32xf32, #tpu.memory_space<vmem>>, vector<32x32xf32>
    tpu.vector_store %arg4[%c0_5, %c0_6], %5 {strides = array<i32>} : memref<32x32xf32, #tpu.memory_space<vmem>>, vector<32x32xf32>,
    return
  }
  func.func @transform_0(%arg0: i32) -> (i32, i32) {
    %c0_i32 = arith.constant 0 : i32
    %c0_i32_0 = arith.constant 0 : i32
    return %arg0, %c0_i32 : i32, i32
  }
  func.func @transform_1(%arg0: i32) -> (i32, i32) {
    %c0_i32 = arith.constant 0 : i32
    %c0_i32_0 = arith.constant 0 : i32
    %c0_i32_1 = arith.constant 0 : i32
    return %c0_i32, %c0_i32_0 : i32, i32
  }
  func.func @transform_2(%arg0: i32) -> (i32, i32) {
    %c0_i32 = arith.constant 0 : i32
    %c0_i32_0 = arith.constant 0 : i32
    %c0_i32_1 = arith.constant 0 : i32
    return %c0_i32, %c0_i32_0 : i32, i32
  }
  func.func @transform_3(%arg0: i32) -> (i32, i32) {
    %c0_i32 = arith.constant 0 : i32
    %c0_i32_0 = arith.constant 0 : i32
    return %arg0, %c0_i32 : i32, i32
  }
}

module attributes {stable_mosaic.version = 11 : i64} {
  func.func @_matmul_bias_res_kernel(%arg0: i32, %arg1: memref<32x288xbf16, #tpu.memory_space<vmem>>, %arg2: memref<288x32xbf16, #tpu.memory_space<vmem>>, %arg3: memref<1x32xf32, #tpu.memory_space<vmem>>, %arg4: memref<32x32xf32, #tpu.memory_space<vmem>>, %arg5: memref<32x32xf32, #tpu.memory_space<vmem>>) attributes {dimension_semantics = [#tpu.dimension_semantics<parallel>], iteration_bounds = array<i64: 1>, scalar_prefetch = 0 : i64, scratch_operands = 0 : i64, tpu.core_type = #tpu.core_type<tc>, window_params = [{transform_indices = @transform_0, window_bounds = array<i64: 32, 288>}, {pipeline_mode = #tpu.pipeline_mode<synchronous>, transform_indices = @transform_1, window_bounds = array<i64: 288, 32>}, {pipeline_mode = #tpu.pipeline_mode<synchronous>, transform_indices = @transform_2, window_bounds = array<i64: 1, 32>}, {transform_indices = @transform_3, window_bounds = array<i64: 32, 32>}, {transform_indices = @transform_4, window_bounds = array<i64: 32, 32>}]} {
    %c0 = arith.constant 0 : index
    %c0_0 = arith.constant 0 : index
    %0 = vector.load %arg1[%c0, %c0_0] : memref<32x288xbf16, #tpu.memory_space<vmem>>, vector<32x288xbf16>
    %c0_1 = arith.constant 0 : index
    %c0_2 = arith.constant 0 : index
    %1 = vector.load %arg2[%c0_1, %c0_2] : memref<288x32xbf16, #tpu.memory_space<vmem>>, vector<288x32xbf16>
    %cst = arith.constant dense<0.000000e+00> : vector<32x32xf32>
    %2 = tpu.matmul %0, %1, %cst {dimension_numbers = #tpu.dot_dimension_numbers<[1], [0], [0], [1], [0, 0, 1, 1], [], []>} : vector<32x288xbf16>, vector<288x32xbf16>, vector<32x32xf32> -> vector<32x32xf32>
    %c0_3 = arith.constant 0 : index
    %c0_4 = arith.constant 0 : index
    %3 = vector.load %arg3[%c0_3, %c0_4] : memref<1x32xf32, #tpu.memory_space<vmem>>, vector<1x32xf32>
    %4 = vector.broadcast %3 : vector<1x32xf32> to vector<32x32xf32>
    %5 = arith.addf %2, %4 : vector<32x32xf32>
    %c0_5 = arith.constant 0 : index
    %c0_6 = arith.constant 0 : index
    %6 = vector.load %arg4[%c0_5, %c0_6] : memref<32x32xf32, #tpu.memory_space<vmem>>, vector<32x32xf32>
    %7 = arith.addf %5, %6 : vector<32x32xf32>
    %cst_7 = arith.constant 0.000000e+00 : f32
    %8 = vector.broadcast %cst_7 : f32 to vector<32x32xf32>
    %9 = arith.maximumf %7, %8 : vector<32x32xf32>
    %c0_8 = arith.constant 0 : index
    %c0_9 = arith.constant 0 : index
    %10 = vector.load %arg5[%c0_8, %c0_9] : memref<32x32xf32, #tpu.memory_space<vmem>>, vector<32x32xf32>
    tpu.vector_store %arg5[%c0_8, %c0_9], %9 {strides = array<i32>} : memref<32x32xf32, #tpu.memory_space<vmem>>, vector<32x32xf32>,
    return
  }
  func.func @transform_0(%arg0: i32) -> (i32, i32) {
    %c0_i32 = arith.constant 0 : i32
    %c0_i32_0 = arith.constant 0 : i32
    return %arg0, %c0_i32 : i32, i32
  }
  func.func @transform_1(%arg0: i32) -> (i32, i32) {
    %c0_i32 = arith.constant 0 : i32
    %c0_i32_0 = arith.constant 0 : i32
    %c0_i32_1 = arith.constant 0 : i32
    return %c0_i32, %c0_i32_0 : i32, i32
  }
  func.func @transform_2(%arg0: i32) -> (i32, i32) {
    %c0_i32 = arith.constant 0 : i32
    %c0_i32_0 = arith.constant 0 : i32
    %c0_i32_1 = arith.constant 0 : i32
    return %c0_i32, %c0_i32_0 : i32, i32
  }
  func.func @transform_3(%arg0: i32) -> (i32, i32) {
    %c0_i32 = arith.constant 0 : i32
    %c0_i32_0 = arith.constant 0 : i32
    return %arg0, %c0_i32 : i32, i32
  }
  func.func @transform_4(%arg0: i32) -> (i32, i32) {
    %c0_i32 = arith.constant 0 : i32
    %c0_i32_0 = arith.constant 0 : i32
    return %arg0, %c0_i32 : i32, i32
  }
}

module attributes {stable_mosaic.version = 11 : i64} {
  func.func @_matmul_bias_kernel(%arg0: i32, %arg1: memref<8x288xbf16, #tpu.memory_space<vmem>>, %arg2: memref<288x64xbf16, #tpu.memory_space<vmem>>, %arg3: memref<1x64xf32, #tpu.memory_space<vmem>>, %arg4: memref<8x64xf32, #tpu.memory_space<vmem>>) attributes {dimension_semantics = [#tpu.dimension_semantics<parallel>], iteration_bounds = array<i64: 1>, scalar_prefetch = 0 : i64, scratch_operands = 0 : i64, tpu.core_type = #tpu.core_type<tc>, window_params = [{transform_indices = @transform_0, window_bounds = array<i64: 8, 288>}, {pipeline_mode = #tpu.pipeline_mode<synchronous>, transform_indices = @transform_1, window_bounds = array<i64: 288, 64>}, {pipeline_mode = #tpu.pipeline_mode<synchronous>, transform_indices = @transform_2, window_bounds = array<i64: 1, 64>}, {transform_indices = @transform_3, window_bounds = array<i64: 8, 64>}]} {
    %c0 = arith.constant 0 : index
    %c0_0 = arith.constant 0 : index
    %0 = vector.load %arg1[%c0, %c0_0] : memref<8x288xbf16, #tpu.memory_space<vmem>>, vector<8x288xbf16>
    %c0_1 = arith.constant 0 : index
    %c0_2 = arith.constant 0 : index
    %1 = vector.load %arg2[%c0_1, %c0_2] : memref<288x64xbf16, #tpu.memory_space<vmem>>, vector<288x64xbf16>
    %cst = arith.constant dense<0.000000e+00> : vector<8x64xf32>
    %2 = tpu.matmul %0, %1, %cst {dimension_numbers = #tpu.dot_dimension_numbers<[1], [0], [0], [1], [0, 0, 1, 1], [], []>} : vector<8x288xbf16>, vector<288x64xbf16>, vector<8x64xf32> -> vector<8x64xf32>
    %c0_3 = arith.constant 0 : index
    %c0_4 = arith.constant 0 : index
    %3 = vector.load %arg3[%c0_3, %c0_4] : memref<1x64xf32, #tpu.memory_space<vmem>>, vector<1x64xf32>
    %4 = vector.broadcast %3 : vector<1x64xf32> to vector<8x64xf32>
    %5 = arith.addf %2, %4 : vector<8x64xf32>
    %cst_5 = arith.constant 0.000000e+00 : f32
    %6 = vector.broadcast %cst_5 : f32 to vector<8x64xf32>
    %7 = arith.maximumf %5, %6 : vector<8x64xf32>
    %c0_6 = arith.constant 0 : index
    %c0_7 = arith.constant 0 : index
    %8 = vector.load %arg4[%c0_6, %c0_7] : memref<8x64xf32, #tpu.memory_space<vmem>>, vector<8x64xf32>
    tpu.vector_store %arg4[%c0_6, %c0_7], %7 {strides = array<i32>} : memref<8x64xf32, #tpu.memory_space<vmem>>, vector<8x64xf32>,
    return
  }
  func.func @transform_0(%arg0: i32) -> (i32, i32) {
    %c0_i32 = arith.constant 0 : i32
    %c0_i32_0 = arith.constant 0 : i32
    return %arg0, %c0_i32 : i32, i32
  }
  func.func @transform_1(%arg0: i32) -> (i32, i32) {
    %c0_i32 = arith.constant 0 : i32
    %c0_i32_0 = arith.constant 0 : i32
    %c0_i32_1 = arith.constant 0 : i32
    return %c0_i32, %c0_i32_0 : i32, i32
  }
  func.func @transform_2(%arg0: i32) -> (i32, i32) {
    %c0_i32 = arith.constant 0 : i32
    %c0_i32_0 = arith.constant 0 : i32
    %c0_i32_1 = arith.constant 0 : i32
    return %c0_i32, %c0_i32_0 : i32, i32
  }
  func.func @transform_3(%arg0: i32) -> (i32, i32) {
    %c0_i32 = arith.constant 0 : i32
    %c0_i32_0 = arith.constant 0 : i32
    return %arg0, %c0_i32 : i32, i32
  }
}

module attributes {stable_mosaic.version = 11 : i64} {
  func.func @_matmul_bias_kernel(%arg0: i32, %arg1: memref<8x32xbf16, #tpu.memory_space<vmem>>, %arg2: memref<32x64xbf16, #tpu.memory_space<vmem>>, %arg3: memref<1x64xf32, #tpu.memory_space<vmem>>, %arg4: memref<8x64xf32, #tpu.memory_space<vmem>>) attributes {dimension_semantics = [#tpu.dimension_semantics<parallel>], iteration_bounds = array<i64: 1>, scalar_prefetch = 0 : i64, scratch_operands = 0 : i64, tpu.core_type = #tpu.core_type<tc>, window_params = [{transform_indices = @transform_0, window_bounds = array<i64: 8, 32>}, {pipeline_mode = #tpu.pipeline_mode<synchronous>, transform_indices = @transform_1, window_bounds = array<i64: 32, 64>}, {pipeline_mode = #tpu.pipeline_mode<synchronous>, transform_indices = @transform_2, window_bounds = array<i64: 1, 64>}, {transform_indices = @transform_3, window_bounds = array<i64: 8, 64>}]} {
    %c0 = arith.constant 0 : index
    %c0_0 = arith.constant 0 : index
    %0 = vector.load %arg1[%c0, %c0_0] : memref<8x32xbf16, #tpu.memory_space<vmem>>, vector<8x32xbf16>
    %c0_1 = arith.constant 0 : index
    %c0_2 = arith.constant 0 : index
    %1 = vector.load %arg2[%c0_1, %c0_2] : memref<32x64xbf16, #tpu.memory_space<vmem>>, vector<32x64xbf16>
    %cst = arith.constant dense<0.000000e+00> : vector<8x64xf32>
    %2 = tpu.matmul %0, %1, %cst {dimension_numbers = #tpu.dot_dimension_numbers<[1], [0], [0], [1], [0, 0, 1, 1], [], []>} : vector<8x32xbf16>, vector<32x64xbf16>, vector<8x64xf32> -> vector<8x64xf32>
    %c0_3 = arith.constant 0 : index
    %c0_4 = arith.constant 0 : index
    %3 = vector.load %arg3[%c0_3, %c0_4] : memref<1x64xf32, #tpu.memory_space<vmem>>, vector<1x64xf32>
    %4 = vector.broadcast %3 : vector<1x64xf32> to vector<8x64xf32>
    %5 = arith.addf %2, %4 : vector<8x64xf32>
    %c0_5 = arith.constant 0 : index
    %c0_6 = arith.constant 0 : index
    %6 = vector.load %arg4[%c0_5, %c0_6] : memref<8x64xf32, #tpu.memory_space<vmem>>, vector<8x64xf32>
    tpu.vector_store %arg4[%c0_5, %c0_6], %5 {strides = array<i32>} : memref<8x64xf32, #tpu.memory_space<vmem>>, vector<8x64xf32>,
    return
  }
  func.func @transform_0(%arg0: i32) -> (i32, i32) {
    %c0_i32 = arith.constant 0 : i32
    %c0_i32_0 = arith.constant 0 : i32
    return %arg0, %c0_i32 : i32, i32
  }
  func.func @transform_1(%arg0: i32) -> (i32, i32) {
    %c0_i32 = arith.constant 0 : i32
    %c0_i32_0 = arith.constant 0 : i32
    %c0_i32_1 = arith.constant 0 : i32
    return %c0_i32, %c0_i32_0 : i32, i32
  }
  func.func @transform_2(%arg0: i32) -> (i32, i32) {
    %c0_i32 = arith.constant 0 : i32
    %c0_i32_0 = arith.constant 0 : i32
    %c0_i32_1 = arith.constant 0 : i32
    return %c0_i32, %c0_i32_0 : i32, i32
  }
  func.func @transform_3(%arg0: i32) -> (i32, i32) {
    %c0_i32 = arith.constant 0 : i32
    %c0_i32_0 = arith.constant 0 : i32
    return %arg0, %c0_i32 : i32, i32
  }
}

module attributes {stable_mosaic.version = 11 : i64} {
  func.func @_matmul_bias_res_kernel(%arg0: i32, %arg1: memref<8x576xbf16, #tpu.memory_space<vmem>>, %arg2: memref<576x64xbf16, #tpu.memory_space<vmem>>, %arg3: memref<1x64xf32, #tpu.memory_space<vmem>>, %arg4: memref<8x64xf32, #tpu.memory_space<vmem>>, %arg5: memref<8x64xf32, #tpu.memory_space<vmem>>) attributes {dimension_semantics = [#tpu.dimension_semantics<parallel>], iteration_bounds = array<i64: 1>, scalar_prefetch = 0 : i64, scratch_operands = 0 : i64, tpu.core_type = #tpu.core_type<tc>, window_params = [{transform_indices = @transform_0, window_bounds = array<i64: 8, 576>}, {pipeline_mode = #tpu.pipeline_mode<synchronous>, transform_indices = @transform_1, window_bounds = array<i64: 576, 64>}, {pipeline_mode = #tpu.pipeline_mode<synchronous>, transform_indices = @transform_2, window_bounds = array<i64: 1, 64>}, {transform_indices = @transform_3, window_bounds = array<i64: 8, 64>}, {transform_indices = @transform_4, window_bounds = array<i64: 8, 64>}]} {
    %c0 = arith.constant 0 : index
    %c0_0 = arith.constant 0 : index
    %0 = vector.load %arg1[%c0, %c0_0] : memref<8x576xbf16, #tpu.memory_space<vmem>>, vector<8x576xbf16>
    %c0_1 = arith.constant 0 : index
    %c0_2 = arith.constant 0 : index
    %1 = vector.load %arg2[%c0_1, %c0_2] : memref<576x64xbf16, #tpu.memory_space<vmem>>, vector<576x64xbf16>
    %cst = arith.constant dense<0.000000e+00> : vector<8x64xf32>
    %2 = tpu.matmul %0, %1, %cst {dimension_numbers = #tpu.dot_dimension_numbers<[1], [0], [0], [1], [0, 0, 1, 1], [], []>} : vector<8x576xbf16>, vector<576x64xbf16>, vector<8x64xf32> -> vector<8x64xf32>
    %c0_3 = arith.constant 0 : index
    %c0_4 = arith.constant 0 : index
    %3 = vector.load %arg3[%c0_3, %c0_4] : memref<1x64xf32, #tpu.memory_space<vmem>>, vector<1x64xf32>
    %4 = vector.broadcast %3 : vector<1x64xf32> to vector<8x64xf32>
    %5 = arith.addf %2, %4 : vector<8x64xf32>
    %c0_5 = arith.constant 0 : index
    %c0_6 = arith.constant 0 : index
    %6 = vector.load %arg4[%c0_5, %c0_6] : memref<8x64xf32, #tpu.memory_space<vmem>>, vector<8x64xf32>
    %7 = arith.addf %5, %6 : vector<8x64xf32>
    %cst_7 = arith.constant 0.000000e+00 : f32
    %8 = vector.broadcast %cst_7 : f32 to vector<8x64xf32>
    %9 = arith.maximumf %7, %8 : vector<8x64xf32>
    %c0_8 = arith.constant 0 : index
    %c0_9 = arith.constant 0 : index
    %10 = vector.load %arg5[%c0_8, %c0_9] : memref<8x64xf32, #tpu.memory_space<vmem>>, vector<8x64xf32>
    tpu.vector_store %arg5[%c0_8, %c0_9], %9 {strides = array<i32>} : memref<8x64xf32, #tpu.memory_space<vmem>>, vector<8x64xf32>,
    return
  }
  func.func @transform_0(%arg0: i32) -> (i32, i32) {
    %c0_i32 = arith.constant 0 : i32
    %c0_i32_0 = arith.constant 0 : i32
    return %arg0, %c0_i32 : i32, i32
  }
  func.func @transform_1(%arg0: i32) -> (i32, i32) {
    %c0_i32 = arith.constant 0 : i32
    %c0_i32_0 = arith.constant 0 : i32
    %c0_i32_1 = arith.constant 0 : i32
    return %c0_i32, %c0_i32_0 : i32, i32
  }
  func.func @transform_2(%arg0: i32) -> (i32, i32) {
    %c0_i32 = arith.constant 0 : i32
    %c0_i32_0 = arith.constant 0 : i32
    %c0_i32_1 = arith.constant 0 : i32
    return %c0_i32, %c0_i32_0 : i32, i32
  }
  func.func @transform_3(%arg0: i32) -> (i32, i32) {
    %c0_i32 = arith.constant 0 : i32
    %c0_i32_0 = arith.constant 0 : i32
    return %arg0, %c0_i32 : i32, i32
  }
  func.func @transform_4(%arg0: i32) -> (i32, i32) {
    %c0_i32 = arith.constant 0 : i32
    %c0_i32_0 = arith.constant 0 : i32
    return %arg0, %c0_i32 : i32, i32
  }
}

module attributes {stable_mosaic.version = 11 : i64} {
  func.func @_matmul_bias_kernel(%arg0: i32, %arg1: memref<8x64xbf16, #tpu.memory_space<vmem>>, %arg2: memref<64x64xbf16, #tpu.memory_space<vmem>>, %arg3: memref<1x64xf32, #tpu.memory_space<vmem>>, %arg4: memref<8x64xbf16, #tpu.memory_space<vmem>>) attributes {dimension_semantics = [#tpu.dimension_semantics<parallel>], iteration_bounds = array<i64: 1>, scalar_prefetch = 0 : i64, scratch_operands = 0 : i64, tpu.core_type = #tpu.core_type<tc>, window_params = [{transform_indices = @transform_0, window_bounds = array<i64: 8, 64>}, {pipeline_mode = #tpu.pipeline_mode<synchronous>, transform_indices = @transform_1, window_bounds = array<i64: 64, 64>}, {pipeline_mode = #tpu.pipeline_mode<synchronous>, transform_indices = @transform_2, window_bounds = array<i64: 1, 64>}, {transform_indices = @transform_3, window_bounds = array<i64: 8, 64>}]} {
    %c0 = arith.constant 0 : index
    %c0_0 = arith.constant 0 : index
    %0 = vector.load %arg1[%c0, %c0_0] : memref<8x64xbf16, #tpu.memory_space<vmem>>, vector<8x64xbf16>
    %c0_1 = arith.constant 0 : index
    %c0_2 = arith.constant 0 : index
    %1 = vector.load %arg2[%c0_1, %c0_2] : memref<64x64xbf16, #tpu.memory_space<vmem>>, vector<64x64xbf16>
    %cst = arith.constant dense<0.000000e+00> : vector<8x64xf32>
    %2 = tpu.matmul %0, %1, %cst {dimension_numbers = #tpu.dot_dimension_numbers<[1], [0], [0], [1], [0, 0, 1, 1], [], []>} : vector<8x64xbf16>, vector<64x64xbf16>, vector<8x64xf32> -> vector<8x64xf32>
    %c0_3 = arith.constant 0 : index
    %c0_4 = arith.constant 0 : index
    %3 = vector.load %arg3[%c0_3, %c0_4] : memref<1x64xf32, #tpu.memory_space<vmem>>, vector<1x64xf32>
    %4 = vector.broadcast %3 : vector<1x64xf32> to vector<8x64xf32>
    %5 = arith.addf %2, %4 : vector<8x64xf32>
    %6 = arith.truncf %5 : vector<8x64xf32> to vector<8x64xbf16>
    %c0_5 = arith.constant 0 : index
    %c0_6 = arith.constant 0 : index
    %7 = vector.load %arg4[%c0_5, %c0_6] : memref<8x64xbf16, #tpu.memory_space<vmem>>, vector<8x64xbf16>
    tpu.vector_store %arg4[%c0_5, %c0_6], %6 {strides = array<i32>} : memref<8x64xbf16, #tpu.memory_space<vmem>>, vector<8x64xbf16>,
    return
  }
  func.func @transform_0(%arg0: i32) -> (i32, i32) {
    %c0_i32 = arith.constant 0 : i32
    %c0_i32_0 = arith.constant 0 : i32
    return %arg0, %c0_i32 : i32, i32
  }
  func.func @transform_1(%arg0: i32) -> (i32, i32) {
    %c0_i32 = arith.constant 0 : i32
    %c0_i32_0 = arith.constant 0 : i32
    %c0_i32_1 = arith.constant 0 : i32
    return %c0_i32, %c0_i32_0 : i32, i32
  }
  func.func @transform_2(%arg0: i32) -> (i32, i32) {
    %c0_i32 = arith.constant 0 : i32
    %c0_i32_0 = arith.constant 0 : i32
    %c0_i32_1 = arith.constant 0 : i32
    return %c0_i32, %c0_i32_0 : i32, i32
  }
  func.func @transform_3(%arg0: i32) -> (i32, i32) {
    %c0_i32 = arith.constant 0 : i32
    %c0_i32_0 = arith.constant 0 : i32
    return %arg0, %c0_i32 : i32, i32
  }
}

module attributes {stable_mosaic.version = 11 : i64} {
  func.func @_matmul_bias_kernel(%arg0: i32, %arg1: memref<8x64xbf16, #tpu.memory_space<vmem>>, %arg2: memref<64x128xbf16, #tpu.memory_space<vmem>>, %arg3: memref<1x128xf32, #tpu.memory_space<vmem>>, %arg4: memref<8x128xbf16, #tpu.memory_space<vmem>>) attributes {dimension_semantics = [#tpu.dimension_semantics<parallel>], iteration_bounds = array<i64: 1>, scalar_prefetch = 0 : i64, scratch_operands = 0 : i64, tpu.core_type = #tpu.core_type<tc>, window_params = [{transform_indices = @transform_0, window_bounds = array<i64: 8, 64>}, {pipeline_mode = #tpu.pipeline_mode<synchronous>, transform_indices = @transform_1, window_bounds = array<i64: 64, 128>}, {pipeline_mode = #tpu.pipeline_mode<synchronous>, transform_indices = @transform_2, window_bounds = array<i64: 1, 128>}, {transform_indices = @transform_3, window_bounds = array<i64: 8, 128>}]} {
    %c0 = arith.constant 0 : index
    %c0_0 = arith.constant 0 : index
    %0 = vector.load %arg1[%c0, %c0_0] : memref<8x64xbf16, #tpu.memory_space<vmem>>, vector<8x64xbf16>
    %c0_1 = arith.constant 0 : index
    %c0_2 = arith.constant 0 : index
    %1 = vector.load %arg2[%c0_1, %c0_2] : memref<64x128xbf16, #tpu.memory_space<vmem>>, vector<64x128xbf16>
    %cst = arith.constant dense<0.000000e+00> : vector<8x128xf32>
    %2 = tpu.matmul %0, %1, %cst {dimension_numbers = #tpu.dot_dimension_numbers<[1], [0], [0], [1], [0, 0, 1, 1], [], []>} : vector<8x64xbf16>, vector<64x128xbf16>, vector<8x128xf32> -> vector<8x128xf32>
    %c0_3 = arith.constant 0 : index
    %c0_4 = arith.constant 0 : index
    %3 = vector.load %arg3[%c0_3, %c0_4] : memref<1x128xf32, #tpu.memory_space<vmem>>, vector<1x128xf32>
    %4 = vector.broadcast %3 : vector<1x128xf32> to vector<8x128xf32>
    %5 = arith.addf %2, %4 : vector<8x128xf32>
    %6 = arith.truncf %5 : vector<8x128xf32> to vector<8x128xbf16>
    %c0_5 = arith.constant 0 : index
    %c0_6 = arith.constant 0 : index
    %7 = vector.load %arg4[%c0_5, %c0_6] : memref<8x128xbf16, #tpu.memory_space<vmem>>, vector<8x128xbf16>
    tpu.vector_store %arg4[%c0_5, %c0_6], %6 {strides = array<i32>} : memref<8x128xbf16, #tpu.memory_space<vmem>>, vector<8x128xbf16>,
    return
  }
  func.func @transform_0(%arg0: i32) -> (i32, i32) {
    %c0_i32 = arith.constant 0 : i32
    %c0_i32_0 = arith.constant 0 : i32
    return %arg0, %c0_i32 : i32, i32
  }
  func.func @transform_1(%arg0: i32) -> (i32, i32) {
    %c0_i32 = arith.constant 0 : i32
    %c0_i32_0 = arith.constant 0 : i32
    %c0_i32_1 = arith.constant 0 : i32
    return %c0_i32, %c0_i32_0 : i32, i32
  }
  func.func @transform_2(%arg0: i32) -> (i32, i32) {
    %c0_i32 = arith.constant 0 : i32
    %c0_i32_0 = arith.constant 0 : i32
    %c0_i32_1 = arith.constant 0 : i32
    return %c0_i32, %c0_i32_0 : i32, i32
  }
  func.func @transform_3(%arg0: i32) -> (i32, i32) {
    %c0_i32 = arith.constant 0 : i32
    %c0_i32_0 = arith.constant 0 : i32
    return %arg0, %c0_i32 : i32, i32
  }
}

module attributes {stable_mosaic.version = 11 : i64} {
  func.func @_attention_kernel(%arg0: i32, %arg1: memref<2x4x64xbf16, #tpu.memory_space<vmem>>, %arg2: memref<2x4x64xbf16, #tpu.memory_space<vmem>>, %arg3: memref<2x4x64xbf16, #tpu.memory_space<vmem>>, %arg4: memref<2x4x64xf32, #tpu.memory_space<vmem>>, %arg5: memref<2x4x64xf32, #tpu.memory_space<vmem>>) attributes {dimension_semantics = [#tpu.dimension_semantics<arbitrary>], iteration_bounds = array<i64: 1>, scalar_prefetch = 0 : i64, scratch_operands = 0 : i64, tpu.core_type = #tpu.core_type<tc>, window_params = [{pipeline_mode = #tpu.pipeline_mode<synchronous>, transform_indices = @transform_0, window_bounds = array<i64: 2, 4, 64>}, {pipeline_mode = #tpu.pipeline_mode<synchronous>, transform_indices = @transform_1, window_bounds = array<i64: 2, 4, 64>}, {pipeline_mode = #tpu.pipeline_mode<synchronous>, transform_indices = @transform_2, window_bounds = array<i64: 2, 4, 64>}, {pipeline_mode = #tpu.pipeline_mode<synchronous>, transform_indices = @transform_3, window_bounds = array<i64: 2, 4, 64>}, {pipeline_mode = #tpu.pipeline_mode<synchronous>, transform_indices = @transform_4, window_bounds = array<i64: 2, 4, 64>}]} {
    %c0 = arith.constant 0 : index
    %c0_0 = arith.constant 0 : index
    %c0_1 = arith.constant 0 : index
    %0 = vector.load %arg1[%c0, %c0_0, %c0_1] : memref<2x4x64xbf16, #tpu.memory_space<vmem>>, vector<2x4x64xbf16>
    %c0_2 = arith.constant 0 : index
    %c0_3 = arith.constant 0 : index
    %c0_4 = arith.constant 0 : index
    %1 = vector.load %arg2[%c0_2, %c0_3, %c0_4] : memref<2x4x64xbf16, #tpu.memory_space<vmem>>, vector<2x4x64xbf16>
    "tpu.trace_start"() <{level = 10 : i32, message = "bqc,bkc->bqk"}> : () -> ()
    %cst = arith.constant dense<0.000000e+00> : vector<2x4x4xf32>
    %2 = tpu.matmul %0, %1, %cst {dimension_numbers = #tpu.dot_dimension_numbers<[2], [2], [1], [1], [0, 0, 0, 1, 1, 1], [0], [0]>} : vector<2x4x64xbf16>, vector<2x4x64xbf16>, vector<2x4x4xf32> -> vector<2x4x4xf32>
    "tpu.trace_stop"() : () -> ()
    %cst_5 = arith.constant dense<0xFF800000> : vector<2x4xf32>
    %3 = vector.multi_reduction <maximumf>, %2, %cst_5 [2] : vector<2x4x4xf32> to vector<2x4xf32>
    %4 = vector.shape_cast %3 : vector<2x4xf32> to vector<2x4x1xf32>
    %5 = vector.broadcast %4 : vector<2x4x1xf32> to vector<2x4x4xf32>
    %6 = arith.subf %2, %5 : vector<2x4x4xf32>
    %7 = math.exp %6 : vector<2x4x4xf32>
    %cst_6 = arith.constant dense<0.000000e+00> : vector<2x4xf32>
    %8 = vector.multi_reduction <add>, %7, %cst_6 [2] : vector<2x4x4xf32> to vector<2x4xf32>
    %9 = vector.shape_cast %8 : vector<2x4xf32> to vector<2x4x1xf32>
    %10 = tpu.reciprocal %9 {approx = true} : vector<2x4x1xf32> -> vector<2x4x1xf32>
    %11 = vector.broadcast %10 : vector<2x4x1xf32> to vector<2x4x4xf32>
    %12 = arith.mulf %7, %11 : vector<2x4x4xf32>
    %13 = arith.truncf %12 : vector<2x4x4xf32> to vector<2x4x4xbf16>
    %c0_7 = arith.constant 0 : index
    %c0_8 = arith.constant 0 : index
    %c0_9 = arith.constant 0 : index
    %14 = vector.load %arg3[%c0_7, %c0_8, %c0_9] : memref<2x4x64xbf16, #tpu.memory_space<vmem>>, vector<2x4x64xbf16>
    "tpu.trace_start"() <{level = 10 : i32, message = "bqk,bkc->bqc"}> : () -> ()
    %cst_10 = arith.constant dense<0.000000e+00> : vector<2x4x64xf32>
    %15 = tpu.matmul %13, %14, %cst_10 {dimension_numbers = #tpu.dot_dimension_numbers<[2], [1], [1], [2], [0, 0, 0, 1, 1, 2], [0], [0]>} : vector<2x4x4xbf16>, vector<2x4x64xbf16>, vector<2x4x64xf32> -> vector<2x4x64xf32>
    "tpu.trace_stop"() : () -> ()
    %c0_11 = arith.constant 0 : index
    %c0_12 = arith.constant 0 : index
    %c0_13 = arith.constant 0 : index
    %16 = vector.load %arg4[%c0_11, %c0_12, %c0_13] : memref<2x4x64xf32, #tpu.memory_space<vmem>>, vector<2x4x64xf32>
    %17 = arith.addf %15, %16 : vector<2x4x64xf32>
    %c0_14 = arith.constant 0 : index
    %c0_15 = arith.constant 0 : index
    %c0_16 = arith.constant 0 : index
    %18 = vector.load %arg5[%c0_14, %c0_15, %c0_16] : memref<2x4x64xf32, #tpu.memory_space<vmem>>, vector<2x4x64xf32>
    tpu.vector_store %arg5[%c0_14, %c0_15, %c0_16], %17 {strides = array<i32>} : memref<2x4x64xf32, #tpu.memory_space<vmem>>, vector<2x4x64xf32>,
    return
  }
  func.func @transform_0(%arg0: i32) -> (i32, i32, i32) {
    %c0_i32 = arith.constant 0 : i32
    %c0_i32_0 = arith.constant 0 : i32
    %c0_i32_1 = arith.constant 0 : i32
    %c0_i32_2 = arith.constant 0 : i32
    return %c0_i32, %c0_i32_0, %c0_i32_1 : i32, i32, i32
  }
  func.func @transform_1(%arg0: i32) -> (i32, i32, i32) {
    %c0_i32 = arith.constant 0 : i32
    %c0_i32_0 = arith.constant 0 : i32
    %c0_i32_1 = arith.constant 0 : i32
    %c0_i32_2 = arith.constant 0 : i32
    return %c0_i32, %c0_i32_0, %c0_i32_1 : i32, i32, i32
  }
  func.func @transform_2(%arg0: i32) -> (i32, i32, i32) {
    %c0_i32 = arith.constant 0 : i32
    %c0_i32_0 = arith.constant 0 : i32
    %c0_i32_1 = arith.constant 0 : i32
    %c0_i32_2 = arith.constant 0 : i32
    return %c0_i32, %c0_i32_0, %c0_i32_1 : i32, i32, i32
  }
  func.func @transform_3(%arg0: i32) -> (i32, i32, i32) {
    %c0_i32 = arith.constant 0 : i32
    %c0_i32_0 = arith.constant 0 : i32
    %c0_i32_1 = arith.constant 0 : i32
    %c0_i32_2 = arith.constant 0 : i32
    return %c0_i32, %c0_i32_0, %c0_i32_1 : i32, i32, i32
  }
  func.func @transform_4(%arg0: i32) -> (i32, i32, i32) {
    %c0_i32 = arith.constant 0 : i32
    %c0_i32_0 = arith.constant 0 : i32
    %c0_i32_1 = arith.constant 0 : i32
    %c0_i32_2 = arith.constant 0 : i32
    return %c0_i32, %c0_i32_0, %c0_i32_1 : i32, i32, i32
  }
}

module attributes {stable_mosaic.version = 11 : i64} {
  func.func @_avgpool_fc_kernel(%arg0: i32, %arg1: memref<2x4x64xf32, #tpu.memory_space<vmem>>, %arg2: memref<64x100xbf16, #tpu.memory_space<vmem>>, %arg3: memref<1x100xf32, #tpu.memory_space<vmem>>, %arg4: memref<2x100xf32, #tpu.memory_space<vmem>>) attributes {dimension_semantics = [#tpu.dimension_semantics<arbitrary>], iteration_bounds = array<i64: 1>, scalar_prefetch = 0 : i64, scratch_operands = 0 : i64, tpu.core_type = #tpu.core_type<tc>, window_params = [{pipeline_mode = #tpu.pipeline_mode<synchronous>, transform_indices = @transform_0, window_bounds = array<i64: 2, 4, 64>}, {pipeline_mode = #tpu.pipeline_mode<synchronous>, transform_indices = @transform_1, window_bounds = array<i64: 64, 100>}, {pipeline_mode = #tpu.pipeline_mode<synchronous>, transform_indices = @transform_2, window_bounds = array<i64: 1, 100>}, {pipeline_mode = #tpu.pipeline_mode<synchronous>, transform_indices = @transform_3, window_bounds = array<i64: 2, 100>}]} {
    %c0 = arith.constant 0 : index
    %c0_0 = arith.constant 0 : index
    %c0_1 = arith.constant 0 : index
    %0 = vector.load %arg1[%c0, %c0_0, %c0_1] : memref<2x4x64xf32, #tpu.memory_space<vmem>>, vector<2x4x64xf32>
    %cst = arith.constant dense<0.000000e+00> : vector<2x64xf32>
    %1 = vector.multi_reduction <add>, %0, %cst [1] : vector<2x4x64xf32> to vector<2x64xf32>
    %cst_2 = arith.constant 4.000000e+00 : f32
    %2 = vector.broadcast %cst_2 : f32 to vector<2x64xf32>
    %3 = arith.divf %1, %2 : vector<2x64xf32>
    %4 = arith.truncf %3 : vector<2x64xf32> to vector<2x64xbf16>
    %c0_3 = arith.constant 0 : index
    %c0_4 = arith.constant 0 : index
    %5 = vector.load %arg2[%c0_3, %c0_4] : memref<64x100xbf16, #tpu.memory_space<vmem>>, vector<64x100xbf16>
    %cst_5 = arith.constant dense<0.000000e+00> : vector<2x100xf32>
    %6 = tpu.matmul %4, %5, %cst_5 {dimension_numbers = #tpu.dot_dimension_numbers<[1], [0], [0], [1], [0, 0, 1, 1], [], []>} : vector<2x64xbf16>, vector<64x100xbf16>, vector<2x100xf32> -> vector<2x100xf32>
    %c0_6 = arith.constant 0 : index
    %c0_7 = arith.constant 0 : index
    %7 = vector.load %arg3[%c0_6, %c0_7] : memref<1x100xf32, #tpu.memory_space<vmem>>, vector<1x100xf32>
    %8 = vector.broadcast %7 : vector<1x100xf32> to vector<2x100xf32>
    %9 = arith.addf %6, %8 : vector<2x100xf32>
    %c0_8 = arith.constant 0 : index
    %c0_9 = arith.constant 0 : index
    %10 = vector.load %arg4[%c0_8, %c0_9] : memref<2x100xf32, #tpu.memory_space<vmem>>, vector<2x100xf32>
    tpu.vector_store %arg4[%c0_8, %c0_9], %9 {strides = array<i32>} : memref<2x100xf32, #tpu.memory_space<vmem>>, vector<2x100xf32>,
    return
  }
  func.func @transform_0(%arg0: i32) -> (i32, i32, i32) {
    %c0_i32 = arith.constant 0 : i32
    %c0_i32_0 = arith.constant 0 : i32
    %c0_i32_1 = arith.constant 0 : i32
    %c0_i32_2 = arith.constant 0 : i32
    return %c0_i32, %c0_i32_0, %c0_i32_1 : i32, i32, i32
  }
  func.func @transform_1(%arg0: i32) -> (i32, i32) {
    %c0_i32 = arith.constant 0 : i32
    %c0_i32_0 = arith.constant 0 : i32
    %c0_i32_1 = arith.constant 0 : i32
    return %c0_i32, %c0_i32_0 : i32, i32
  }
  func.func @transform_2(%arg0: i32) -> (i32, i32) {
    %c0_i32 = arith.constant 0 : i32
    %c0_i32_0 = arith.constant 0 : i32
    %c0_i32_1 = arith.constant 0 : i32
    return %c0_i32, %c0_i32_0 : i32, i32
  }
  func.func @transform_3(%arg0: i32) -> (i32, i32) {
    %c0_i32 = arith.constant 0 : i32
    %c0_i32_0 = arith.constant 0 : i32
    %c0_i32_1 = arith.constant 0 : i32
    return %c0_i32, %c0_i32_0 : i32, i32
  }
}

</mosaic_0001>

<bundles_post_ra>
// kernel: resnet32_forward.13
= control target key start
LH: loop header
LB: loop body
LE: loop exit
PB: predicated region body
PF: predicated region fallthrough
CT: control target
= control target key end

     0   :  { %vm355_vm0 = vcmask 1044480   ;;  %vm356_vm1 = vcmask 1045504   ;;  %v874_v2 = vmov 65535   ;;  %vm258_vm2 = vcmask 220160   ;;  %s1357_s1 = inlined_call_operand.vmem [shape: bf16[27,16], index: 1, kind: input, shape index: {}]   ;;  %s1358_s2 = inlined_call_operand.vmem [shape: f32[1,16], index: 2, kind: input, shape index: {}]   ;;  %s1359_s0 = inlined_call_operand.vmem [shape: bf16[512,27], index: 0, kind: input, shape index: {}]   ;;  %s1360_s3 = inlined_call_operand.vmem [shape: f32[512,16], index: 3, kind: output, shape index: {}]  }
   0x1   :  { %v798_v0 = vld [vmem:[%s1357_s1 + $0x8] sm:$0xf]  ;;  %v865_v1 = vld [vmem:[%s1357_s1 + $0x8] sm:$0x30]  ;;  %v357_v3 = vsel %vm355_vm0, 4294967295, %v874_v2  ;;  %v864_v7 = vld [vmem:[%s1357_s1] sm:$0xff] }
   0x2   :  { %v799_v4 = vor.u32 %v865_v1, %v798_v0  ;;  %v358_v5 = vsel %vm356_vm1, %v357_v3, 0  ;;  %v832_v8 = vld [vmem:[%s1359_s0] sm:$0xff]  ;;  %v833_v12 = vld [vmem:[%s1359_s0 + $0x8] sm:$0xff]  ;;  %v834_v16 = vld [vmem:[%s1359_s0 + $0x10] sm:$0xff]  ;;  %vm595_vm3 = vcmask 130048  }
   0x3   :  { %v840_v9 = vld [vmem:[%s1359_s0 + $0x40] sm:$0xff]  ;;  %v841_v13 = vld [vmem:[%s1359_s0 + $0x48] sm:$0xff]  ;;  %v842_v17 = vld [vmem:[%s1359_s0 + $0x50] sm:$0xff] }
   0x4   :  { %v360_v6 = vand.u32 %v799_v4, %v358_v5  ;;  %v848_v10 = vld [vmem:[%s1359_s0 + $0x80] sm:$0xff]  ;;  %v849_v14 = vld [vmem:[%s1359_s0 + $0x88] sm:$0xff]  ;;  %v850_v18 = vld [vmem:[%s1359_s0 + $0x90] sm:$0xff] }
   0x5   :  { %v856_v11 = vld [vmem:[%s1359_s0 + $0xc0] sm:$0xff]  ;;  %v857_v15 = vld [vmem:[%s1359_s0 + $0xc8] sm:$0xff]  ;;  %v858_v19 = vld [vmem:[%s1359_s0 + $0xd0] sm:$0xff] }
   0x6   :  { %368 = vmatpush.bf16.msra.mxu0 %v360_v6  ;;  %866 = vmatpush.bf16.msra.mxu1 %v360_v6  ;;  %v835_v20 = vld [vmem:[%s1359_s0 + $0x18] sm:$0xff]  ;;  %v836_v24 = vld [vmem:[%s1359_s0 + $0x20] sm:$0xff]  ;;  %v837_v28 = vld [vmem:[%s1359_s0 + $0x28] sm:$0xff] }
   0x7   :  { %867 = vmatpush.bf16.msra.mxu2 %v360_v6  ;;  %868 = vmatpush.bf16.msra.mxu3 %v360_v6  ;;  %v843_v21 = vld [vmem:[%s1359_s0 + $0x58] sm:$0xff]  ;;  %v844_v25 = vld [vmem:[%s1359_s0 + $0x60] sm:$0xff]  ;;  %v845_v29 = vld [vmem:[%s1359_s0 + $0x68] sm:$0xff] }
   0x8   :  { %v851_v22 = vld [vmem:[%s1359_s0 + $0x98] sm:$0xff]  ;;  %v852_v26 = vld [vmem:[%s1359_s0 + $0xa0] sm:$0xff]  ;;  %v853_v30 = vld [vmem:[%s1359_s0 + $0xa8] sm:$0xff] }
   0x9   :  { %v859_v23 = vld [vmem:[%s1359_s0 + $0xd8] sm:$0xff]  ;;  %v860_v27 = vld [vmem:[%s1359_s0 + $0xe0] sm:$0xff]  ;;  %v861_v31 = vld [vmem:[%s1359_s0 + $0xe8] sm:$0xff] }
   0xa   :  { %369 = vmatpush.bf16.msra.mxu0 %v864_v7  ;;  %869 = vmatpush.bf16.msra.mxu1 %v864_v7  ;;  %v838_v32 = vld [vmem:[%s1359_s0 + $0x30] sm:$0xff]  ;;  %v839_v36 = vld [vmem:[%s1359_s0 + $0x38] sm:$0xff]  ;;  %v1035_v40 = vld [vmem:[%s1358_s2] ss:$0 sm:$0xff] }
   0xb   :  { %870 = vmatpush.bf16.msra.mxu2 %v864_v7  ;;  %871 = vmatpush.bf16.msra.mxu3 %v864_v7  ;;  %v846_v33 = vld [vmem:[%s1359_s0 + $0x70] sm:$0xff]  ;;  %v847_v37 = vld [vmem:[%s1359_s0 + $0x78] sm:$0xff] }
   0xc   :  { %v854_v34 = vld [vmem:[%s1359_s0 + $0xb0] sm:$0xff]  ;;  %v855_v38 = vld [vmem:[%s1359_s0 + $0xb8] sm:$0xff] }
   0xd   :  { %800 = vmatmul.msk.bf16.vlgmr.msra.gmra.mxu0 %vm258_vm2, %v832_v8  ;;  %808 = vmatmul.msk.bf16.vlgmr.msra.gmra.mxu1 %vm258_vm2, %v840_v9  ;;  %v862_v35 = vld [vmem:[%s1359_s0 + $0xf0] sm:$0xff]  ;;  %v863_v39 = vld [vmem:[%s1359_s0 + $0xf8] sm:$0xff] }
   0xe   :  { %816 = vmatmul.msk.bf16.vlgmr.msra.gmra.mxu2 %vm258_vm2, %v848_v10  ;;  %824 = vmatmul.msk.bf16.vlgmr.msra.gmra.mxu3 %vm258_vm2, %v856_v11 }
  0x1d   :  { %801 = vmatmul.msk.bf16.gmra.mxu0 %vm258_vm2, %v833_v12  ;;  %809 = vmatmul.msk.bf16.gmra.mxu1 %vm258_vm2, %v841_v13 }
  0x1e   :  { %817 = vmatmul.msk.bf16.gmra.mxu2 %vm258_vm2, %v849_v14  ;;  %825 = vmatmul.msk.bf16.gmra.mxu3 %vm258_vm2, %v857_v15 }
  0x2d   :  { %802 = vmatmul.msk.bf16.gmra.mxu0 %vm258_vm2, %v834_v16  ;;  %810 = vmatmul.msk.bf16.gmra.mxu1 %vm258_vm2, %v842_v17 }
  0x2e   :  { %818 = vmatmul.msk.bf16.gmra.mxu2 %vm258_vm2, %v850_v18  ;;  %826 = vmatmul.msk.bf16.gmra.mxu3 %vm258_vm2, %v858_v19 }
  0x3d   :  { %803 = vmatmul.msk.bf16.gmra.mxu0 %vm258_vm2, %v835_v20  ;;  %811 = vmatmul.msk.bf16.gmra.mxu1 %vm258_vm2, %v843_v21 }
  0x3e   :  { %819 = vmatmul.msk.bf16.gmra.mxu2 %vm258_vm2, %v851_v22  ;;  %827 = vmatmul.msk.bf16.gmra.mxu3 %vm258_vm2, %v859_v23 }
  0x4d   :  { %804 = vmatmul.msk.bf16.gmra.mxu0 %vm258_vm2, %v836_v24  ;;  %812 = vmatmul.msk.bf16.gmra.mxu1 %vm258_vm2, %v844_v25 }
  0x4e   :  { %820 = vmatmul.msk.bf16.gmra.mxu2 %vm258_vm2, %v852_v26  ;;  %828 = vmatmul.msk.bf16.gmra.mxu3 %vm258_vm2, %v860_v27 }
  0x5d   :  { %805 = vmatmul.msk.bf16.gmra.mxu0 %vm258_vm2, %v837_v28  ;;  %813 = vmatmul.msk.bf16.gmra.mxu1 %vm258_vm2, %v845_v29 }
  0x5e   :  { %821 = vmatmul.msk.bf16.gmra.mxu2 %vm258_vm2, %v853_v30  ;;  %829 = vmatmul.msk.bf16.gmra.mxu3 %vm258_vm2, %v861_v31 }
  0x6d   :  { %806 = vmatmul.msk.bf16.gmra.mxu0 %vm258_vm2, %v838_v32  ;;  %814 = vmatmul.msk.bf16.gmra.mxu1 %vm258_vm2, %v846_v33 }
  0x6e   :  { %822 = vmatmul.msk.bf16.gmra.mxu2 %vm258_vm2, %v854_v34  ;;  %830 = vmatmul.msk.bf16.gmra.mxu3 %vm258_vm2, %v862_v35 }
  0x7d   :  { %807 = vmatmul.msk.bf16.gmra.mxu0 %vm258_vm2, %v839_v36  ;;  %815 = vmatmul.msk.bf16.gmra.mxu1 %vm258_vm2, %v847_v37 }
  0x7e   :  { %823 = vmatmul.msk.bf16.gmra.mxu2 %vm258_vm2, %v855_v38  ;;  %831 = vmatmul.msk.bf16.gmra.mxu3 %vm258_vm2, %v863_v39 }
  0x8a   :  { %v371_v41 = vpop.f32.mrf.mxu0  ;;  %v411_v42 = vpop.f32.mrf.mxu1 }
  0x8b   :  { %v372_v43 = vadd.f32 %v1035_v40, %v371_v41  ;;  %v412_v44 = vadd.f32 %v1035_v40, %v411_v42 }
  0x8d   :  { %v531_v45 = vmax.f32 %v372_v43, 0.0  ;;  %v547_v46 = vmax.f32 %v412_v44, 0.0 }
  0x8f   :  { %596 = vst.msk [vmem:[%s1360_s3] sm:$0xff] %vm595_vm3, %v531_v45 }
  0x90   :  { %612 = vst.msk [vmem:[%s1360_s3 + $0x80] sm:$0xff] %vm595_vm3, %v547_v46 }
  0x91   :  { %v451_v47 = vpop.f32.mrf.mxu2  ;;  %v491_v48 = vpop.f32.mrf.mxu3 }
  0x92   :  { %v452_v49 = vadd.f32 %v1035_v40, %v451_v47  ;;  %v492_v50 = vadd.f32 %v1035_v40, %v491_v48  ;;  %v373_v51 = vpop.f32.mrf.mxu0  ;;  %v413_v52 = vpop.f32.mrf.mxu1 }
  0x93   :  { %v374_v53 = vadd.f32 %v1035_v40, %v373_v51  ;;  %v414_v54 = vadd.f32 %v1035_v40, %v413_v52 }
  0x94   :  { %v563_v55 = vmax.f32 %v452_v49, 0.0  ;;  %v579_v56 = vmax.f32 %v492_v50, 0.0 }
  0x95   :  { %v532_v57 = vmax.f32 %v374_v53, 0.0  ;;  %v548_v58 = vmax.f32 %v414_v54, 0.0 }
  0x96   :  { %628 = vst.msk [vmem:[%s1360_s3 + $0x100] sm:$0xff] %vm595_vm3, %v563_v55 }
  0x97   :  { %644 = vst.msk [vmem:[%s1360_s3 + $0x180] sm:$0xff] %vm595_vm3, %v579_v56 }
  0x98   :  { %597 = vst.msk [vmem:[%s1360_s3 + $0x8] sm:$0xff] %vm595_vm3, %v532_v57 }
  0x99   :  { %613 = vst.msk [vmem:[%s1360_s3 + $0x88] sm:$0xff] %vm595_vm3, %v548_v58  ;;  %v453_v59 = vpop.f32.mrf.mxu2  ;;  %v493_v60 = vpop.f32.mrf.mxu3 }
  0x9a   :  { %v454_v61 = vadd.f32 %v1035_v40, %v453_v59  ;;  %v494_v62 = vadd.f32 %v1035_v40, %v493_v60  ;;  %v376_v63 = vpop.f32.mrf.mxu0  ;;  %v416_v0 = vpop.f32.mrf.mxu1 }
  0x9b   :  { %v377_v1 = vadd.f32 %v1035_v40, %v376_v63  ;;  %v417_v2 = vadd.f32 %v1035_v40, %v416_v0 }
  0x9c   :  { %v564_v3 = vmax.f32 %v454_v61, 0.0  ;;  %v580_v4 = vmax.f32 %v494_v62, 0.0 }
  0x9d   :  { %v533_v5 = vmax.f32 %v377_v1, 0.0  ;;  %v549_v6 = vmax.f32 %v417_v2, 0.0 }
  0x9e   :  { %629 = vst.msk [vmem:[%s1360_s3 + $0x108] sm:$0xff] %vm595_vm3, %v564_v3 }
  0x9f   :  { %645 = vst.msk [vmem:[%s1360_s3 + $0x188] sm:$0xff] %vm595_vm3, %v580_v4 }
  0xa0   :  { %598 = vst.msk [vmem:[%s1360_s3 + $0x10] sm:$0xff] %vm595_vm3, %v533_v5 }
  0xa1   :  { %614 = vst.msk [vmem:[%s1360_s3 + $0x90] sm:$0xff] %vm595_vm3, %v549_v6  ;;  %v456_v7 = vpop.f32.mrf.mxu2  ;;  %v496_v8 = vpop.f32.mrf.mxu3 }
  0xa2   :  { %v457_v9 = vadd.f32 %v1035_v40, %v456_v7  ;;  %v497_v10 = vadd.f32 %v1035_v40, %v496_v8  ;;  %v378_v11 = vpop.f32.mrf.mxu0  ;;  %v418_v12 = vpop.f32.mrf.mxu1 }
  0xa3   :  { %v379_v13 = vadd.f32 %v1035_v40, %v378_v11  ;;  %v419_v14 = vadd.f32 %v1035_v40, %v418_v12 }
  0xa4   :  { %v565_v15 = vmax.f32 %v457_v9, 0.0  ;;  %v581_v16 = vmax.f32 %v497_v10, 0.0 }
  0xa5   :  { %v534_v17 = vmax.f32 %v379_v13, 0.0  ;;  %v550_v18 = vmax.f32 %v419_v14, 0.0 }
  0xa6   :  { %630 = vst.msk [vmem:[%s1360_s3 + $0x110] sm:$0xff] %vm595_vm3, %v565_v15 }
  0xa7   :  { %646 = vst.msk [vmem:[%s1360_s3 + $0x190] sm:$0xff] %vm595_vm3, %v581_v16 }
  0xa8   :  { %599 = vst.msk [vmem:[%s1360_s3 + $0x18] sm:$0xff] %vm595_vm3, %v534_v17 }
  0xa9   :  { %615 = vst.msk [vmem:[%s1360_s3 + $0x98] sm:$0xff] %vm595_vm3, %v550_v18  ;;  %v458_v19 = vpop.f32.mrf.mxu2  ;;  %v498_v20 = vpop.f32.mrf.mxu3 }
  0xaa   :  { %v459_v21 = vadd.f32 %v1035_v40, %v458_v19  ;;  %v499_v22 = vadd.f32 %v1035_v40, %v498_v20  ;;  %v381_v23 = vpop.f32.mrf.mxu0  ;;  %v421_v24 = vpop.f32.mrf.mxu1 }
  0xab   :  { %v382_v25 = vadd.f32 %v1035_v40, %v381_v23  ;;  %v422_v26 = vadd.f32 %v1035_v40, %v421_v24 }
  0xac   :  { %v566_v27 = vmax.f32 %v459_v21, 0.0  ;;  %v582_v28 = vmax.f32 %v499_v22, 0.0 }
  0xad   :  { %v535_v29 = vmax.f32 %v382_v25, 0.0  ;;  %v551_v30 = vmax.f32 %v422_v26, 0.0 }
  0xae   :  { %631 = vst.msk [vmem:[%s1360_s3 + $0x118] sm:$0xff] %vm595_vm3, %v566_v27 }
  0xaf   :  { %647 = vst.msk [vmem:[%s1360_s3 + $0x198] sm:$0xff] %vm595_vm3, %v582_v28 }
  0xb0   :  { %600 = vst.msk [vmem:[%s1360_s3 + $0x20] sm:$0xff] %vm595_vm3, %v535_v29 }
  0xb1   :  { %616 = vst.msk [vmem:[%s1360_s3 + $0xa0] sm:$0xff] %vm595_vm3, %v551_v30  ;;  %v461_v31 = vpop.f32.mrf.mxu2  ;;  %v501_v32 = vpop.f32.mrf.mxu3 }
  0xb2   :  { %v462_v33 = vadd.f32 %v1035_v40, %v461_v31  ;;  %v502_v34 = vadd.f32 %v1035_v40, %v501_v32  ;;  %v383_v35 = vpop.f32.mrf.mxu0  ;;  %v423_v36 = vpop.f32.mrf.mxu1 }
  0xb3   :  { %v384_v37 = vadd.f32 %v1035_v40, %v383_v35  ;;  %v424_v38 = vadd.f32 %v1035_v40, %v423_v36 }
  0xb4   :  { %v567_v39 = vmax.f32 %v462_v33, 0.0  ;;  %v583_v41 = vmax.f32 %v502_v34, 0.0 }
  0xb5   :  { %v536_v42 = vmax.f32 %v384_v37, 0.0  ;;  %v552_v43 = vmax.f32 %v424_v38, 0.0 }
  0xb6   :  { %632 = vst.msk [vmem:[%s1360_s3 + $0x120] sm:$0xff] %vm595_vm3, %v567_v39 }
  0xb7   :  { %648 = vst.msk [vmem:[%s1360_s3 + $0x1a0] sm:$0xff] %vm595_vm3, %v583_v41 }
  0xb8   :  { %601 = vst.msk [vmem:[%s1360_s3 + $0x28] sm:$0xff] %vm595_vm3, %v536_v42 }
  0xb9   :  { %617 = vst.msk [vmem:[%s1360_s3 + $0xa8] sm:$0xff] %vm595_vm3, %v552_v43  ;;  %v463_v44 = vpop.f32.mrf.mxu2  ;;  %v503_v45 = vpop.f32.mrf.mxu3 }
  0xba   :  { %v464_v46 = vadd.f32 %v1035_v40, %v463_v44  ;;  %v504_v47 = vadd.f32 %v1035_v40, %v503_v45  ;;  %v386_v48 = vpop.f32.mrf.mxu0  ;;  %v426_v49 = vpop.f32.mrf.mxu1 }
  0xbb   :  { %v387_v50 = vadd.f32 %v1035_v40, %v386_v48  ;;  %v427_v51 = vadd.f32 %v1035_v40, %v426_v49 }
  0xbc   :  { %v568_v52 = vmax.f32 %v464_v46, 0.0  ;;  %v584_v53 = vmax.f32 %v504_v47, 0.0 }
  0xbd   :  { %v537_v54 = vmax.f32 %v387_v50, 0.0  ;;  %v553_v55 = vmax.f32 %v427_v51, 0.0 }
  0xbe   :  { %633 = vst.msk [vmem:[%s1360_s3 + $0x128] sm:$0xff] %vm595_vm3, %v568_v52 }
  0xbf   :  { %649 = vst.msk [vmem:[%s1360_s3 + $0x1a8] sm:$0xff] %vm595_vm3, %v584_v53 }
  0xc0   :  { %602 = vst.msk [vmem:[%s1360_s3 + $0x30] sm:$0xff] %vm595_vm3, %v537_v54 }
  0xc1   :  { %618 = vst.msk [vmem:[%s1360_s3 + $0xb0] sm:$0xff] %vm595_vm3, %v553_v55  ;;  %v466_v56 = vpop.f32.mrf.mxu2  ;;  %v506_v57 = vpop.f32.mrf.mxu3 }
  0xc2   :  { %v467_v58 = vadd.f32 %v1035_v40, %v466_v56  ;;  %v507_v59 = vadd.f32 %v1035_v40, %v506_v57  ;;  %v388_v60 = vpop.f32.mrf.mxu0  ;;  %v428_v61 = vpop.f32.mrf.mxu1 }
  0xc3   :  { %v389_v62 = vadd.f32 %v1035_v40, %v388_v60  ;;  %v429_v63 = vadd.f32 %v1035_v40, %v428_v61 }
  0xc4   :  { %v569_v0 = vmax.f32 %v467_v58, 0.0  ;;  %v585_v1 = vmax.f32 %v507_v59, 0.0 }
  0xc5   :  { %v538_v2 = vmax.f32 %v389_v62, 0.0  ;;  %v554_v3 = vmax.f32 %v429_v63, 0.0 }
  0xc6   :  { %634 = vst.msk [vmem:[%s1360_s3 + $0x130] sm:$0xff] %vm595_vm3, %v569_v0 }
  0xc7   :  { %650 = vst.msk [vmem:[%s1360_s3 + $0x1b0] sm:$0xff] %vm595_vm3, %v585_v1 }
  0xc8   :  { %603 = vst.msk [vmem:[%s1360_s3 + $0x38] sm:$0xff] %vm595_vm3, %v538_v2 }
  0xc9   :  { %619 = vst.msk [vmem:[%s1360_s3 + $0xb8] sm:$0xff] %vm595_vm3, %v554_v3  ;;  %v468_v4 = vpop.f32.mrf.mxu2  ;;  %v508_v5 = vpop.f32.mrf.mxu3 }
  0xca   :  { %v469_v6 = vadd.f32 %v1035_v40, %v468_v4  ;;  %v509_v7 = vadd.f32 %v1035_v40, %v508_v5  ;;  %v391_v8 = vpop.f32.mrf.mxu0  ;;  %v431_v9 = vpop.f32.mrf.mxu1 }
  0xcb   :  { %v392_v10 = vadd.f32 %v1035_v40, %v391_v8  ;;  %v432_v11 = vadd.f32 %v1035_v40, %v431_v9 }
  0xcc   :  { %v570_v12 = vmax.f32 %v469_v6, 0.0  ;;  %v586_v13 = vmax.f32 %v509_v7, 0.0 }
  0xcd   :  { %v539_v14 = vmax.f32 %v392_v10, 0.0  ;;  %v555_v15 = vmax.f32 %v432_v11, 0.0 }
  0xce   :  { %635 = vst.msk [vmem:[%s1360_s3 + $0x138] sm:$0xff] %vm595_vm3, %v570_v12 }
  0xcf   :  { %651 = vst.msk [vmem:[%s1360_s3 + $0x1b8] sm:$0xff] %vm595_vm3, %v586_v13 }
  0xd0   :  { %604 = vst.msk [vmem:[%s1360_s3 + $0x40] sm:$0xff] %vm595_vm3, %v539_v14 }
  0xd1   :  { %620 = vst.msk [vmem:[%s1360_s3 + $0xc0] sm:$0xff] %vm595_vm3, %v555_v15  ;;  %v471_v16 = vpop.f32.mrf.mxu2  ;;  %v511_v17 = vpop.f32.mrf.mxu3 }
  0xd2   :  { %v472_v18 = vadd.f32 %v1035_v40, %v471_v16  ;;  %v512_v19 = vadd.f32 %v1035_v40, %v511_v17  ;;  %v393_v20 = vpop.f32.mrf.mxu0  ;;  %v433_v21 = vpop.f32.mrf.mxu1 }
  0xd3   :  { %v394_v22 = vadd.f32 %v1035_v40, %v393_v20  ;;  %v434_v23 = vadd.f32 %v1035_v40, %v433_v21 }
  0xd4   :  { %v571_v24 = vmax.f32 %v472_v18, 0.0  ;;  %v587_v25 = vmax.f32 %v512_v19, 0.0 }
  0xd5   :  { %v540_v26 = vmax.f32 %v394_v22, 0.0  ;;  %v556_v27 = vmax.f32 %v434_v23, 0.0 }
  0xd6   :  { %636 = vst.msk [vmem:[%s1360_s3 + $0x140] sm:$0xff] %vm595_vm3, %v571_v24 }
  0xd7   :  { %652 = vst.msk [vmem:[%s1360_s3 + $0x1c0] sm:$0xff] %vm595_vm3, %v587_v25 }
  0xd8   :  { %605 = vst.msk [vmem:[%s1360_s3 + $0x48] sm:$0xff] %vm595_vm3, %v540_v26 }
  0xd9   :  { %621 = vst.msk [vmem:[%s1360_s3 + $0xc8] sm:$0xff] %vm595_vm3, %v556_v27  ;;  %v473_v28 = vpop.f32.mrf.mxu2  ;;  %v513_v29 = vpop.f32.mrf.mxu3 }
  0xda   :  { %v474_v30 = vadd.f32 %v1035_v40, %v473_v28  ;;  %v514_v31 = vadd.f32 %v1035_v40, %v513_v29  ;;  %v396_v32 = vpop.f32.mrf.mxu0  ;;  %v436_v33 = vpop.f32.mrf.mxu1 }
  0xdb   :  { %v397_v34 = vadd.f32 %v1035_v40, %v396_v32  ;;  %v437_v35 = vadd.f32 %v1035_v40, %v436_v33 }
  0xdc   :  { %v572_v36 = vmax.f32 %v474_v30, 0.0  ;;  %v588_v37 = vmax.f32 %v514_v31, 0.0 }
  0xdd   :  { %v541_v38 = vmax.f32 %v397_v34, 0.0  ;;  %v557_v39 = vmax.f32 %v437_v35, 0.0 }
  0xde   :  { %637 = vst.msk [vmem:[%s1360_s3 + $0x148] sm:$0xff] %vm595_vm3, %v572_v36 }
  0xdf   :  { %653 = vst.msk [vmem:[%s1360_s3 + $0x1c8] sm:$0xff] %vm595_vm3, %v588_v37 }
  0xe0   :  { %606 = vst.msk [vmem:[%s1360_s3 + $0x50] sm:$0xff] %vm595_vm3, %v541_v38 }
  0xe1   :  { %622 = vst.msk [vmem:[%s1360_s3 + $0xd0] sm:$0xff] %vm595_vm3, %v557_v39  ;;  %v476_v41 = vpop.f32.mrf.mxu2  ;;  %v516_v42 = vpop.f32.mrf.mxu3 }
  0xe2   :  { %v477_v43 = vadd.f32 %v1035_v40, %v476_v41  ;;  %v517_v44 = vadd.f32 %v1035_v40, %v516_v42  ;;  %v398_v45 = vpop.f32.mrf.mxu0  ;;  %v438_v46 = vpop.f32.mrf.mxu1 }
  0xe3   :  { %v399_v47 = vadd.f32 %v1035_v40, %v398_v45  ;;  %v439_v48 = vadd.f32 %v1035_v40, %v438_v46 }
  0xe4   :  { %v573_v49 = vmax.f32 %v477_v43, 0.0  ;;  %v589_v50 = vmax.f32 %v517_v44, 0.0 }
  0xe5   :  { %v542_v51 = vmax.f32 %v399_v47, 0.0  ;;  %v558_v52 = vmax.f32 %v439_v48, 0.0 }
  0xe6   :  { %638 = vst.msk [vmem:[%s1360_s3 + $0x150] sm:$0xff] %vm595_vm3, %v573_v49 }
  0xe7   :  { %654 = vst.msk [vmem:[%s1360_s3 + $0x1d0] sm:$0xff] %vm595_vm3, %v589_v50 }
  0xe8   :  { %607 = vst.msk [vmem:[%s1360_s3 + $0x58] sm:$0xff] %vm595_vm3, %v542_v51 }
  0xe9   :  { %623 = vst.msk [vmem:[%s1360_s3 + $0xd8] sm:$0xff] %vm595_vm3, %v558_v52  ;;  %v478_v53 = vpop.f32.mrf.mxu2  ;;  %v518_v54 = vpop.f32.mrf.mxu3 }
  0xea   :  { %v479_v55 = vadd.f32 %v1035_v40, %v478_v53  ;;  %v519_v56 = vadd.f32 %v1035_v40, %v518_v54  ;;  %v401_v57 = vpop.f32.mrf.mxu0  ;;  %v441_v58 = vpop.f32.mrf.mxu1 }
  0xeb   :  { %v402_v59 = vadd.f32 %v1035_v40, %v401_v57  ;;  %v442_v60 = vadd.f32 %v1035_v40, %v441_v58 }
  0xec   :  { %v574_v61 = vmax.f32 %v479_v55, 0.0  ;;  %v590_v62 = vmax.f32 %v519_v56, 0.0 }
  0xed   :  { %v543_v63 = vmax.f32 %v402_v59, 0.0  ;;  %v559_v0 = vmax.f32 %v442_v60, 0.0 }
  0xee   :  { %639 = vst.msk [vmem:[%s1360_s3 + $0x158] sm:$0xff] %vm595_vm3, %v574_v61 }
  0xef   :  { %655 = vst.msk [vmem:[%s1360_s3 + $0x1d8] sm:$0xff] %vm595_vm3, %v590_v62 }
  0xf0   :  { %608 = vst.msk [vmem:[%s1360_s3 + $0x60] sm:$0xff] %vm595_vm3, %v543_v63 }
  0xf1   :  { %624 = vst.msk [vmem:[%s1360_s3 + $0xe0] sm:$0xff] %vm595_vm3, %v559_v0  ;;  %v481_v1 = vpop.f32.mrf.mxu2  ;;  %v521_v2 = vpop.f32.mrf.mxu3 }
  0xf2   :  { %v482_v3 = vadd.f32 %v1035_v40, %v481_v1  ;;  %v522_v4 = vadd.f32 %v1035_v40, %v521_v2  ;;  %v403_v5 = vpop.f32.mrf.mxu0  ;;  %v443_v6 = vpop.f32.mrf.mxu1 }
  0xf3   :  { %v404_v7 = vadd.f32 %v1035_v40, %v403_v5  ;;  %v444_v8 = vadd.f32 %v1035_v40, %v443_v6 }
  0xf4   :  { %v575_v9 = vmax.f32 %v482_v3, 0.0  ;;  %v591_v10 = vmax.f32 %v522_v4, 0.0 }
  0xf5   :  { %v544_v11 = vmax.f32 %v404_v7, 0.0  ;;  %v560_v12 = vmax.f32 %v444_v8, 0.0 }
  0xf6   :  { %640 = vst.msk [vmem:[%s1360_s3 + $0x160] sm:$0xff] %vm595_vm3, %v575_v9 }
  0xf7   :  { %656 = vst.msk [vmem:[%s1360_s3 + $0x1e0] sm:$0xff] %vm595_vm3, %v591_v10 }
  0xf8   :  { %609 = vst.msk [vmem:[%s1360_s3 + $0x68] sm:$0xff] %vm595_vm3, %v544_v11 }
  0xf9   :  { %625 = vst.msk [vmem:[%s1360_s3 + $0xe8] sm:$0xff] %vm595_vm3, %v560_v12  ;;  %v483_v13 = vpop.f32.mrf.mxu2  ;;  %v523_v14 = vpop.f32.mrf.mxu3 }
  0xfa   :  { %v484_v15 = vadd.f32 %v1035_v40, %v483_v13  ;;  %v524_v16 = vadd.f32 %v1035_v40, %v523_v14  ;;  %v406_v17 = vpop.f32.mrf.mxu0  ;;  %v446_v18 = vpop.f32.mrf.mxu1 }
  0xfb   :  { %v407_v19 = vadd.f32 %v1035_v40, %v406_v17  ;;  %v447_v20 = vadd.f32 %v1035_v40, %v446_v18 }
  0xfc   :  { %v576_v21 = vmax.f32 %v484_v15, 0.0  ;;  %v592_v22 = vmax.f32 %v524_v16, 0.0 }
  0xfd   :  { %v545_v23 = vmax.f32 %v407_v19, 0.0  ;;  %v561_v24 = vmax.f32 %v447_v20, 0.0 }
  0xfe   :  { %641 = vst.msk [vmem:[%s1360_s3 + $0x168] sm:$0xff] %vm595_vm3, %v576_v21 }
  0xff   :  { %657 = vst.msk [vmem:[%s1360_s3 + $0x1e8] sm:$0xff] %vm595_vm3, %v592_v22 }
 0x100   :  { %610 = vst.msk [vmem:[%s1360_s3 + $0x70] sm:$0xff] %vm595_vm3, %v545_v23 }
 0x101   :  { %626 = vst.msk [vmem:[%s1360_s3 + $0xf0] sm:$0xff] %vm595_vm3, %v561_v24  ;;  %v486_v25 = vpop.f32.mrf.mxu2  ;;  %v526_v26 = vpop.f32.mrf.mxu3 }
 0x102   :  { %v487_v27 = vadd.f32 %v1035_v40, %v486_v25  ;;  %v527_v28 = vadd.f32 %v1035_v40, %v526_v26  ;;  %v408_v29 = vpop.f32.mrf.mxu0  ;;  %v448_v30 = vpop.f32.mrf.mxu1 }
 0x103   :  { %v409_v31 = vadd.f32 %v1035_v40, %v408_v29  ;;  %v449_v32 = vadd.f32 %v1035_v40, %v448_v30 }
 0x104   :  { %v577_v33 = vmax.f32 %v487_v27, 0.0  ;;  %v593_v34 = vmax.f32 %v527_v28, 0.0 }
 0x105   :  { %v546_v35 = vmax.f32 %v409_v31, 0.0  ;;  %v562_v36 = vmax.f32 %v449_v32, 0.0 }
 0x106   :  { %642 = vst.msk [vmem:[%s1360_s3 + $0x170] sm:$0xff] %vm595_vm3, %v577_v33 }
 0x107   :  { %658 = vst.msk [vmem:[%s1360_s3 + $0x1f0] sm:$0xff] %vm595_vm3, %v593_v34 }
 0x108   :  { %611 = vst.msk [vmem:[%s1360_s3 + $0x78] sm:$0xff] %vm595_vm3, %v546_v35 }
 0x109   :  { %627 = vst.msk [vmem:[%s1360_s3 + $0xf8] sm:$0xff] %vm595_vm3, %v562_v36  ;;  %v488_v37 = vpop.f32.mrf.mxu2  ;;  %v528_v38 = vpop.f32.mrf.mxu3 }
 0x10a   :  { %v489_v39 = vadd.f32 %v1035_v40, %v488_v37  ;;  %v529_v41 = vadd.f32 %v1035_v40, %v528_v38 }
 0x10c   :  { %v578_v42 = vmax.f32 %v489_v39, 0.0  ;;  %v594_v43 = vmax.f32 %v529_v41, 0.0 }
 0x10e   :  { %643 = vst.msk [vmem:[%s1360_s3 + $0x178] sm:$0xff] %vm595_vm3, %v578_v42 }
 0x10f   :  { %659 = vst.msk [vmem:[%s1360_s3 + $0x1f8] sm:$0xff] %vm595_vm3, %v594_v43 }

// kernel: resnet32_forward.14
= control target key start
LH: loop header
LB: loop body
LE: loop exit
PB: predicated region body
PF: predicated region fallthrough
CT: control target
= control target key end

     0   :  { %vm179_vm0 = vcmask 130048   ;;  %s717_s1 = inlined_call_operand.vmem [shape: bf16[144,16], index: 1, kind: input, shape index: {}]   ;;  %s718_s0 = inlined_call_operand.vmem [shape: bf16[128,144], index: 0, kind: input, shape index: {}]   ;;  %s719_s2 = inlined_call_operand.vmem [shape: f32[1,16], index: 2, kind: input, shape index: {}]   ;;  %s720_s3 = inlined_call_operand.vmem [shape: f32[128,16], index: 3, kind: output, shape index: {}]  }
   0x1   :  { %v469_v0 = vld [vmem:[%s717_s1 + $0x38] sm:$0xff]  ;;  %v470_v1 = vld [vmem:[%s717_s1 + $0x40] sm:$0xff]  ;;  %v342_v3 = vld [vmem:[%s718_s0 + $0x8] sm:$0xf0] }
   0x2   :  { %v446_v2 = vld [vmem:[%s718_s0 + $0x4] sm:$0xf]  ;;  %204 = vmatpush.bf16.msra.mxu0 %v469_v0  ;;  %471 = vmatpush.bf16.msra.mxu2 %v469_v0  ;;  %v468_v5 = vld [vmem:[%s717_s1 + $0x30] sm:$0xff]  ;;  %v467_v6 = vld [vmem:[%s717_s1 + $0x28] sm:$0xff] }
   0x3   :  { %v345_v4 = vor.u32 %v446_v2, %v342_v3  ;;  %260 = vmatpush.bf16.msra.mxu1 %v470_v1  ;;  %479 = vmatpush.bf16.msra.mxu3 %v470_v1  ;;  %v456_v7 = vld [vmem:[%s718_s0 + $0x54] sm:$0xf]  ;;  %v382_v8 = vld [vmem:[%s718_s0 + $0x58] sm:$0xf0]  ;;  %v466_v10 = vld [vmem:[%s717_s1 + $0x20] sm:$0xff] }
   0x4   :  { %v385_v9 = vor.u32 %v456_v7, %v382_v8  ;;  %v465_v11 = vld [vmem:[%s717_s1 + $0x18] sm:$0xff]  ;;  %v448_v12 = vld [vmem:[%s718_s0 + $0x14] sm:$0xf]  ;;  %v463_v16 = vld [vmem:[%s717_s1 + $0x8] sm:$0xff] }
   0x5   :  { %v350_v13 = vld [vmem:[%s718_s0 + $0x18] sm:$0xf0]  ;;  %v464_v15 = vld [vmem:[%s717_s1 + $0x10] sm:$0xff]  ;;  %v458_v17 = vld [vmem:[%s718_s0 + $0x64] sm:$0xf] }
   0x6   :  { %438 = vmatmul.msk.bf16.vlgmr.msra.gmra.mxu1 %vm179_vm0, %v345_v4  ;;  %205 = vmatpush.bf16.msra.mxu0 %v468_v5  ;;  %v353_v14 = vor.u32 %v448_v12, %v350_v13  ;;  %v390_v18 = vld [vmem:[%s718_s0 + $0x68] sm:$0xf0]  ;;  %v462_v20 = vld [vmem:[%s717_s1] sm:$0xff]  ;;  %v447_v22 = vld [vmem:[%s718_s0 + $0x4] sm:$0xf0] }
   0x7   :  { %472 = vmatpush.bf16.msra.mxu2 %v468_v5  ;;  %443 = vmatmul.msk.bf16.vlgmr.msra.gmra.mxu3 %vm179_vm0, %v385_v9  ;;  %v393_v19 = vor.u32 %v458_v17, %v390_v18  ;;  %v340_v21 = vld [vmem:[%s718_s0] sm:$0xf]  ;;  %v455_v24 = vld [vmem:[%s718_s0 + $0x44] sm:$0xf0]  ;;  %v450_v27 = vld [vmem:[%s718_s0 + $0x24] sm:$0xf] }
   0x8   :  { %v372_v23 = vld [vmem:[%s718_s0 + $0x40] sm:$0xf]  ;;  %v341_v25 = vor.u32 %v447_v22, %v340_v21  ;;  %v358_v28 = vld [vmem:[%s718_s0 + $0x28] sm:$0xf0]  ;;  %v460_v30 = vld [vmem:[%s718_s0 + $0x74] sm:$0xf] }
   0x9   :  { %v373_v26 = vor.u32 %v455_v24, %v372_v23  ;;  %v361_v29 = vor.u32 %v450_v27, %v358_v28  ;;  %v398_v31 = vld [vmem:[%s718_s0 + $0x78] sm:$0xf0]  ;;  %v348_v33 = vld [vmem:[%s718_s0 + $0x10] sm:$0xf]  ;;  %v449_v34 = vld [vmem:[%s718_s0 + $0x14] sm:$0xf0] }
   0xa   :  { %206 = vmatpush.bf16.msra.mxu0 %v467_v6  ;;  %v401_v32 = vor.u32 %v460_v30, %v398_v31  ;;  %v380_v35 = vld [vmem:[%s718_s0 + $0x50] sm:$0xf]  ;;  %v457_v36 = vld [vmem:[%s718_s0 + $0x54] sm:$0xf0]  ;;  %v349_v37 = vor.u32 %v449_v34, %v348_v33  ;;  %v452_v39 = vld [vmem:[%s718_s0 + $0x34] sm:$0xf] }
   0xb   :  { %473 = vmatpush.bf16.msra.mxu2 %v467_v6  ;;  %v381_v38 = vor.u32 %v457_v36, %v380_v35  ;;  %v366_v40 = vld [vmem:[%s718_s0 + $0x38] sm:$0xf0]  ;;  %v356_v42 = vld [vmem:[%s718_s0 + $0x20] sm:$0xf]  ;;  %v451_v43 = vld [vmem:[%s718_s0 + $0x24] sm:$0xf0] }
   0xc   :  { %v369_v41 = vor.u32 %v452_v39, %v366_v40  ;;  %v388_v44 = vld [vmem:[%s718_s0 + $0x60] sm:$0xf]  ;;  %v459_v45 = vld [vmem:[%s718_s0 + $0x64] sm:$0xf0]  ;;  %v357_v46 = vor.u32 %v451_v43, %v356_v42  ;;  %v454_v48 = vld [vmem:[%s718_s0 + $0x44] sm:$0xf] }
   0xd   :  { %v389_v47 = vor.u32 %v459_v45, %v388_v44  ;;  %v374_v49 = vld [vmem:[%s718_s0 + $0x48] sm:$0xf0]  ;;  %v364_v51 = vld [vmem:[%s718_s0 + $0x30] sm:$0xf]  ;;  %v453_v52 = vld [vmem:[%s718_s0 + $0x34] sm:$0xf0] }
   0xe   :  { %207 = vmatpush.bf16.msra.mxu0 %v466_v10  ;;  %v377_v50 = vor.u32 %v454_v48, %v374_v49  ;;  %v396_v53 = vld [vmem:[%s718_s0 + $0x70] sm:$0xf]  ;;  %v461_v54 = vld [vmem:[%s718_s0 + $0x74] sm:$0xf0]  ;;  %v365_v55 = vor.u32 %v453_v52, %v364_v51  ;;  %v635_v61 = vld [vmem:[%s719_s2] ss:$0 sm:$0xff] }
   0xf   :  { %474 = vmatpush.bf16.msra.mxu2 %v466_v10  ;;  %v397_v56 = vor.u32 %v461_v54, %v396_v53 }
  0x12   :  { %208 = vmatpush.bf16.msra.mxu0 %v465_v11 }
  0x13   :  { %475 = vmatpush.bf16.msra.mxu2 %v465_v11 }
  0x16   :  { %439 = vmatmul.msk.bf16.gmra.mxu1 %vm179_vm0, %v353_v14  ;;  %209 = vmatpush.bf16.msra.mxu0 %v464_v15 }
  0x17   :  { %476 = vmatpush.bf16.msra.mxu2 %v464_v15  ;;  %444 = vmatmul.msk.bf16.gmra.mxu3 %vm179_vm0, %v393_v19 }
  0x1a   :  { %210 = vmatpush.bf16.msra.mxu0 %v463_v16 }
  0x1b   :  { %477 = vmatpush.bf16.msra.mxu2 %v463_v16 }
  0x1e   :  { %211 = vmatpush.bf16.msra.mxu0 %v462_v20 }
  0x1f   :  { %478 = vmatpush.bf16.msra.mxu2 %v462_v20 }
  0x21   :  { %212 = vmatmul.bf16.vlgmr.msra.gmra.mxu0 %v341_v25 }
  0x22   :  { %232 = vmatmul.bf16.vlgmr.msra.gmra.mxu2 %v373_v26 }
  0x26   :  { %440 = vmatmul.msk.bf16.gmra.mxu1 %vm179_vm0, %v361_v29 }
  0x27   :  { %445 = vmatmul.msk.bf16.gmra.mxu3 %vm179_vm0, %v401_v32 }
  0x31   :  { %217 = vmatmul.bf16.gmra.mxu0 %v349_v37 }
  0x32   :  { %237 = vmatmul.bf16.gmra.mxu2 %v381_v38 }
  0x36   :  { %441 = vmatmul.msk.bf16.gmra.mxu1 %vm179_vm0, %v369_v41 }
  0x41   :  { %222 = vmatmul.bf16.gmra.mxu0 %v357_v46 }
  0x42   :  { %242 = vmatmul.bf16.gmra.mxu2 %v389_v47 }
  0x46   :  { %442 = vmatmul.msk.bf16.gmra.mxu1 %vm179_vm0, %v377_v50 }
  0x51   :  { %227 = vmatmul.bf16.gmra.mxu0 %v365_v55 }
  0x52   :  { %247 = vmatmul.bf16.gmra.mxu2 %v397_v56 }
  0x83   :  { %v262_v57 = vpop.f32.mrf.mxu1 }
  0x8a   :  { %v287_v10 = vpop.f32.mrf.mxu3 }
  0x8b   :  { %v264_v58 = vpop.f32.mrf.mxu1 }
  0x92   :  { %v289_v20 = vpop.f32.mrf.mxu3 }
  0x93   :  { %v267_v59 = vpop.f32.mrf.mxu1 }
  0x9a   :  { %v292_v32 = vpop.f32.mrf.mxu3 }
  0x9b   :  { %v269_v60 = vpop.f32.mrf.mxu1 }
  0x9e   :  { %v213_v62 = vpop.f32.mrf.mxu0 }
  0x9f   :  { %v214_v63 = vadd.f32 %v635_v61, %v213_v62 }
  0xa1   :  { %v263_v0 = vadd.f32 %v262_v57, %v214_v63 }
  0xa2   :  { %v294_v48 = vpop.f32.mrf.mxu3 }
  0xa3   :  { %v302_v1 = vmax.f32 %v263_v0, 0.0  ;;  %v272_v2 = vpop.f32.mrf.mxu1 }
  0xa5   :  { %318 = vst.msk [vmem:[%s720_s3] sm:$0xff] %vm179_vm0, %v302_v1  ;;  %v233_v3 = vpop.f32.mrf.mxu2 }
  0xa6   :  { %v215_v4 = vpop.f32.mrf.mxu0  ;;  %v234_v33 = vadd.f32 %v635_v61, %v233_v3 }
  0xa7   :  { %v216_v5 = vadd.f32 %v635_v61, %v215_v4 }
  0xa9   :  { %v265_v6 = vadd.f32 %v264_v58, %v216_v5 }
  0xab   :  { %v303_v7 = vmax.f32 %v265_v6, 0.0  ;;  %v274_v8 = vpop.f32.mrf.mxu1 }
  0xad   :  { %319 = vst.msk [vmem:[%s720_s3 + $0x8] sm:$0xff] %vm179_vm0, %v303_v7  ;;  %v235_v9 = vpop.f32.mrf.mxu2 }
  0xae   :  { %v218_v11 = vpop.f32.mrf.mxu0  ;;  %v236_v45 = vadd.f32 %v635_v61, %v235_v9 }
  0xaf   :  { %v219_v12 = vadd.f32 %v635_v61, %v218_v11 }
  0xb1   :  { %v268_v13 = vadd.f32 %v267_v59, %v219_v12 }
  0xb3   :  { %v304_v14 = vmax.f32 %v268_v13, 0.0  ;;  %v277_v15 = vpop.f32.mrf.mxu1 }
  0xb5   :  { %320 = vst.msk [vmem:[%s720_s3 + $0x10] sm:$0xff] %vm179_vm0, %v304_v14  ;;  %v238_v16 = vpop.f32.mrf.mxu2 }
  0xb6   :  { %v239_v17 = vadd.f32 %v635_v61, %v238_v16  ;;  %v220_v18 = vpop.f32.mrf.mxu0 }
  0xb7   :  { %v221_v19 = vadd.f32 %v635_v61, %v220_v18 }
  0xb8   :  { %v288_v21 = vadd.f32 %v287_v10, %v239_v17 }
  0xb9   :  { %v270_v22 = vadd.f32 %v269_v60, %v221_v19  ;;  %v297_v60 = vpop.f32.mrf.mxu3 }
  0xba   :  { %v312_v23 = vmax.f32 %v288_v21, 0.0 }
  0xbb   :  { %v305_v24 = vmax.f32 %v270_v22, 0.0  ;;  %v279_v25 = vpop.f32.mrf.mxu1 }
  0xbc   :  { %328 = vst.msk [vmem:[%s720_s3 + $0x50] sm:$0xff] %vm179_vm0, %v312_v23 }
  0xbd   :  { %321 = vst.msk [vmem:[%s720_s3 + $0x18] sm:$0xff] %vm179_vm0, %v305_v24  ;;  %v240_v26 = vpop.f32.mrf.mxu2 }
  0xbe   :  { %v241_v27 = vadd.f32 %v635_v61, %v240_v26  ;;  %v223_v28 = vpop.f32.mrf.mxu0 }
  0xbf   :  { %v224_v29 = vadd.f32 %v635_v61, %v223_v28 }
  0xc0   :  { %v290_v30 = vadd.f32 %v289_v20, %v241_v27 }
  0xc1   :  { %v273_v31 = vadd.f32 %v272_v2, %v224_v29 }
  0xc2   :  { %v313_v34 = vmax.f32 %v290_v30, 0.0 }
  0xc3   :  { %v306_v35 = vmax.f32 %v273_v31, 0.0  ;;  %v282_v36 = vpop.f32.mrf.mxu1 }
  0xc4   :  { %329 = vst.msk [vmem:[%s720_s3 + $0x58] sm:$0xff] %vm179_vm0, %v313_v34  ;;  %v283_v37 = vadd.f32 %v282_v36, %v234_v33 }
  0xc5   :  { %322 = vst.msk [vmem:[%s720_s3 + $0x20] sm:$0xff] %vm179_vm0, %v306_v35  ;;  %v243_v38 = vpop.f32.mrf.mxu2 }
  0xc6   :  { %v310_v39 = vmax.f32 %v283_v37, 0.0  ;;  %v244_v40 = vadd.f32 %v635_v61, %v243_v38  ;;  %v225_v41 = vpop.f32.mrf.mxu0 }
  0xc7   :  { %v226_v42 = vadd.f32 %v635_v61, %v225_v41 }
  0xc8   :  { %326 = vst.msk [vmem:[%s720_s3 + $0x40] sm:$0xff] %vm179_vm0, %v310_v39  ;;  %v293_v43 = vadd.f32 %v292_v32, %v244_v40 }
  0xc9   :  { %v275_v44 = vadd.f32 %v274_v8, %v226_v42  ;;  %v299_v8 = vpop.f32.mrf.mxu3 }
  0xca   :  { %v314_v46 = vmax.f32 %v293_v43, 0.0 }
  0xcb   :  { %v307_v47 = vmax.f32 %v275_v44, 0.0  ;;  %v284_v49 = vpop.f32.mrf.mxu1 }
  0xcc   :  { %330 = vst.msk [vmem:[%s720_s3 + $0x60] sm:$0xff] %vm179_vm0, %v314_v46  ;;  %v285_v50 = vadd.f32 %v284_v49, %v236_v45 }
  0xcd   :  { %323 = vst.msk [vmem:[%s720_s3 + $0x28] sm:$0xff] %vm179_vm0, %v307_v47  ;;  %v245_v51 = vpop.f32.mrf.mxu2 }
  0xce   :  { %v311_v52 = vmax.f32 %v285_v50, 0.0  ;;  %v246_v53 = vadd.f32 %v635_v61, %v245_v51  ;;  %v228_v54 = vpop.f32.mrf.mxu0 }
  0xcf   :  { %v229_v55 = vadd.f32 %v635_v61, %v228_v54 }
  0xd0   :  { %327 = vst.msk [vmem:[%s720_s3 + $0x48] sm:$0xff] %vm179_vm0, %v311_v52  ;;  %v295_v56 = vadd.f32 %v294_v48, %v246_v53 }
  0xd1   :  { %v278_v57 = vadd.f32 %v277_v15, %v229_v55 }
  0xd2   :  { %v315_v58 = vmax.f32 %v295_v56, 0.0 }
  0xd3   :  { %v308_v59 = vmax.f32 %v278_v57, 0.0 }
  0xd4   :  { %331 = vst.msk [vmem:[%s720_s3 + $0x68] sm:$0xff] %vm179_vm0, %v315_v58 }
  0xd5   :  { %324 = vst.msk [vmem:[%s720_s3 + $0x30] sm:$0xff] %vm179_vm0, %v308_v59  ;;  %v248_v62 = vpop.f32.mrf.mxu2 }
  0xd6   :  { %v249_v63 = vadd.f32 %v635_v61, %v248_v62  ;;  %v230_v0 = vpop.f32.mrf.mxu0 }
  0xd7   :  { %v231_v1 = vadd.f32 %v635_v61, %v230_v0 }
  0xd8   :  { %v298_v2 = vadd.f32 %v297_v60, %v249_v63 }
  0xd9   :  { %v280_v3 = vadd.f32 %v279_v25, %v231_v1 }
  0xda   :  { %v316_v4 = vmax.f32 %v298_v2, 0.0 }
  0xdb   :  { %v309_v5 = vmax.f32 %v280_v3, 0.0 }
  0xdc   :  { %332 = vst.msk [vmem:[%s720_s3 + $0x70] sm:$0xff] %vm179_vm0, %v316_v4 }
  0xdd   :  { %325 = vst.msk [vmem:[%s720_s3 + $0x38] sm:$0xff] %vm179_vm0, %v309_v5  ;;  %v250_v6 = vpop.f32.mrf.mxu2 }
  0xde   :  { %v251_v7 = vadd.f32 %v635_v61, %v250_v6 }
  0xe0   :  { %v300_v9 = vadd.f32 %v299_v8, %v251_v7 }
  0xe2   :  { %v317_v10 = vmax.f32 %v300_v9, 0.0 }
  0xe4   :  { %333 = vst.msk [vmem:[%s720_s3 + $0x78] sm:$0xff] %vm179_vm0, %v317_v10 }

// kernel: resnet32_forward.15
= control target key start
LH: loop header
LB: loop body
LE: loop exit
PB: predicated region body
PF: predicated region fallthrough
CT: control target
= control target key end

     0   :  { %vm182_vm0 = vcmask 130048   ;;  %s811_s1 = inlined_call_operand.vmem [shape: bf16[144,16], index: 1, kind: input, shape index: {}]   ;;  %s812_s0 = inlined_call_operand.vmem [shape: bf16[128,144], index: 0, kind: input, shape index: {}]   ;;  %s813_s2 = inlined_call_operand.vmem [shape: f32[1,16], index: 2, kind: input, shape index: {}]   ;;  %s814_s3 = inlined_call_operand.vmem [shape: f32[128,16], index: 3, kind: input, shape index: {}]   ;;  %s815_s4 = inlined_call_operand.vmem [shape: f32[128,16], index: 4, kind: output, shape index: {}]  }
   0x1   :  { %v504_v0 = vld [vmem:[%s811_s1 + $0x38] sm:$0xff]  ;;  %v505_v1 = vld [vmem:[%s811_s1 + $0x40] sm:$0xff]  ;;  %v377_v3 = vld [vmem:[%s812_s0 + $0x8] sm:$0xf0] }
   0x2   :  { %v481_v2 = vld [vmem:[%s812_s0 + $0x4] sm:$0xf]  ;;  %207 = vmatpush.bf16.msra.mxu0 %v504_v0  ;;  %506 = vmatpush.bf16.msra.mxu2 %v504_v0  ;;  %v503_v5 = vld [vmem:[%s811_s1 + $0x30] sm:$0xff]  ;;  %v502_v6 = vld [vmem:[%s811_s1 + $0x28] sm:$0xff] }
   0x3   :  { %v380_v4 = vor.u32 %v481_v2, %v377_v3  ;;  %263 = vmatpush.bf16.msra.mxu1 %v505_v1  ;;  %514 = vmatpush.bf16.msra.mxu3 %v505_v1  ;;  %v491_v7 = vld [vmem:[%s812_s0 + $0x54] sm:$0xf]  ;;  %v417_v8 = vld [vmem:[%s812_s0 + $0x58] sm:$0xf0]  ;;  %v501_v10 = vld [vmem:[%s811_s1 + $0x20] sm:$0xff] }
   0x4   :  { %v420_v9 = vor.u32 %v491_v7, %v417_v8  ;;  %v500_v11 = vld [vmem:[%s811_s1 + $0x18] sm:$0xff]  ;;  %v483_v12 = vld [vmem:[%s812_s0 + $0x14] sm:$0xf]  ;;  %v498_v16 = vld [vmem:[%s811_s1 + $0x8] sm:$0xff] }
   0x5   :  { %v385_v13 = vld [vmem:[%s812_s0 + $0x18] sm:$0xf0]  ;;  %v499_v15 = vld [vmem:[%s811_s1 + $0x10] sm:$0xff]  ;;  %v493_v17 = vld [vmem:[%s812_s0 + $0x64] sm:$0xf] }
   0x6   :  { %473 = vmatmul.msk.bf16.vlgmr.msra.gmra.mxu1 %vm182_vm0, %v380_v4  ;;  %208 = vmatpush.bf16.msra.mxu0 %v503_v5  ;;  %v388_v14 = vor.u32 %v483_v12, %v385_v13  ;;  %v425_v18 = vld [vmem:[%s812_s0 + $0x68] sm:$0xf0]  ;;  %v497_v20 = vld [vmem:[%s811_s1] sm:$0xff]  ;;  %v482_v22 = vld [vmem:[%s812_s0 + $0x4] sm:$0xf0] }
   0x7   :  { %507 = vmatpush.bf16.msra.mxu2 %v503_v5  ;;  %478 = vmatmul.msk.bf16.vlgmr.msra.gmra.mxu3 %vm182_vm0, %v420_v9  ;;  %v428_v19 = vor.u32 %v493_v17, %v425_v18  ;;  %v375_v21 = vld [vmem:[%s812_s0] sm:$0xf]  ;;  %v490_v24 = vld [vmem:[%s812_s0 + $0x44] sm:$0xf0]  ;;  %v485_v27 = vld [vmem:[%s812_s0 + $0x24] sm:$0xf] }
   0x8   :  { %v407_v23 = vld [vmem:[%s812_s0 + $0x40] sm:$0xf]  ;;  %v376_v25 = vor.u32 %v482_v22, %v375_v21  ;;  %v393_v28 = vld [vmem:[%s812_s0 + $0x28] sm:$0xf0]  ;;  %v495_v30 = vld [vmem:[%s812_s0 + $0x74] sm:$0xf] }
   0x9   :  { %v408_v26 = vor.u32 %v490_v24, %v407_v23  ;;  %v396_v29 = vor.u32 %v485_v27, %v393_v28  ;;  %v433_v31 = vld [vmem:[%s812_s0 + $0x78] sm:$0xf0]  ;;  %v383_v33 = vld [vmem:[%s812_s0 + $0x10] sm:$0xf]  ;;  %v484_v34 = vld [vmem:[%s812_s0 + $0x14] sm:$0xf0] }
   0xa   :  { %209 = vmatpush.bf16.msra.mxu0 %v502_v6  ;;  %v436_v32 = vor.u32 %v495_v30, %v433_v31  ;;  %v415_v35 = vld [vmem:[%s812_s0 + $0x50] sm:$0xf]  ;;  %v492_v36 = vld [vmem:[%s812_s0 + $0x54] sm:$0xf0]  ;;  %v384_v37 = vor.u32 %v484_v34, %v383_v33  ;;  %v487_v39 = vld [vmem:[%s812_s0 + $0x34] sm:$0xf] }
   0xb   :  { %508 = vmatpush.bf16.msra.mxu2 %v502_v6  ;;  %v416_v38 = vor.u32 %v492_v36, %v415_v35  ;;  %v401_v40 = vld [vmem:[%s812_s0 + $0x38] sm:$0xf0]  ;;  %v391_v42 = vld [vmem:[%s812_s0 + $0x20] sm:$0xf]  ;;  %v486_v43 = vld [vmem:[%s812_s0 + $0x24] sm:$0xf0] }
   0xc   :  { %v404_v41 = vor.u32 %v487_v39, %v401_v40  ;;  %v423_v44 = vld [vmem:[%s812_s0 + $0x60] sm:$0xf]  ;;  %v494_v45 = vld [vmem:[%s812_s0 + $0x64] sm:$0xf0]  ;;  %v392_v46 = vor.u32 %v486_v43, %v391_v42  ;;  %v489_v48 = vld [vmem:[%s812_s0 + $0x44] sm:$0xf] }
   0xd   :  { %v424_v47 = vor.u32 %v494_v45, %v423_v44  ;;  %v409_v49 = vld [vmem:[%s812_s0 + $0x48] sm:$0xf0]  ;;  %v399_v51 = vld [vmem:[%s812_s0 + $0x30] sm:$0xf]  ;;  %v488_v52 = vld [vmem:[%s812_s0 + $0x34] sm:$0xf0] }
   0xe   :  { %210 = vmatpush.bf16.msra.mxu0 %v501_v10  ;;  %v412_v50 = vor.u32 %v489_v48, %v409_v49  ;;  %v431_v53 = vld [vmem:[%s812_s0 + $0x70] sm:$0xf]  ;;  %v496_v54 = vld [vmem:[%s812_s0 + $0x74] sm:$0xf0]  ;;  %v400_v55 = vor.u32 %v488_v52, %v399_v51  ;;  %v675_v61 = vld [vmem:[%s813_s2] ss:$0 sm:$0xff] }
   0xf   :  { %509 = vmatpush.bf16.msra.mxu2 %v501_v10  ;;  %v432_v56 = vor.u32 %v496_v54, %v431_v53  ;;  %v305_v0 = vld [vmem:[%s814_s3] sm:$0xff]  ;;  %v306_v8 = vld [vmem:[%s814_s3 + $0x8] sm:$0xff]  ;;  %v307_v17 = vld [vmem:[%s814_s3 + $0x10] sm:$0xff] }
  0x10   :  { %v316_v39 = vld [vmem:[%s814_s3 + $0x58] sm:$0xff]  ;;  %v309_v42 = vld [vmem:[%s814_s3 + $0x20] sm:$0xff] }
  0x11   :  { %v313_v49 = vld [vmem:[%s814_s3 + $0x40] sm:$0xff] }
  0x12   :  { %211 = vmatpush.bf16.msra.mxu0 %v500_v11 }
  0x13   :  { %510 = vmatpush.bf16.msra.mxu2 %v500_v11 }
  0x16   :  { %474 = vmatmul.msk.bf16.gmra.mxu1 %vm182_vm0, %v388_v14  ;;  %212 = vmatpush.bf16.msra.mxu0 %v499_v15 }
  0x17   :  { %511 = vmatpush.bf16.msra.mxu2 %v499_v15  ;;  %479 = vmatmul.msk.bf16.gmra.mxu3 %vm182_vm0, %v428_v19 }
  0x1a   :  { %213 = vmatpush.bf16.msra.mxu0 %v498_v16 }
  0x1b   :  { %512 = vmatpush.bf16.msra.mxu2 %v498_v16 }
  0x1e   :  { %214 = vmatpush.bf16.msra.mxu0 %v497_v20 }
  0x1f   :  { %513 = vmatpush.bf16.msra.mxu2 %v497_v20 }
  0x21   :  { %215 = vmatmul.bf16.vlgmr.msra.gmra.mxu0 %v376_v25  ;;  %v315_v25 = vld [vmem:[%s814_s3 + $0x50] sm:$0xff] }
  0x22   :  { %235 = vmatmul.bf16.vlgmr.msra.gmra.mxu2 %v408_v26 }
  0x26   :  { %475 = vmatmul.msk.bf16.gmra.mxu1 %vm182_vm0, %v396_v29  ;;  %v308_v29 = vld [vmem:[%s814_s3 + $0x18] sm:$0xff] }
  0x27   :  { %480 = vmatmul.msk.bf16.gmra.mxu3 %vm182_vm0, %v436_v32 }
  0x31   :  { %220 = vmatmul.bf16.gmra.mxu0 %v384_v37 }
  0x32   :  { %240 = vmatmul.bf16.gmra.mxu2 %v416_v38 }
  0x36   :  { %476 = vmatmul.msk.bf16.gmra.mxu1 %vm182_vm0, %v404_v41 }
  0x41   :  { %225 = vmatmul.bf16.gmra.mxu0 %v392_v46 }
  0x42   :  { %245 = vmatmul.bf16.gmra.mxu2 %v424_v47 }
  0x46   :  { %477 = vmatmul.msk.bf16.gmra.mxu1 %vm182_vm0, %v412_v50 }
  0x51   :  { %230 = vmatmul.bf16.gmra.mxu0 %v400_v55 }
  0x52   :  { %250 = vmatmul.bf16.gmra.mxu2 %v432_v56 }
  0x83   :  { %v265_v57 = vpop.f32.mrf.mxu1 }
  0x8a   :  { %v290_v14 = vpop.f32.mrf.mxu3 }
  0x8b   :  { %v267_v58 = vpop.f32.mrf.mxu1 }
  0x92   :  { %v292_v27 = vpop.f32.mrf.mxu3 }
  0x93   :  { %v270_v59 = vpop.f32.mrf.mxu1 }
  0x9a   :  { %v295_v44 = vpop.f32.mrf.mxu3 }
  0x9b   :  { %v272_v60 = vpop.f32.mrf.mxu1 }
  0x9e   :  { %v216_v62 = vpop.f32.mrf.mxu0 }
  0x9f   :  { %v217_v63 = vadd.f32 %v675_v61, %v216_v62  ;;  %v310_v62 = vld [vmem:[%s814_s3 + $0x28] sm:$0xff] }
  0xa1   :  { %v266_v1 = vadd.f32 %v265_v57, %v217_v63  ;;  %v317_v57 = vld [vmem:[%s814_s3 + $0x60] sm:$0xff] }
  0xa3   :  { %v321_v2 = vadd.f32 %v305_v0, %v266_v1  ;;  %v275_v3 = vpop.f32.mrf.mxu1 }
  0xa5   :  { %v337_v4 = vmax.f32 %v321_v2, 0.0  ;;  %v236_v5 = vpop.f32.mrf.mxu2 }
  0xa6   :  { %v218_v6 = vpop.f32.mrf.mxu0  ;;  %v237_v45 = vadd.f32 %v675_v61, %v236_v5  ;;  %v314_v5 = vld [vmem:[%s814_s3 + $0x48] sm:$0xff] }
  0xa7   :  { %353 = vst.msk [vmem:[%s815_s4] sm:$0xff] %vm182_vm0, %v337_v4  ;;  %v219_v7 = vadd.f32 %v675_v61, %v218_v6 }
  0xa9   :  { %v268_v9 = vadd.f32 %v267_v58, %v219_v7 }
  0xab   :  { %v322_v10 = vadd.f32 %v306_v8, %v268_v9  ;;  %v277_v11 = vpop.f32.mrf.mxu1 }
  0xad   :  { %v338_v12 = vmax.f32 %v322_v10, 0.0  ;;  %v238_v13 = vpop.f32.mrf.mxu2 }
  0xae   :  { %v221_v15 = vpop.f32.mrf.mxu0  ;;  %v239_v0 = vadd.f32 %v675_v61, %v238_v13  ;;  %v318_v13 = vld [vmem:[%s814_s3 + $0x68] sm:$0xff] }
  0xaf   :  { %354 = vst.msk [vmem:[%s815_s4 + $0x8] sm:$0xff] %vm182_vm0, %v338_v12  ;;  %v222_v16 = vadd.f32 %v675_v61, %v221_v15 }
  0xb1   :  { %v271_v18 = vadd.f32 %v270_v59, %v222_v16 }
  0xb3   :  { %v323_v19 = vadd.f32 %v307_v17, %v271_v18  ;;  %v697_v20 = vpop.f32.mrf.mxu1  ;;  %v311_v17 = vld [vmem:[%s814_s3 + $0x30] sm:$0xff] }
  0xb5   :  { %v339_v21 = vmax.f32 %v323_v19, 0.0  ;;  %v241_v22 = vpop.f32.mrf.mxu2 }
  0xb6   :  { %v242_v23 = vadd.f32 %v675_v61, %v241_v22  ;;  %v223_v24 = vpop.f32.mrf.mxu0 }
  0xb7   :  { %355 = vst.msk [vmem:[%s815_s4 + $0x10] sm:$0xff] %vm182_vm0, %v339_v21  ;;  %v224_v26 = vadd.f32 %v675_v61, %v223_v24 }
  0xb8   :  { %v291_v28 = vadd.f32 %v290_v14, %v242_v23 }
  0xb9   :  { %v273_v30 = vadd.f32 %v272_v60, %v224_v26 }
  0xba   :  { %v331_v31 = vadd.f32 %v315_v25, %v291_v28 }
  0xbb   :  { %v324_v32 = vadd.f32 %v308_v29, %v273_v30  ;;  %v711_v33 = vpop.f32.mrf.mxu1  ;;  %v312_v30 = vld [vmem:[%s814_s3 + $0x38] sm:$0xff] }
  0xbc   :  { %v347_v34 = vmax.f32 %v331_v31, 0.0 }
  0xbd   :  { %v340_v35 = vmax.f32 %v324_v32, 0.0  ;;  %v243_v36 = vpop.f32.mrf.mxu2 }
  0xbe   :  { %363 = vst.msk [vmem:[%s815_s4 + $0x50] sm:$0xff] %vm182_vm0, %v347_v34  ;;  %v244_v37 = vadd.f32 %v675_v61, %v243_v36  ;;  %v226_v38 = vpop.f32.mrf.mxu0 }
  0xbf   :  { %356 = vst.msk [vmem:[%s815_s4 + $0x18] sm:$0xff] %vm182_vm0, %v340_v35  ;;  %v227_v40 = vadd.f32 %v675_v61, %v226_v38 }
  0xc0   :  { %v293_v41 = vadd.f32 %v292_v27, %v244_v37 }
  0xc1   :  { %v276_v43 = vadd.f32 %v275_v3, %v227_v40  ;;  %v297_v3 = vpop.f32.mrf.mxu3 }
  0xc2   :  { %v332_v46 = vadd.f32 %v316_v39, %v293_v41 }
  0xc3   :  { %v325_v47 = vadd.f32 %v309_v42, %v276_v43  ;;  %v285_v48 = vpop.f32.mrf.mxu1 }
  0xc4   :  { %v348_v50 = vmax.f32 %v332_v46, 0.0  ;;  %v286_v51 = vadd.f32 %v285_v48, %v237_v45 }
  0xc5   :  { %v341_v52 = vmax.f32 %v325_v47, 0.0  ;;  %v246_v53 = vpop.f32.mrf.mxu2 }
  0xc6   :  { %364 = vst.msk [vmem:[%s815_s4 + $0x58] sm:$0xff] %vm182_vm0, %v348_v50  ;;  %v329_v54 = vadd.f32 %v313_v49, %v286_v51  ;;  %v247_v55 = vadd.f32 %v675_v61, %v246_v53  ;;  %v228_v56 = vpop.f32.mrf.mxu0 }
  0xc7   :  { %357 = vst.msk [vmem:[%s815_s4 + $0x20] sm:$0xff] %vm182_vm0, %v341_v52  ;;  %v229_v58 = vadd.f32 %v675_v61, %v228_v56 }
  0xc8   :  { %v345_v59 = vmax.f32 %v329_v54, 0.0  ;;  %v296_v60 = vadd.f32 %v295_v44, %v247_v55 }
  0xc9   :  { %v278_v63 = vadd.f32 %v277_v11, %v229_v58  ;;  %v300_v24 = vpop.f32.mrf.mxu3 }
  0xca   :  { %361 = vst.msk [vmem:[%s815_s4 + $0x40] sm:$0xff] %vm182_vm0, %v345_v59  ;;  %v333_v1 = vadd.f32 %v317_v57, %v296_v60 }
  0xcb   :  { %v326_v2 = vadd.f32 %v310_v62, %v278_v63  ;;  %v287_v4 = vpop.f32.mrf.mxu1 }
  0xcc   :  { %v349_v6 = vmax.f32 %v333_v1, 0.0  ;;  %v288_v7 = vadd.f32 %v287_v4, %v239_v0 }
  0xcd   :  { %v342_v8 = vmax.f32 %v326_v2, 0.0  ;;  %v248_v9 = vpop.f32.mrf.mxu2 }
  0xce   :  { %365 = vst.msk [vmem:[%s815_s4 + $0x60] sm:$0xff] %vm182_vm0, %v349_v6  ;;  %v330_v10 = vadd.f32 %v314_v5, %v288_v7  ;;  %v249_v11 = vadd.f32 %v675_v61, %v248_v9  ;;  %v231_v12 = vpop.f32.mrf.mxu0 }
  0xcf   :  { %358 = vst.msk [vmem:[%s815_s4 + $0x28] sm:$0xff] %vm182_vm0, %v342_v8  ;;  %v232_v14 = vadd.f32 %v675_v61, %v231_v12 }
  0xd0   :  { %v346_v15 = vmax.f32 %v330_v10, 0.0  ;;  %v298_v16 = vadd.f32 %v297_v3, %v249_v11 }
  0xd1   :  { %v281_v18 = vadd.f32 %v697_v20, %v232_v14  ;;  %v319_v20 = vld [vmem:[%s814_s3 + $0x70] sm:$0xff]  ;;  %v302_v39 = vpop.f32.mrf.mxu3 }
  0xd2   :  { %362 = vst.msk [vmem:[%s815_s4 + $0x48] sm:$0xff] %vm182_vm0, %v346_v15  ;;  %v334_v19 = vadd.f32 %v318_v13, %v298_v16 }
  0xd3   :  { %v327_v21 = vadd.f32 %v311_v17, %v281_v18 }
  0xd4   :  { %v350_v22 = vmax.f32 %v334_v19, 0.0 }
  0xd5   :  { %v343_v23 = vmax.f32 %v327_v21, 0.0  ;;  %v251_v25 = vpop.f32.mrf.mxu2 }
  0xd6   :  { %366 = vst.msk [vmem:[%s815_s4 + $0x68] sm:$0xff] %vm182_vm0, %v350_v22  ;;  %v252_v26 = vadd.f32 %v675_v61, %v251_v25  ;;  %v233_v27 = vpop.f32.mrf.mxu0 }
  0xd7   :  { %359 = vst.msk [vmem:[%s815_s4 + $0x30] sm:$0xff] %vm182_vm0, %v343_v23  ;;  %v234_v28 = vadd.f32 %v675_v61, %v233_v27 }
  0xd8   :  { %v301_v29 = vadd.f32 %v300_v24, %v252_v26 }
  0xd9   :  { %v283_v31 = vadd.f32 %v711_v33, %v234_v28  ;;  %v320_v33 = vld [vmem:[%s814_s3 + $0x78] sm:$0xff] }
  0xda   :  { %v335_v32 = vadd.f32 %v319_v20, %v301_v29 }
  0xdb   :  { %v328_v34 = vadd.f32 %v312_v30, %v283_v31 }
  0xdc   :  { %v351_v35 = vmax.f32 %v335_v32, 0.0 }
  0xdd   :  { %v344_v36 = vmax.f32 %v328_v34, 0.0  ;;  %v253_v37 = vpop.f32.mrf.mxu2 }
  0xde   :  { %367 = vst.msk [vmem:[%s815_s4 + $0x70] sm:$0xff] %vm182_vm0, %v351_v35  ;;  %v254_v38 = vadd.f32 %v675_v61, %v253_v37 }
  0xdf   :  { %360 = vst.msk [vmem:[%s815_s4 + $0x38] sm:$0xff] %vm182_vm0, %v344_v36 }
  0xe0   :  { %v303_v40 = vadd.f32 %v302_v39, %v254_v38 }
  0xe2   :  { %v336_v41 = vadd.f32 %v320_v33, %v303_v40 }
  0xe4   :  { %v352_v42 = vmax.f32 %v336_v41, 0.0 }
  0xe6   :  { %368 = vst.msk [vmem:[%s815_s4 + $0x78] sm:$0xff] %vm182_vm0, %v352_v42 }

// kernel: resnet32_forward.17
= control target key start
LH: loop header
LB: loop body
LE: loop exit
PB: predicated region body
PF: predicated region fallthrough
CT: control target
= control target key end

     0   :  { %vm113_vm0 = vcmask 130048   ;;  %vm162_vm1 = vcmask 261120   ;;  %s339_s1 = inlined_call_operand.vmem [shape: bf16[144,32], index: 1, kind: input, shape index: {}]   ;;  %s340_s0 = inlined_call_operand.vmem [shape: bf16[32,144], index: 0, kind: input, shape index: {}]   ;;  %s341_s2 = inlined_call_operand.vmem [shape: f32[1,32], index: 2, kind: input, shape index: {}]   ;;  %s342_s3 = inlined_call_operand.vmem [shape: f32[32,32], index: 3, kind: output, shape index: {}]  }
   0x1   :  { %v236_v0 = vld [vmem:[%s339_s1 + $0x38] sm:$0xff]  ;;  %v237_v1 = vld [vmem:[%s339_s1 + $0x40] sm:$0xff]  ;;  %v235_v3 = vld [vmem:[%s339_s1 + $0x30] sm:$0xff] }
   0x2   :  { %v225_v2 = vld [vmem:[%s340_s0 + $0x4] sm:$0xf]  ;;  %120 = vmatpush.bf16.msra.mxu0 %v236_v0  ;;  %238 = vmatpush.bf16.msra.mxu2 %v236_v0  ;;  %v175_v4 = vld [vmem:[%s340_s0 + $0x8] sm:$0xf0]  ;;  %v232_v8 = vld [vmem:[%s339_s1 + $0x18] sm:$0xff] }
   0x3   :  { %146 = vmatpush.bf16.msra.mxu1 %v237_v1  ;;  %v178_v5 = vor.u32 %v225_v2, %v175_v4  ;;  %v234_v6 = vld [vmem:[%s339_s1 + $0x28] sm:$0xff]  ;;  %v233_v7 = vld [vmem:[%s339_s1 + $0x20] sm:$0xff]  ;;  %v227_v9 = vld [vmem:[%s340_s0 + $0x14] sm:$0xf] }
   0x4   :  { %v183_v10 = vld [vmem:[%s340_s0 + $0x18] sm:$0xf0]  ;;  %v231_v11 = vld [vmem:[%s339_s1 + $0x10] sm:$0xff]  ;;  %v230_v13 = vld [vmem:[%s339_s1 + $0x8] sm:$0xff] }
   0x5   :  { %v186_v12 = vor.u32 %v227_v9, %v183_v10  ;;  %v229_v14 = vld [vmem:[%s339_s1] sm:$0xff]  ;;  %v226_v16 = vld [vmem:[%s340_s0 + $0x4] sm:$0xf0]  ;;  %v181_v17 = vld [vmem:[%s340_s0 + $0x10] sm:$0xf] }
   0x6   :  { %121 = vmatpush.bf16.msra.mxu0 %v235_v3  ;;  %239 = vmatpush.bf16.msra.mxu2 %v235_v3  ;;  %v173_v15 = vld [vmem:[%s340_s0] sm:$0xf]  ;;  %v228_v18 = vld [vmem:[%s340_s0 + $0x14] sm:$0xf0] }
   0x7   :  { %223 = vmatmul.msk.bf16.vlgmr.msra.gmra.mxu1 %vm113_vm0, %v178_v5  ;;  %v174_v19 = vor.u32 %v226_v16, %v173_v15  ;;  %v182_v20 = vor.u32 %v228_v18, %v181_v17  ;;  %v246_v23 = vld [vmem:[%s341_s2] ss:$0 sm:$0xff] }
   0xa   :  { %122 = vmatpush.bf16.msra.mxu0 %v234_v6  ;;  %240 = vmatpush.bf16.msra.mxu2 %v234_v6 }
   0xe   :  { %123 = vmatpush.bf16.msra.mxu0 %v233_v7  ;;  %241 = vmatpush.bf16.msra.mxu2 %v233_v7 }
  0x12   :  { %124 = vmatpush.bf16.msra.mxu0 %v232_v8  ;;  %242 = vmatpush.bf16.msra.mxu2 %v232_v8 }
  0x16   :  { %125 = vmatpush.bf16.msra.mxu0 %v231_v11  ;;  %243 = vmatpush.bf16.msra.mxu2 %v231_v11 }
  0x17   :  { %224 = vmatmul.msk.bf16.gmra.mxu1 %vm113_vm0, %v186_v12 }
  0x1a   :  { %126 = vmatpush.bf16.msra.mxu0 %v230_v13  ;;  %244 = vmatpush.bf16.msra.mxu2 %v230_v13 }
  0x1e   :  { %127 = vmatpush.bf16.msra.mxu0 %v229_v14  ;;  %245 = vmatpush.bf16.msra.mxu2 %v229_v14 }
  0x21   :  { %128 = vmatmul.bf16.vlgmr.msra.gmra.mxu0 %v174_v19  ;;  %133 = vmatmul.bf16.vlgmr.msra.gmra.mxu2 %v182_v20 }
  0x84   :  { %v148_v21 = vpop.f32.mrf.mxu1 }
  0x8c   :  { %v150_v22 = vpop.f32.mrf.mxu1 }
  0x94   :  { %v153_v28 = vpop.f32.mrf.mxu1 }
  0x9c   :  { %v155_v39 = vpop.f32.mrf.mxu1 }
  0x9e   :  { %v129_v24 = vpop.f32.mrf.mxu0 }
  0x9f   :  { %v130_v25 = vadd.f32 %v246_v23, %v129_v24 }
  0xa1   :  { %v149_v26 = vadd.f32 %v148_v21, %v130_v25 }
  0xa3   :  { %v158_v27 = vmax.f32 %v149_v26, 0.0 }
  0xa4   :  { %v134_v29 = vpop.f32.mrf.mxu2 }
  0xa5   :  { %163 = vst.msk [vmem:[%s342_s3] sm:$0xff] %vm162_vm1, %v158_v27  ;;  %v135_v30 = vadd.f32 %v246_v23, %v134_v29 }
  0xa6   :  { %v131_v31 = vpop.f32.mrf.mxu0 }
  0xa7   :  { %v154_v32 = vadd.f32 %v153_v28, %v135_v30  ;;  %v132_v33 = vadd.f32 %v246_v23, %v131_v31 }
  0xa9   :  { %v160_v34 = vmax.f32 %v154_v32, 0.0  ;;  %v151_v35 = vadd.f32 %v150_v22, %v132_v33 }
  0xab   :  { %165 = vst.msk [vmem:[%s342_s3 + $0x10] sm:$0xff] %vm162_vm1, %v160_v34  ;;  %v159_v36 = vmax.f32 %v151_v35, 0.0 }
  0xac   :  { %v136_v37 = vpop.f32.mrf.mxu2 }
  0xad   :  { %164 = vst.msk [vmem:[%s342_s3 + $0x8] sm:$0xff] %vm162_vm1, %v159_v36  ;;  %v137_v38 = vadd.f32 %v246_v23, %v136_v37 }
  0xaf   :  { %v156_v40 = vadd.f32 %v155_v39, %v137_v38 }
  0xb1   :  { %v161_v41 = vmax.f32 %v156_v40, 0.0 }
  0xb3   :  { %166 = vst.msk [vmem:[%s342_s3 + $0x18] sm:$0xff] %vm162_vm1, %v161_v41 }

// kernel: resnet32_forward.16
= control target key start
LH: loop header
LB: loop body
LE: loop exit
PB: predicated region body
PF: predicated region fallthrough
CT: control target
= control target key end

     0   :  { %vm41_vm0 = vcmask 130048   ;;  %vm67_vm1 = vcmask 261120   ;;  %s139_s1 = inlined_call_operand.vmem [shape: bf16[16,32], index: 1, kind: input, shape index: {}]   ;;  %s140_s0 = inlined_call_operand.vmem [shape: bf16[32,16], index: 0, kind: input, shape index: {}]   ;;  %s141_s2 = inlined_call_operand.vmem [shape: f32[1,32], index: 2, kind: input, shape index: {}]   ;;  %s142_s3 = inlined_call_operand.vmem [shape: f32[32,32], index: 3, kind: output, shape index: {}]  }
   0x1   :  { %v92_v0 = vld [vmem:[%s139_s1] sm:$0xff]  ;;  %v91_v2 = vld [vmem:[%s140_s0 + $0x8] sm:$0xff] }
   0x2   :  { %v90_v1 = vld [vmem:[%s140_s0] sm:$0xff]  ;;  %55 = vmatpush.bf16.msra.mxu0 %v92_v0  ;;  %93 = vmatpush.bf16.msra.mxu1 %v92_v0 }
   0x3   :  { %v94_v3 = vld [vmem:[%s141_s2] ss:$0 sm:$0xff] }
   0x5   :  { %88 = vmatmul.msk.bf16.vlgmr.msra.gmra.mxu0 %vm41_vm0, %v90_v1  ;;  %89 = vmatmul.msk.bf16.vlgmr.msra.gmra.mxu1 %vm41_vm0, %v91_v2 }
  0x82   :  { %v57_v4 = vpop.f32.mrf.mxu0  ;;  %v62_v5 = vpop.f32.mrf.mxu1 }
  0x83   :  { %v58_v6 = vadd.f32 %v94_v3, %v57_v4  ;;  %v63_v7 = vadd.f32 %v94_v3, %v62_v5 }
  0x85   :  { %68 = vst.msk [vmem:[%s142_s3] sm:$0xff] %vm67_vm1, %v58_v6 }
  0x86   :  { %70 = vst.msk [vmem:[%s142_s3 + $0x10] sm:$0xff] %vm67_vm1, %v63_v7 }
  0x8a   :  { %v59_v8 = vpop.f32.mrf.mxu0  ;;  %v64_v9 = vpop.f32.mrf.mxu1 }
  0x8b   :  { %v60_v10 = vadd.f32 %v94_v3, %v59_v8  ;;  %v65_v11 = vadd.f32 %v94_v3, %v64_v9 }
  0x8d   :  { %69 = vst.msk [vmem:[%s142_s3 + $0x8] sm:$0xff] %vm67_vm1, %v60_v10 }
  0x8e   :  { %71 = vst.msk [vmem:[%s142_s3 + $0x18] sm:$0xff] %vm67_vm1, %v65_v11 }

// kernel: resnet32_forward.18
= control target key start
LH: loop header
LB: loop body
LE: loop exit
PB: predicated region body
PF: predicated region fallthrough
CT: control target
= control target key end

     0   :  { %vm204_vm0 = vcmask 261120   ;;  %s567_s1 = inlined_call_operand.vmem [shape: bf16[288,32], index: 1, kind: input, shape index: {}]   ;;  %s568_s0 = inlined_call_operand.vmem [shape: bf16[32,288], index: 0, kind: input, shape index: {}]   ;;  %s569_s2 = inlined_call_operand.vmem [shape: f32[1,32], index: 2, kind: input, shape index: {}]   ;;  %s570_s3 = inlined_call_operand.vmem [shape: f32[32,32], index: 3, kind: input, shape index: {}]   ;;  %s571_s4 = inlined_call_operand.vmem [shape: f32[32,32], index: 4, kind: output, shape index: {}]  }
   0x1   :  { %v399_v0 = vld [vmem:[%s567_s1 + $0x38] sm:$0xff]  ;;  %v398_v2 = vld [vmem:[%s567_s1 + $0x30] sm:$0xff]  ;;  %v409_v3 = vld [vmem:[%s567_s1 + $0x88] sm:$0xff] }
   0x2   :  { %v407_v1 = vld [vmem:[%s567_s1 + $0x78] sm:$0xff]  ;;  %211 = vmatpush.bf16.msra.mxu0 %v399_v0  ;;  %410 = vmatpush.bf16.msra.mxu3 %v399_v0  ;;  %v406_v4 = vld [vmem:[%s567_s1 + $0x70] sm:$0xff]  ;;  %v408_v5 = vld [vmem:[%s567_s1 + $0x80] sm:$0xff] }
   0x3   :  { %230 = vmatpush.bf16.msra.mxu1 %v407_v1  ;;  %255 = vmatpush.bf16.msra.mxu2 %v409_v3  ;;  %v298_v6 = vld [vmem:[%s568_s0 + $0x8] sm:$0xf]  ;;  %v388_v7 = vld [vmem:[%s568_s0 + $0x10] sm:$0xf0]  ;;  %v396_v11 = vld [vmem:[%s567_s1 + $0x20] sm:$0xff] }
   0x4   :  { %v397_v8 = vld [vmem:[%s567_s1 + $0x28] sm:$0xff]  ;;  %v299_v10 = vor.u32 %v388_v7, %v298_v6  ;;  %v404_v12 = vld [vmem:[%s567_s1 + $0x60] sm:$0xff]  ;;  %v395_v13 = vld [vmem:[%s567_s1 + $0x18] sm:$0xff] }
   0x5   :  { %v405_v9 = vld [vmem:[%s567_s1 + $0x68] sm:$0xff]  ;;  %v403_v14 = vld [vmem:[%s567_s1 + $0x58] sm:$0xff]  ;;  %v394_v15 = vld [vmem:[%s567_s1 + $0x10] sm:$0xff] }
   0x6   :  { %212 = vmatpush.bf16.msra.mxu0 %v398_v2  ;;  %411 = vmatpush.bf16.msra.mxu3 %v398_v2  ;;  %v402_v16 = vld [vmem:[%s567_s1 + $0x50] sm:$0xff]  ;;  %v310_v17 = vld [vmem:[%s568_s0 + $0x20] sm:$0xf]  ;;  %v391_v18 = vld [vmem:[%s568_s0 + $0x28] sm:$0xf0] }
   0x7   :  { %231 = vmatpush.bf16.msra.mxu1 %v406_v4  ;;  %256 = vmatpush.bf16.msra.mxu2 %v408_v5  ;;  %v393_v19 = vld [vmem:[%s567_s1 + $0x8] sm:$0xff]  ;;  %v311_v21 = vor.u32 %v391_v18, %v310_v17  ;;  %v392_v22 = vld [vmem:[%s567_s1] sm:$0xff]  ;;  %v302_v25 = vld [vmem:[%s568_s0 + $0x18] sm:$0xf] }
   0x8   :  { %v401_v20 = vld [vmem:[%s567_s1 + $0x48] sm:$0xff]  ;;  %v290_v23 = vld [vmem:[%s568_s0] sm:$0xf]  ;;  %v390_v26 = vld [vmem:[%s568_s0 + $0x20] sm:$0xf0] }
   0x9   :  { %v387_v24 = vld [vmem:[%s568_s0 + $0x8] sm:$0xf0]  ;;  %v400_v27 = vld [vmem:[%s567_s1 + $0x40] sm:$0xff]  ;;  %v292_v29 = vld [vmem:[%s568_s0 + $0xc] sm:$0xf0]  ;;  %v303_v31 = vor.u32 %v390_v26, %v302_v25 }
   0xa   :  { %213 = vmatpush.bf16.msra.mxu0 %v397_v8  ;;  %412 = vmatpush.bf16.msra.mxu3 %v397_v8  ;;  %v386_v28 = vld [vmem:[%s568_s0 + $0x4] sm:$0xf]  ;;  %v291_v30 = vor.u32 %v387_v24, %v290_v23  ;;  %v389_v33 = vld [vmem:[%s568_s0 + $0x1c] sm:$0xf]  ;;  %v304_v34 = vld [vmem:[%s568_s0 + $0x24] sm:$0xf0] }
   0xb   :  { %232 = vmatpush.bf16.msra.mxu1 %v405_v9  ;;  %384 = vmatmul.msk.bf16.vlgmr.msra.gmra.mxu2 %vm204_vm0, %v299_v10  ;;  %v295_v32 = vor.u32 %v386_v28, %v292_v29  ;;  %v307_v35 = vor.u32 %v389_v33, %v304_v34  ;;  %v418_v37 = vld [vmem:[%s569_s2] ss:$0 sm:$0xff]  ;;  %v269_v52 = vld [vmem:[%s570_s3 + $0x8] sm:$0xff]  ;;  %v270_v60 = vld [vmem:[%s570_s3 + $0x10] sm:$0xff] }
   0xc   :  { %v268_v42 = vld [vmem:[%s570_s3] sm:$0xff]  ;;  %v271_v5 = vld [vmem:[%s570_s3 + $0x18] sm:$0xff] }
   0xe   :  { %214 = vmatpush.bf16.msra.mxu0 %v396_v11  ;;  %413 = vmatpush.bf16.msra.mxu3 %v396_v11 }
   0xf   :  { %233 = vmatpush.bf16.msra.mxu1 %v404_v12 }
  0x12   :  { %215 = vmatpush.bf16.msra.mxu0 %v395_v13  ;;  %414 = vmatpush.bf16.msra.mxu3 %v395_v13 }
  0x13   :  { %234 = vmatpush.bf16.msra.mxu1 %v403_v14 }
  0x16   :  { %216 = vmatpush.bf16.msra.mxu0 %v394_v15  ;;  %415 = vmatpush.bf16.msra.mxu3 %v394_v15 }
  0x17   :  { %235 = vmatpush.bf16.msra.mxu1 %v402_v16 }
  0x1a   :  { %217 = vmatpush.bf16.msra.mxu0 %v393_v19  ;;  %416 = vmatpush.bf16.msra.mxu3 %v393_v19 }
  0x1b   :  { %236 = vmatpush.bf16.msra.mxu1 %v401_v20  ;;  %385 = vmatmul.msk.bf16.gmra.mxu2 %vm204_vm0, %v311_v21 }
  0x1e   :  { %218 = vmatpush.bf16.msra.mxu0 %v392_v22  ;;  %417 = vmatpush.bf16.msra.mxu3 %v392_v22 }
  0x1f   :  { %237 = vmatpush.bf16.msra.mxu1 %v400_v27 }
  0x21   :  { %219 = vmatmul.bf16.vlgmr.msra.gmra.mxu0 %v291_v30  ;;  %224 = vmatmul.bf16.vlgmr.msra.gmra.mxu3 %v303_v31 }
  0x22   :  { %238 = vmatmul.bf16.vlgmr.msra.gmra.mxu1 %v295_v32 }
  0x32   :  { %243 = vmatmul.bf16.gmra.mxu1 %v307_v35 }
  0x8e   :  { %v258_v36 = vpop.f32.mrf.mxu2 }
  0x96   :  { %v260_v45 = vpop.f32.mrf.mxu2 }
  0x9e   :  { %v220_v38 = vpop.f32.mrf.mxu0  ;;  %v263_v57 = vpop.f32.mrf.mxu2 }
  0x9f   :  { %v221_v39 = vadd.f32 %v418_v37, %v220_v38  ;;  %v239_v40 = vpop.f32.mrf.mxu1 }
  0xa1   :  { %v240_v41 = vadd.f32 %v239_v40, %v221_v39 }
  0xa3   :  { %v259_v43 = vadd.f32 %v258_v36, %v240_v41 }
  0xa4   :  { %v225_v50 = vpop.f32.mrf.mxu3 }
  0xa5   :  { %v272_v44 = vadd.f32 %v268_v42, %v259_v43  ;;  %v226_v54 = vadd.f32 %v418_v37, %v225_v50 }
  0xa6   :  { %v222_v46 = vpop.f32.mrf.mxu0  ;;  %v265_v4 = vpop.f32.mrf.mxu2 }
  0xa7   :  { %v276_v47 = vmax.f32 %v272_v44, 0.0  ;;  %v223_v48 = vadd.f32 %v418_v37, %v222_v46  ;;  %v241_v49 = vpop.f32.mrf.mxu1 }
  0xa9   :  { %280 = vst.msk [vmem:[%s571_s4] sm:$0xff] %vm204_vm0, %v276_v47  ;;  %v242_v51 = vadd.f32 %v241_v49, %v223_v48 }
  0xab   :  { %v261_v53 = vadd.f32 %v260_v45, %v242_v51 }
  0xac   :  { %v227_v62 = vpop.f32.mrf.mxu3 }
  0xad   :  { %v273_v55 = vadd.f32 %v269_v52, %v261_v53  ;;  %v228_v0 = vadd.f32 %v418_v37, %v227_v62 }
  0xaf   :  { %v277_v56 = vmax.f32 %v273_v55, 0.0  ;;  %v244_v58 = vpop.f32.mrf.mxu1 }
  0xb0   :  { %v245_v59 = vadd.f32 %v244_v58, %v226_v54 }
  0xb1   :  { %281 = vst.msk [vmem:[%s571_s4 + $0x8] sm:$0xff] %vm204_vm0, %v277_v56 }
  0xb2   :  { %v264_v61 = vadd.f32 %v263_v57, %v245_v59 }
  0xb4   :  { %v274_v63 = vadd.f32 %v270_v60, %v264_v61 }
  0xb6   :  { %v278_v1 = vmax.f32 %v274_v63, 0.0 }
  0xb7   :  { %v246_v2 = vpop.f32.mrf.mxu1 }
  0xb8   :  { %282 = vst.msk [vmem:[%s571_s4 + $0x10] sm:$0xff] %vm204_vm0, %v278_v1  ;;  %v247_v3 = vadd.f32 %v246_v2, %v228_v0 }
  0xba   :  { %v266_v6 = vadd.f32 %v265_v4, %v247_v3 }
  0xbc   :  { %v275_v7 = vadd.f32 %v271_v5, %v266_v6 }
  0xbe   :  { %v279_v8 = vmax.f32 %v275_v7, 0.0 }
  0xc0   :  { %283 = vst.msk [vmem:[%s571_s4 + $0x18] sm:$0xff] %vm204_vm0, %v279_v8 }

// kernel: resnet32_forward.20
= control target key start
LH: loop header
LB: loop body
LE: loop exit
PB: predicated region body
PF: predicated region fallthrough
CT: control target
= control target key end

     0   :  { %vm175_vm0 = vcmask 261120   ;;  %vm219_vm1 = vcmask 523264   ;;  %s403_s1 = inlined_call_operand.vmem [shape: bf16[288,64], index: 1, kind: input, shape index: {}]   ;;  %s404_s0 = inlined_call_operand.vmem [shape: bf16[8,288], index: 0, kind: input, shape index: {}]   ;;  %s405_s2 = inlined_call_operand.vmem [shape: f32[1,64], index: 2, kind: input, shape index: {}]   ;;  %s406_s3 = inlined_call_operand.vmem [shape: f32[8,64], index: 3, kind: output, shape index: {}]  }
   0x1   :  { %v305_v0 = vld [vmem:[%s403_s1 + $0x38] sm:$0xff]  ;;  %v304_v2 = vld [vmem:[%s403_s1 + $0x30] sm:$0xff]  ;;  %v315_v4 = vld [vmem:[%s403_s1 + $0x88] sm:$0xff] }
   0x2   :  { %v313_v1 = vld [vmem:[%s403_s1 + $0x78] sm:$0xff]  ;;  %179 = vmatpush.bf16.msra.mxu0 %v305_v0  ;;  %v312_v3 = vld [vmem:[%s403_s1 + $0x70] sm:$0xff]  ;;  %211 = vmatpush.bf16.msra.mxu2 %v315_v4  ;;  %v314_v5 = vld [vmem:[%s403_s1 + $0x80] sm:$0xff] }
   0x3   :  { %192 = vmatpush.bf16.msra.mxu1 %v313_v1  ;;  %v16_v6 = vld [vmem:[%s404_s0 + $0x8] sm:$0xf]  ;;  %v302_v11 = vld [vmem:[%s403_s1 + $0x20] sm:$0xff]  ;;  %v301_v13 = vld [vmem:[%s403_s1 + $0x18] sm:$0xff] }
   0x4   :  { %v61_v7 = vunpack.c.l.b16 %v16_v6  ;;  %v303_v8 = vld [vmem:[%s403_s1 + $0x28] sm:$0xff]  ;;  %v310_v12 = vld [vmem:[%s403_s1 + $0x60] sm:$0xff]  ;;  %v309_v14 = vld [vmem:[%s403_s1 + $0x58] sm:$0xff] }
   0x5   :  { %v311_v9 = vld [vmem:[%s403_s1 + $0x68] sm:$0xff]  ;;  %v300_v15 = vld [vmem:[%s403_s1 + $0x10] sm:$0xff]  ;;  %v15_v19 = vld [vmem:[%s404_s0] sm:$0xff] }
   0x6   :  { %180 = vmatpush.bf16.msra.mxu0 %v304_v2  ;;  %v64_v10 = vpack.c.b16 %v61_v7, %v61_v7  ;;  %212 = vmatpush.bf16.msra.mxu2 %v314_v5  ;;  %v308_v16 = vld [vmem:[%s403_s1 + $0x50] sm:$0xff]  ;;  %v299_v17 = vld [vmem:[%s403_s1 + $0x8] sm:$0xff]  ;;  %v59_v20 = vunpack.c.l.b16 %v15_v19  ;;  %v60_v21 = vunpack.c.h.b16 %v15_v19  ;;  %v298_v22 = vld [vmem:[%s403_s1] sm:$0xff] }
   0x7   :  { %193 = vmatpush.bf16.msra.mxu1 %v312_v3  ;;  %v307_v18 = vld [vmem:[%s403_s1 + $0x48] sm:$0xff]  ;;  %v306_v23 = vld [vmem:[%s403_s1 + $0x40] sm:$0xff] }
   0x8   :  { %v62_v24 = vpack.c.b16 %v59_v20, %v59_v20  ;;  %v63_v25 = vpack.c.b16 %v60_v21, %v60_v21  ;;  %v316_v28 = vld [vmem:[%s405_s2] ss:$0 sm:$0xff] }
   0x9   :  { %297 = vmatmul.msk.bf16.vlgmr.msra.gmra.mxu2 %vm175_vm0, %v64_v10 }
   0xa   :  { %181 = vmatpush.bf16.msra.mxu0 %v303_v8 }
   0xb   :  { %194 = vmatpush.bf16.msra.mxu1 %v311_v9 }
   0xe   :  { %182 = vmatpush.bf16.msra.mxu0 %v302_v11 }
   0xf   :  { %195 = vmatpush.bf16.msra.mxu1 %v310_v12 }
  0x12   :  { %183 = vmatpush.bf16.msra.mxu0 %v301_v13 }
  0x13   :  { %196 = vmatpush.bf16.msra.mxu1 %v309_v14 }
  0x16   :  { %184 = vmatpush.bf16.msra.mxu0 %v300_v15 }
  0x17   :  { %197 = vmatpush.bf16.msra.mxu1 %v308_v16 }
  0x1a   :  { %185 = vmatpush.bf16.msra.mxu0 %v299_v17 }
  0x1b   :  { %198 = vmatpush.bf16.msra.mxu1 %v307_v18 }
  0x1e   :  { %186 = vmatpush.bf16.msra.mxu0 %v298_v22 }
  0x1f   :  { %199 = vmatpush.bf16.msra.mxu1 %v306_v23 }
  0x21   :  { %187 = vmatmul.bf16.vlgmr.msra.gmra.mxu0 %v62_v24 }
  0x22   :  { %200 = vmatmul.bf16.vlgmr.msra.gmra.mxu1 %v63_v25 }
  0x8c   :  { %v214_v26 = vpop.f32.mrf.mxu2 }
  0x94   :  { %v216_v27 = vpop.f32.mrf.mxu2 }
  0x9e   :  { %v188_v29 = vpop.f32.mrf.mxu0 }
  0x9f   :  { %v201_v30 = vpop.f32.mrf.mxu1  ;;  %v189_v31 = vadd.f32 %v316_v28, %v188_v29 }
  0xa1   :  { %v202_v32 = vadd.f32 %v201_v30, %v189_v31 }
  0xa3   :  { %v215_v33 = vadd.f32 %v214_v26, %v202_v32 }
  0xa5   :  { %v218_v34 = vmax.f32 %v215_v33, 0.0 }
  0xa6   :  { %v190_v35 = vpop.f32.mrf.mxu0 }
  0xa7   :  { %v203_v36 = vpop.f32.mrf.mxu1  ;;  %220 = vst.msk [vmem:[%s406_s3] sm:$0xff] %vm219_vm1, %v218_v34 }

// kernel: resnet32_forward.19
= control target key start
LH: loop header
LB: loop body
LE: loop exit
PB: predicated region body
PF: predicated region fallthrough
CT: control target
= control target key end

     0   :  { %vm36_vm0 = vcmask 261120   ;;  %vm53_vm1 = vcmask 523264   ;;  %s106_s1 = inlined_call_operand.vmem [shape: bf16[32,64], index: 1, kind: input, shape index: {}]   ;;  %s107_s2 = inlined_call_operand.vmem [shape: f32[1,64], index: 2, kind: input, shape index: {}]   ;;  %s108_s0 = inlined_call_operand.vmem [shape: bf16[8,32], index: 0, kind: input, shape index: {}]   ;;  %s109_s3 = inlined_call_operand.vmem [shape: f32[8,64], index: 3, kind: output, shape index: {}]  }
   0x1   :  { %v69_v0 = vld [vmem:[%s106_s1 + $0x8] sm:$0xff]  ;;  %v68_v1 = vld [vmem:[%s106_s1] sm:$0xff] }
   0x2   :  { %46 = vmatpush.bf16.msra.mxu0 %v69_v0  ;;  %v15_v2 = vld [vmem:[%s108_s0] sm:$0xf] }
   0x3   :  { %v70_v3 = vld [vmem:[%s107_s2] ss:$0 sm:$0xff] }
   0x6   :  { %47 = vmatpush.bf16.msra.mxu0 %v68_v1 }
   0x9   :  { %67 = vmatmul.msk.bf16.vlgmr.msra.gmra.mxu0 %vm36_vm0, %v15_v2 }
  0x86   :  { %v49_v4 = vpop.f32.mrf.mxu0 }
  0x87   :  { %v50_v5 = vadd.f32 %v70_v3, %v49_v4 }
  0x89   :  { %54 = vst.msk [vmem:[%s109_s3] sm:$0xff] %vm53_vm1, %v50_v5 }
  0x8e   :  { %v51_v6 = vpop.f32.mrf.mxu0 }

// kernel: resnet32_forward.22
= control target key start
LH: loop header
LB: loop body
LE: loop exit
PB: predicated region body
PF: predicated region fallthrough
CT: control target
= control target key end

     0   :  { %vm52_vm0 = vcmask 523264   ;;  %vm70_vm1 = vcmask 519168   ;;  %s139_s1 = inlined_call_operand.vmem [shape: bf16[64,64], index: 1, kind: input, shape index: {}]   ;;  %s140_s2 = inlined_call_operand.vmem [shape: f32[1,64], index: 2, kind: input, shape index: {}]   ;;  %s141_s0 = inlined_call_operand.vmem [shape: bf16[8,64], index: 0, kind: input, shape index: {}]   ;;  %s142_s3 = inlined_call_operand.vmem [shape: bf16[8,64], index: 3, kind: output, shape index: {}]  }
   0x1   :  { %v96_v0 = vld [vmem:[%s139_s1 + $0x18] sm:$0xff]  ;;  %v95_v1 = vld [vmem:[%s139_s1 + $0x10] sm:$0xff]  ;;  %v94_v2 = vld [vmem:[%s139_s1 + $0x8] sm:$0xff] }
   0x2   :  { %60 = vmatpush.bf16.msra.mxu0 %v96_v0  ;;  %v93_v3 = vld [vmem:[%s139_s1] sm:$0xff] }
   0x3   :  { %v15_v4 = vld [vmem:[%s141_s0] sm:$0xf] }
   0x4   :  { %v97_v5 = vld [vmem:[%s140_s2] ss:$0 sm:$0xff] }
   0x6   :  { %61 = vmatpush.bf16.msra.mxu0 %v95_v1 }
   0xa   :  { %62 = vmatpush.bf16.msra.mxu0 %v94_v2 }
   0xe   :  { %63 = vmatpush.bf16.msra.mxu0 %v93_v3 }
  0x11   :  { %92 = vmatmul.msk.bf16.vlgmr.msra.gmra.mxu0 %vm52_vm0, %v15_v4 }
  0x8e   :  { %v65_v6 = vpop.f32.mrf.mxu0 }
  0x8f   :  { %v66_v7 = vadd.f32 %v97_v5, %v65_v6 }
  0x91   :  { %v69_v8 = vpack.c.bf16 %v66_v7, %v66_v7 }
  0x93   :  { %71 = vst.msk [vmem:[%s142_s3] sm:$0xf] %vm70_vm1, %v69_v8 }
  0x96   :  { %v67_v9 = vpop.f32.mrf.mxu0 }

// kernel: resnet32_forward.21
= control target key start
LH: loop header
LB: loop body
LE: loop exit
PB: predicated region body
PF: predicated region fallthrough
CT: control target
= control target key end

     0   :  { %vm330_vm0 = vcmask 523264   ;;  %s742_s1 = inlined_call_operand.vmem [shape: bf16[576,64], index: 1, kind: input, shape index: {}]   ;;  %s743_s2 = inlined_call_operand.vmem [shape: f32[1,64], index: 2, kind: input, shape index: {}]   ;;  %s744_s0 = inlined_call_operand.vmem [shape: bf16[8,576], index: 0, kind: input, shape index: {}]   ;;  %s745_s3 = inlined_call_operand.vmem [shape: f32[8,64], index: 3, kind: input, shape index: {}]   ;;  %s746_s4 = inlined_call_operand.vmem [shape: f32[8,64], index: 4, kind: output, shape index: {}]  }
   0x1   :  { %v559_v0 = vld [vmem:[%s742_s1 + $0x38] sm:$0xff]  ;;  %v558_v4 = vld [vmem:[%s742_s1 + $0x30] sm:$0xff]  ;;  %v557_v8 = vld [vmem:[%s742_s1 + $0x28] sm:$0xff] }
   0x2   :  { %v575_v1 = vld [vmem:[%s742_s1 + $0xb8] sm:$0xff]  ;;  %334 = vmatpush.bf16.msra.mxu0 %v559_v0  ;;  %v574_v5 = vld [vmem:[%s742_s1 + $0xb0] sm:$0xff]  ;;  %v573_v9 = vld [vmem:[%s742_s1 + $0xa8] sm:$0xff] }
   0x3   :  { %v583_v2 = vld [vmem:[%s742_s1 + $0xf8] sm:$0xff]  ;;  %360 = vmatpush.bf16.msra.mxu2 %v575_v1  ;;  %v582_v6 = vld [vmem:[%s742_s1 + $0xf0] sm:$0xff]  ;;  %v581_v10 = vld [vmem:[%s742_s1 + $0xe8] sm:$0xff] }
   0x4   :  { %v567_v3 = vld [vmem:[%s742_s1 + $0x78] sm:$0xff]  ;;  %373 = vmatpush.bf16.msra.mxu3 %v583_v2  ;;  %v566_v7 = vld [vmem:[%s742_s1 + $0x70] sm:$0xff]  ;;  %v565_v11 = vld [vmem:[%s742_s1 + $0x68] sm:$0xff] }
   0x5   :  { %347 = vmatpush.bf16.msra.mxu1 %v567_v3  ;;  %v556_v12 = vld [vmem:[%s742_s1 + $0x20] sm:$0xff]  ;;  %v555_v16 = vld [vmem:[%s742_s1 + $0x18] sm:$0xff]  ;;  %v554_v20 = vld [vmem:[%s742_s1 + $0x10] sm:$0xff] }
   0x6   :  { %335 = vmatpush.bf16.msra.mxu0 %v558_v4  ;;  %v572_v13 = vld [vmem:[%s742_s1 + $0xa0] sm:$0xff]  ;;  %v571_v17 = vld [vmem:[%s742_s1 + $0x98] sm:$0xff]  ;;  %v570_v21 = vld [vmem:[%s742_s1 + $0x90] sm:$0xff] }
   0x7   :  { %361 = vmatpush.bf16.msra.mxu2 %v574_v5  ;;  %v580_v14 = vld [vmem:[%s742_s1 + $0xe0] sm:$0xff]  ;;  %v579_v18 = vld [vmem:[%s742_s1 + $0xd8] sm:$0xff]  ;;  %v578_v22 = vld [vmem:[%s742_s1 + $0xd0] sm:$0xff] }
   0x8   :  { %374 = vmatpush.bf16.msra.mxu3 %v582_v6  ;;  %v564_v15 = vld [vmem:[%s742_s1 + $0x60] sm:$0xff]  ;;  %v563_v19 = vld [vmem:[%s742_s1 + $0x58] sm:$0xff]  ;;  %v562_v23 = vld [vmem:[%s742_s1 + $0x50] sm:$0xff] }
   0x9   :  { %348 = vmatpush.bf16.msra.mxu1 %v566_v7  ;;  %v553_v24 = vld [vmem:[%s742_s1 + $0x8] sm:$0xff]  ;;  %v18_v26 = vld [vmem:[%s744_s0] sm:$0xff]  ;;  %v587_v38 = vld [vmem:[%s742_s1 + $0x118] sm:$0xff] }
   0xa   :  { %336 = vmatpush.bf16.msra.mxu0 %v557_v8  ;;  %v569_v25 = vld [vmem:[%s742_s1 + $0x88] sm:$0xff]  ;;  %v100_v30 = vunpack.c.l.b16 %v18_v26  ;;  %v552_v32 = vld [vmem:[%s742_s1] sm:$0xff]  ;;  %v101_v35 = vunpack.c.h.b16 %v18_v26  ;;  %v586_v43 = vld [vmem:[%s742_s1 + $0x110] sm:$0xff] }
   0xb   :  { %362 = vmatpush.bf16.msra.mxu2 %v573_v9  ;;  %v19_v27 = vld [vmem:[%s744_s0 + $0x8] sm:$0xff]  ;;  %v568_v33 = vld [vmem:[%s742_s1 + $0x80] sm:$0xff]  ;;  %v20_v45 = vld [vmem:[%s744_s0 + $0x10] sm:$0xf] }
   0xc   :  { %375 = vmatpush.bf16.msra.mxu3 %v581_v10  ;;  %v577_v28 = vld [vmem:[%s742_s1 + $0xc8] sm:$0xff]  ;;  %v102_v31 = vunpack.c.l.b16 %v19_v27  ;;  %v103_v34 = vunpack.c.h.b16 %v19_v27  ;;  %v576_v36 = vld [vmem:[%s742_s1 + $0xc0] sm:$0xff]  ;;  %v105_v39 = vpack.c.b16 %v100_v30, %v100_v30  ;;  %v106_v42 = vpack.c.b16 %v101_v35, %v101_v35 }
   0xd   :  { %349 = vmatpush.bf16.msra.mxu1 %v565_v11  ;;  %v561_v29 = vld [vmem:[%s742_s1 + $0x48] sm:$0xff]  ;;  %v560_v37 = vld [vmem:[%s742_s1 + $0x40] sm:$0xff]  ;;  %v104_v47 = vunpack.c.l.b16 %v20_v45 }
   0xe   :  { %337 = vmatpush.bf16.msra.mxu0 %v556_v12  ;;  %v107_v40 = vpack.c.b16 %v102_v31, %v102_v31  ;;  %v108_v41 = vpack.c.b16 %v103_v34, %v103_v34  ;;  %v585_v44 = vld [vmem:[%s742_s1 + $0x108] sm:$0xff]  ;;  %v584_v46 = vld [vmem:[%s742_s1 + $0x100] sm:$0xff] }
   0xf   :  { %363 = vmatpush.bf16.msra.mxu2 %v572_v13  ;;  %v109_v48 = vpack.c.b16 %v104_v47, %v104_v47  ;;  %v588_v50 = vld [vmem:[%s743_s2] ss:$0 sm:$0xff] }
  0x10   :  { %376 = vmatpush.bf16.msra.mxu3 %v580_v14  ;;  %v399_v63 = vld [vmem:[%s745_s3] sm:$0xff] }
  0x11   :  { %350 = vmatpush.bf16.msra.mxu1 %v564_v15 }
  0x12   :  { %338 = vmatpush.bf16.msra.mxu0 %v555_v16 }
  0x13   :  { %364 = vmatpush.bf16.msra.mxu2 %v571_v17 }
  0x14   :  { %377 = vmatpush.bf16.msra.mxu3 %v579_v18 }
  0x15   :  { %351 = vmatpush.bf16.msra.mxu1 %v563_v19 }
  0x16   :  { %339 = vmatpush.bf16.msra.mxu0 %v554_v20 }
  0x17   :  { %365 = vmatpush.bf16.msra.mxu2 %v570_v21 }
  0x18   :  { %378 = vmatpush.bf16.msra.mxu3 %v578_v22 }
  0x19   :  { %352 = vmatpush.bf16.msra.mxu1 %v562_v23 }
  0x1a   :  { %340 = vmatpush.bf16.msra.mxu0 %v553_v24 }
  0x1b   :  { %366 = vmatpush.bf16.msra.mxu2 %v569_v25 }
  0x1c   :  { %379 = vmatpush.bf16.msra.mxu3 %v577_v28 }
  0x1d   :  { %353 = vmatpush.bf16.msra.mxu1 %v561_v29 }
  0x1e   :  { %341 = vmatpush.bf16.msra.mxu0 %v552_v32 }
  0x1f   :  { %367 = vmatpush.bf16.msra.mxu2 %v568_v33 }
  0x20   :  { %380 = vmatpush.bf16.msra.mxu3 %v576_v36 }
  0x21   :  { %354 = vmatpush.bf16.msra.mxu1 %v560_v37  ;;  %342 = vmatmul.bf16.vlgmr.msra.gmra.mxu0 %v105_v39 }
  0x22   :  { %390 = vmatpush.bf16.msrb.mxu0 %v587_v38  ;;  %368 = vmatmul.bf16.vlgmr.msra.gmra.mxu2 %v107_v40 }
  0x23   :  { %381 = vmatmul.bf16.vlgmr.msra.gmra.mxu3 %v108_v41 }
  0x24   :  { %355 = vmatmul.bf16.vlgmr.msra.gmra.mxu1 %v106_v42 }
  0x26   :  { %391 = vmatpush.bf16.msrb.mxu0 %v586_v43 }
  0x2a   :  { %392 = vmatpush.bf16.msrb.mxu0 %v585_v44 }
  0x2e   :  { %393 = vmatpush.bf16.msrb.mxu0 %v584_v46 }
  0x31   :  { %551 = vmatmul.msk.bf16.vlgmr.msrb.gmra.mxu0 %vm330_vm0, %v109_v48 }
  0x9e   :  { %v343_v49 = vpop.f32.mrf.mxu0 }
  0x9f   :  { %v344_v52 = vadd.f32 %v588_v50, %v343_v49 }
  0xa1   :  { %v356_v51 = vpop.f32.mrf.mxu1 }
  0xa2   :  { %v357_v56 = vadd.f32 %v356_v51, %v344_v52 }
  0xa5   :  { %v369_v53 = vpop.f32.mrf.mxu2 }
  0xa6   :  { %v382_v54 = vpop.f32.mrf.mxu3  ;;  %v345_v55 = vpop.f32.mrf.mxu0  ;;  %v370_v58 = vadd.f32 %v369_v53, %v357_v56 }
  0xa8   :  { %v383_v60 = vadd.f32 %v382_v54, %v370_v58 }
  0xa9   :  { %v358_v57 = vpop.f32.mrf.mxu1 }
  0xad   :  { %v371_v59 = vpop.f32.mrf.mxu2 }
  0xae   :  { %v384_v61 = vpop.f32.mrf.mxu3  ;;  %v395_v62 = vpop.f32.mrf.mxu0 }
  0xaf   :  { %v396_v0 = vadd.f32 %v395_v62, %v383_v60 }
  0xb1   :  { %v400_v1 = vadd.f32 %v399_v63, %v396_v0 }
  0xb3   :  { %v401_v2 = vmax.f32 %v400_v1, 0.0 }
  0xb5   :  { %402 = vst.msk [vmem:[%s746_s4] sm:$0xff] %vm330_vm0, %v401_v2 }
  0xb6   :  { %v397_v3 = vpop.f32.mrf.mxu0 }

// kernel: resnet32_forward.23
= control target key start
LH: loop header
LB: loop body
LE: loop exit
PB: predicated region body
PF: predicated region fallthrough
CT: control target
= control target key end

     0   :  { %vm52_vm0 = vcmask 523264   ;;  %s138_s1 = inlined_call_operand.vmem [shape: bf16[64,128], index: 1, kind: input, shape index: {}]   ;;  %s139_s2 = inlined_call_operand.vmem [shape: f32[1,128], index: 2, kind: input, shape index: {}]   ;;  %s140_s0 = inlined_call_operand.vmem [shape: bf16[8,64], index: 0, kind: input, shape index: {}]   ;;  %s141_s3 = inlined_call_operand.vmem [shape: bf16[8,128], index: 3, kind: output, shape index: {}]  }
   0x1   :  { %v95_v0 = vld [vmem:[%s138_s1 + $0x18] sm:$0xff]  ;;  %v94_v1 = vld [vmem:[%s138_s1 + $0x10] sm:$0xff]  ;;  %v93_v2 = vld [vmem:[%s138_s1 + $0x8] sm:$0xff] }
   0x2   :  { %60 = vmatpush.bf16.msra.mxu0 %v95_v0  ;;  %v92_v3 = vld [vmem:[%s138_s1] sm:$0xff] }
   0x3   :  { %v15_v4 = vld [vmem:[%s140_s0] sm:$0xf] }
   0x4   :  { %v96_v5 = vld [vmem:[%s139_s2] ss:$0 sm:$0xff] }
   0x6   :  { %61 = vmatpush.bf16.msra.mxu0 %v94_v1 }
   0xa   :  { %62 = vmatpush.bf16.msra.mxu0 %v93_v2 }
   0xe   :  { %63 = vmatpush.bf16.msra.mxu0 %v92_v3 }
  0x11   :  { %91 = vmatmul.msk.bf16.vlgmr.msra.gmra.mxu0 %vm52_vm0, %v15_v4 }
  0x8e   :  { %v65_v6 = vpop.f32.mrf.mxu0 }
  0x8f   :  { %v66_v7 = vadd.f32 %v96_v5, %v65_v6 }
  0x91   :  { %v69_v8 = vpack.c.bf16 %v66_v7, %v66_v7 }
  0x93   :  { %70 = vst [vmem:[%s141_s3] sm:$0xf] %v69_v8 }
  0x96   :  { %v67_v9 = vpop.f32.mrf.mxu0 }

// kernel: resnet32_forward.24
= control target key start
LH: loop header
LB: loop body
LE: loop exit
PB: predicated region body
PF: predicated region fallthrough
CT: control target
= control target key end

     0   :  { %vm22_vm0 = vcmask 523264   ;;  %vm61_vm1 = vcmask 27648   ;;  %vm94_vm2 = vcmask 1041408   ;;  %vm90_vm3 = vcmask 31744   ;;  %s208_s1 = inlined_call_operand.vmem [shape: bf16[2,4,64], index: 1, kind: input, shape index: {}]   ;;  %s209_s0 = inlined_call_operand.vmem [shape: bf16[2,4,64], index: 0, kind: input, shape index: {}]   ;;  %s210_s2 = inlined_call_operand.vmem [shape: bf16[2,4,64], index: 2, kind: input, shape index: {}]   ;;  %s211_s3 = inlined_call_operand.vmem [shape: f32[2,4,64], index: 3, kind: input, shape index: {}]   ;;  %s212_s4 = inlined_call_operand.vmem [shape: f32[2,4,64], index: 4, kind: output, shape index: {}]  }
   0x1   :  { %v20_v0 = vld [vmem:[%s208_s1] sm:$0x3]  ;;  %v21_v1 = vld [vmem:[%s208_s1 + $0x2] sm:$0x3]  ;;  %vm130_vm4 = vcmask 519168  }
   0x2   :  { %v27_v2 = vsel %vm22_vm0, %v20_v0, 0  ;;  %v46_v3 = vsel %vm22_vm0, %v21_v1, 0  ;;  %v18_v4 = vld [vmem:[%s209_s0] sm:$0x3]  ;;  %v19_v5 = vld [vmem:[%s209_s0 + $0x2] sm:$0x3] }
   0x3   :  { %36 = vmatpush.bf16.xpose.msra.mxu0 %v27_v2  ;;  %55 = vmatpush.bf16.xpose.msra.mxu1 %v46_v3  ;;  %v86_v22 = vld [vmem:[%s210_s2] sm:$0x3]  ;;  %v87_v24 = vld [vmem:[%s210_s2 + $0x2] sm:$0x3]  ;;  %v89_v37 = vld [vmem:[%s211_s3 + $0x4] sm:$0xf] }
   0x4   :  { %v96_v23 = vsel %vm94_vm2, %v86_v22, 0  ;;  %v115_v25 = vsel %vm94_vm2, %v87_v24, 0  ;;  %v88_v34 = vld [vmem:[%s211_s3] sm:$0xf] }
   0x5   :  { %105 = vmatpush.bf16.msra.mxu2 %v96_v23  ;;  %124 = vmatpush.bf16.msra.mxu3 %v115_v25 }
   0xa   :  { %137 = vmatmul.msk.bf16.vlgmr.msra.gmra.mxu0 %vm22_vm0, %v18_v4  ;;  %138 = vmatmul.msk.bf16.vlgmr.msra.gmra.mxu1 %vm22_vm0, %v19_v5 }
  0x87   :  { %v38_v6 = vpop.f32.mrf.mxu0  ;;  %v57_v7 = vpop.f32.mrf.mxu1 }
  0x88   :  { %v62_v8 = vsel %vm61_vm1, %v38_v6, -inf  ;;  %v65_v9 = vsel %vm61_vm1, %v57_v7, -inf }
  0x89   :  { %63 = vmax.xlane.f32.xlu0 %v62_v8 }
  0x8f   :  { %v40_v10 = vpop.f32.mrf.mxu0  ;;  %v59_v11 = vpop.f32.mrf.mxu1 }
  0x91   :  { %66 = vmax.xlane.f32.xlu0 %v65_v9 }
  0xfc   :  { %v64_v12 = vpop.xlane.xlu0 %63 }
  0xfd   :  { %v68_v13 = vsub.f32 %v38_v6, %v64_v12 }
  0xff   :  { %v70_v14 = vmul.f32 1.442695, %v68_v13 }
 0x101   :  { %141 = vpow2.f32 %v70_v14 }
 0x104   :  { %v67_v15 = vpop.xlane.xlu0 %66 }
 0x105   :  { %v69_v16 = vsub.f32 %v57_v7, %v67_v15 }
 0x107   :  { %v142_v17 = vpop.eup %141  ;;  %v72_v18 = vmul.f32 1.442695, %v69_v16 }
 0x108   :  { %v74_v19 = vsel %vm61_vm1, %v142_v17, 0.0 }
 0x109   :  { %143 = vpow2.f32 %v72_v18  ;;  %75 = vadd.xlane.f32.xlu1 %v74_v19 }
 0x10f   :  { %v144_v20 = vpop.eup %143 }
 0x110   :  { %v77_v21 = vsel %vm61_vm1, %v144_v20, 0.0 }
 0x111   :  { %78 = vadd.xlane.f32.xlu1 %v77_v21 }
 0x17c   :  { %v76_v26 = vpop.xlane.xlu1 %75 }
 0x17d   :  { %145 = vrcp.f32 %v76_v26 }
 0x183   :  { %v146_v27 = vpop.eup %145 }
 0x184   :  { %v79_v28 = vpop.xlane.xlu1 %78  ;;  %v82_v29 = vmul.f32 %v146_v27, %v142_v17 }
 0x185   :  { %147 = vrcp.f32 %v79_v28 }
 0x186   :  { %v84_v30 = vpack.c.bf16 %v82_v29, %v82_v29 }
 0x188   :  { %139 = vmatmul.msk.bf16.vlgmr.msra.gmra.mxu2 %vm90_vm3, %v84_v30 }
 0x18b   :  { %v148_v31 = vpop.eup %147 }
 0x18c   :  { %v83_v32 = vmul.f32 %v148_v31, %v144_v20 }
 0x18e   :  { %v85_v33 = vpack.c.bf16 %v83_v32, %v83_v32 }
 0x190   :  { %140 = vmatmul.msk.bf16.vlgmr.msra.gmra.mxu3 %vm90_vm3, %v85_v33 }
 0x20b   :  { %v107_v35 = vpop.f32.mrf.mxu2 }
 0x20c   :  { %v108_v36 = vadd.f32 %v107_v35, %v88_v34 }
 0x20e   :  { %131 = vst.msk [vmem:[%s212_s4] sm:$0xf] %vm130_vm4, %v108_v36 }
 0x213   :  { %v109_v38 = vpop.f32.mrf.mxu2  ;;  %v126_v39 = vpop.f32.mrf.mxu3 }
 0x214   :  { %v127_v40 = vadd.f32 %v126_v39, %v89_v37 }
 0x216   :  { %132 = vst.msk [vmem:[%s212_s4 + $0x4] sm:$0xf] %vm130_vm4, %v127_v40 }
 0x21b   :  { %v128_v41 = vpop.f32.mrf.mxu3 }

// kernel: resnet32_forward.25
= control target key start
LH: loop header
LB: loop body
LE: loop exit
PB: predicated region body
PF: predicated region fallthrough
CT: control target
= control target key end

     0   :  { %vm18_vm0 = vcmask 519168   ;;  %v174_v3 = vmov 4.0   ;;  %s220_s0 = inlined_call_operand.vmem [shape: f32[2,4,64], index: 0, kind: input, shape index: {}]   ;;  %s221_s1 = inlined_call_operand.vmem [shape: bf16[64,100], index: 1, kind: input, shape index: {}]   ;;  %s222_s2 = inlined_call_operand.vmem [shape: f32[1,100], index: 2, kind: input, shape index: {}]   ;;  %s223_s3 = inlined_call_operand.hbm [shape: f32[2,100], index: 3, kind: output, shape index: {}]  }
   0x1   :  { %v142_v0 = vld [vmem:[%s221_s1 + $0x18] sm:$0xff]  ;;  %v16_v1 = vld [vmem:[%s220_s0] sm:$0xf]  ;;  %v17_v2 = vld [vmem:[%s220_s0 + $0x4] sm:$0xf]  ;;  %146 = vrcp.f32 %v174_v3 }
   0x2   :  { %95 = vmatpush.bf16.msra.mxu0 %v142_v0  ;;  %v141_v4 = vld [vmem:[%s221_s1 + $0x10] sm:$0xff]  ;;  %v19_v5 = vsel %vm18_vm0, %v16_v1, 0.0  ;;  %v26_v6 = vsel %vm18_vm0, %v17_v2, 0.0 }
   0x3   :  { %v20_v7 = vrot.slane %v19_v5, 4  ;;  %v27_v8 = vrot.slane %v26_v6, 4 }
   0x4   :  { %8 = vsyncpa [#allocation3], 0  ;;  %v140_v11 = vld [vmem:[%s221_s1 + $0x8] sm:$0xff]  ;;  %v139_v18 = vld [vmem:[%s221_s1] sm:$0xff]  ;;  %vm60_vm2 = vcmask 1041409   ;;  %vm87_vm3 = vcmask 523264  }
   0x5   :  { %v21_v9 = vadd.f32 %v20_v7, %v19_v5  ;;  %v28_v10 = vadd.f32 %v27_v8, %v26_v6  ;;  %v145_v35 = vld [vmem:[%s222_s2] ss:$0 sm:$0xff]  ;;  %s175_s24 = smov [#allocation2]   ;;  %s113_s28 = sshll.u32 %s223_s3, 4  ;;  %vm104_vm4 = vcmask 812032   ;;  %s114_s28 = int_to_ptr.hbm [resolvable:$true] %s113_s28 }
   0x6   :  { %96 = vmatpush.bf16.msra.mxu0 %v141_v4  ;;  %s111_s25 = sshll.u32 %s175_s24, 4  ;;  %s112_s25 = int_to_ptr.vmem [resolvable:$true] %s111_s25 }
   0x7   :  { %v147_v12 = vpop.eup %146  ;;  %v22_v13 = vrot.slane %v21_v9, 2  ;;  %v29_v14 = vrot.slane %v28_v10, 2 }
   0x8   :  { %v34_v15 = vmul.f32 4.0, %v147_v12  ;;  %vm38_vm1 = vweird.f32 %v147_v12 }
   0x9   :  { %v23_v16 = vadd.f32 %v22_v13, %v21_v9  ;;  %v30_v17 = vadd.f32 %v29_v14, %v28_v10 }
   0xa   :  { %97 = vmatpush.bf16.msra.mxu0 %v140_v11  ;;  %v35_v19 = vsub.f32 1.0, %v34_v15 }
   0xb   :  { %v24_v20 = vrot.slane %v23_v16, 1  ;;  %v31_v21 = vrot.slane %v30_v17, 1 }
   0xc   :  { %v36_v22 = vmul.f32 %v147_v12, %v35_v19 }
   0xd   :  { %v25_v23 = vadd.f32 %v24_v20, %v23_v16  ;;  %v32_v24 = vadd.f32 %v31_v21, %v30_v17 }
   0xe   :  { %98 = vmatpush.bf16.msra.mxu0 %v139_v18  ;;  %v37_v25 = vadd.f32 %v147_v12, %v36_v22 }
  0x10   :  { %v39_v26 = vsel %vm38_vm1, %v147_v12, %v37_v25 }
  0x11   :  { %v40_v27 = vmul.f32 %v39_v26, %v25_v23  ;;  %v41_v28 = vmul.f32 %v39_v26, %v32_v24 }
  0x13   :  { %v42_v29 = vpack.c.bf16 %v40_v27, %v40_v27  ;;  %v43_v30 = vpack.c.bf16 %v41_v28, %v41_v28 }
  0x15   :  { %v58_v31 = vunpack.c.l.b16 %v42_v29  ;;  %v59_v32 = vunpack.c.l.b16 %v43_v30 }
  0x17   :  { %v61_v33 = vsel %vm60_vm2, %v59_v32, %v58_v31 }
  0x18   :  { %v62_v34 = vpack.c.b16 %v61_v33, %v61_v33 }
  0x1a   :  { %138 = vmatmul.msk.bf16.vlgmr.msra.gmra.mxu0 %vm87_vm3, %v62_v34 }
  0x97   :  { %v100_v36 = vpop.f32.mrf.mxu0 }
  0x98   :  { %v101_v37 = vadd.f32 %v145_v35, %v100_v36 }
  0x9a   :  { %105 = vst.msk [vmem:[#allocation2] sm:$0x3] %vm104_vm4, %v101_v37 }
  0x9b   :  { %116 = dma.vmem_to_hbm [thread:$0]  %s112_s25, 32, %s114_s28, [#allocation3]  }
  0x9f   :  { %v102_v38 = vpop.f32.mrf.mxu0 }
  0xa0   :  { %172 = dma.done.wait [#allocation3], 32  }
  0xa1   :  { %173 = vsyncadd [#allocation3], 4294967264 }
  0xa2   :  { %121 = vsyncpa [#allocation3], 1 }

</bundles_post_ra>
